<compile_context>
chip_gen: v5e
topology: v5e:2x2
jax: 0.10.0
libtpu: 0.0.40
codegen_flags: <defaults>
</compile_context>

<pallas_src>
import functools
import math

import jax
import jax.numpy as jnp
from jax.experimental import pallas as pl
from jax.experimental.pallas import tpu as pltpu


def _pick_tile(n, preferred=(512, 256, 128, 64, 32, 16, 8)):
    """Largest preferred row-tile (multiple of 8) that divides n, else n."""
    for t in preferred:
        if n % t == 0:
            return t
    return n


# ------------------------- shared in-kernel core -------------------------

def _mha_proj_residual_ln(xq, q, k, v, wo, bo, gamma, beta, *, n_heads, eps):
    """softmax(q k^T / sqrt(dh)) v per head, concat, Wo, +residual, LayerNorm.

    xq       : [Lq, D] residual / query source (native dtype)
    q        : [Lq, D], k/v: [Lk, D] already projected (native dtype)
    wo, bo   : [D, D], [1, D]
    gamma/beta: [1, D] f32
    returns  : [Lq, D] f32
    """
    Lq, D = q.shape
    dh = D // n_heads
    scale = 1.0 / math.sqrt(dh)

    # Per-head loop with static lane-slices: no 3-D relayouts, all 2-D MXU ops.
    # TODO(synk): for long Lk, switch to a flash-style online-softmax tiling
    # over Lk instead of materializing [Lq, Lk] scores per head.
    heads = []
    for h in range(n_heads):
        sl = slice(h * dh, (h + 1) * dh)
        q_h = q[:, sl]
        k_h = k[:, sl]
        v_h = v[:, sl]
        s = jnp.dot(q_h, k_h.T, preferred_element_type=jnp.float32) * scale
        m = jnp.max(s, axis=-1, keepdims=True)
        p = jnp.exp(s - m)
        denom = jnp.sum(p, axis=-1, keepdims=True)
        p = p * pl.reciprocal(denom, approx=True)          # EUP, not VALU divide
        o_h = jnp.dot(p.astype(v_h.dtype), v_h, preferred_element_type=jnp.float32)
        heads.append(o_h)
    o = jnp.concatenate(heads, axis=-1).astype(xq.dtype)   # [Lq, D]

    y = jnp.dot(o, wo, preferred_element_type=jnp.float32) + bo
    z = xq.astype(jnp.float32) + y                          # fused residual
    mean = jnp.mean(z, axis=-1, keepdims=True)
    var = jnp.mean(jnp.square(z - mean), axis=-1, keepdims=True)
    zn = (z - mean) * jax.lax.rsqrt(var + eps)
    return zn * gamma + beta


# ------------------------------- kernels --------------------------------

def _self_attn_block_kernel(x_ref, wqkv_ref, bqkv_ref, wo_ref, bo_ref,
                            g_ref, bln_ref, o_ref, *, n_heads, eps):
    # norm1(x + SelfAttn(x)) with a single fused [D, 3D] QKV matmul.
    x = x_ref[0]                                            # [L, D]
    D = x.shape[-1]
    qkv = jnp.dot(x, wqkv_ref[...], preferred_element_type=jnp.float32)
    qkv = (qkv + bqkv_ref[...]).astype(x.dtype)             # [L, 3D]
    q = qkv[:, 0:D]
    k = qkv[:, D:2 * D]
    v = qkv[:, 2 * D:3 * D]
    out = _mha_proj_residual_ln(
        x, q, k, v, wo_ref[...], bo_ref[...],
        g_ref[...].astype(jnp.float32), bln_ref[...].astype(jnp.float32),
        n_heads=n_heads, eps=eps)
    o_ref[0] = out.astype(o_ref.dtype)


def _cross_attn_block_kernel(x_ref, c_ref, wq_ref, bq_ref, wkv_ref, bkv_ref,
                             wo_ref, bo_ref, g_ref, bln_ref, o_ref,
                             *, n_heads, eps):
    # norm2(x + CrossAttn(x, cross)) with a fused [D, 2D] KV matmul.
    x = x_ref[0]                                            # [Lq, D]
    c = c_ref[0]                                            # [Lk, D]
    D = x.shape[-1]
    q = (jnp.dot(x, wq_ref[...], preferred_element_type=jnp.float32)
         + bq_ref[...]).astype(x.dtype)
    kv = (jnp.dot(c, wkv_ref[...], preferred_element_type=jnp.float32)
          + bkv_ref[...]).astype(x.dtype)                   # [Lk, 2D]
    k = kv[:, 0:D]
    v = kv[:, D:2 * D]
    out = _mha_proj_residual_ln(
        x, q, k, v, wo_ref[...], bo_ref[...],
        g_ref[...].astype(jnp.float32), bln_ref[...].astype(jnp.float32),
        n_heads=n_heads, eps=eps)
    o_ref[0] = out.astype(o_ref.dtype)


def _ffn_block_kernel(x_ref, w1_ref, b1_ref, w2_ref, b2_ref, g_ref, bln_ref,
                      o_ref, *, eps):
    # norm3(x + W2 @ relu(W1 @ x))  -- Conv1d(k=1) == pointwise matmul.
    x = x_ref[...]                                          # [tm, D]
    h = jnp.dot(x, w1_ref[...], preferred_element_type=jnp.float32) + b1_ref[...]
    h = jnp.maximum(h, 0.0).astype(x.dtype)
    y = jnp.dot(h, w2_ref[...], preferred_element_type=jnp.float32) + b2_ref[...]
    z = x.astype(jnp.float32) + y                           # fused residual
    mean = jnp.mean(z, axis=-1, keepdims=True)
    var = jnp.mean(jnp.square(z - mean), axis=-1, keepdims=True)
    zn = (z - mean) * jax.lax.rsqrt(var + eps)
    o_ref[...] = (zn * g_ref[...].astype(jnp.float32)
                  + bln_ref[...].astype(jnp.float32)).astype(o_ref.dtype)


def _layernorm_kernel(x_ref, g_ref, b_ref, o_ref, *, eps):
    x = x_ref[...].astype(jnp.float32)
    mean = jnp.mean(x, axis=-1, keepdims=True)
    var = jnp.mean(jnp.square(x - mean), axis=-1, keepdims=True)
    y = (x - mean) * jax.lax.rsqrt(var + eps)
    o_ref[...] = (y * g_ref[...] + b_ref[...]).astype(o_ref.dtype)


# ------------------------------- wrappers --------------------------------

def self_attn_block(x, p, n_heads, eps=1e-5):
    B, L, D = x.shape
    cost = pl.CostEstimate(
        flops=2 * B * L * D * 3 * D + 4 * B * L * L * D + 2 * B * L * D * D,
        transcendentals=B * n_heads * L * L,
        bytes_accessed=4 * (2 * B * L * D + 4 * D * D + 7 * D),
    )
    return pl.pallas_call(
        functools.partial(_self_attn_block_kernel, n_heads=n_heads, eps=eps),
        out_shape=jax.ShapeDtypeStruct((B, L, D), x.dtype),
        grid=(B,),
        in_specs=[
            pl.BlockSpec((1, L, D), lambda b: (b, 0, 0)),
            pl.BlockSpec((D, 3 * D), lambda b: (0, 0)),   # weights resident
            pl.BlockSpec((1, 3 * D), lambda b: (0, 0)),
            pl.BlockSpec((D, D), lambda b: (0, 0)),
            pl.BlockSpec((1, D), lambda b: (0, 0)),
            pl.BlockSpec((1, D), lambda b: (0, 0)),
            pl.BlockSpec((1, D), lambda b: (0, 0)),
        ],
        out_specs=pl.BlockSpec((1, L, D), lambda b: (b, 0, 0)),
        compiler_params=pltpu.CompilerParams(dimension_semantics=("parallel",)),
        cost_estimate=cost,
    )(x, p["wqkv"], p["bqkv"].reshape(1, 3 * D), p["wo"], p["bo"].reshape(1, D),
      p["norm_g"].reshape(1, D), p["norm_b"].reshape(1, D))


def cross_attn_block(x, cross, p, n_heads, eps=1e-5):
    B, Lq, D = x.shape
    Lk = cross.shape[1]
    cost = pl.CostEstimate(
        flops=2 * B * Lq * D * D + 2 * B * Lk * D * 2 * D
              + 4 * B * Lq * Lk * D + 2 * B * Lq * D * D,
        transcendentals=B * n_heads * Lq * Lk,
        bytes_accessed=4 * (2 * B * Lq * D + B * Lk * D + 4 * D * D + 6 * D),
    )
    return pl.pallas_call(
        functools.partial(_cross_attn_block_kernel, n_heads=n_heads, eps=eps),
        out_shape=jax.ShapeDtypeStruct((B, Lq, D), x.dtype),
        grid=(B,),
        in_specs=[
            pl.BlockSpec((1, Lq, D), lambda b: (b, 0, 0)),
            pl.BlockSpec((1, Lk, D), lambda b: (b, 0, 0)),
            pl.BlockSpec((D, D), lambda b: (0, 0)),
            pl.BlockSpec((1, D), lambda b: (0, 0)),
            pl.BlockSpec((D, 2 * D), lambda b: (0, 0)),
            pl.BlockSpec((1, 2 * D), lambda b: (0, 0)),
            pl.BlockSpec((D, D), lambda b: (0, 0)),
            pl.BlockSpec((1, D), lambda b: (0, 0)),
            pl.BlockSpec((1, D), lambda b: (0, 0)),
            pl.BlockSpec((1, D), lambda b: (0, 0)),
        ],
        out_specs=pl.BlockSpec((1, Lq, D), lambda b: (b, 0, 0)),
        compiler_params=pltpu.CompilerParams(dimension_semantics=("parallel",)),
        cost_estimate=cost,
    )(x, cross, p["wq"], p["bq"].reshape(1, D), p["wkv"], p["bkv"].reshape(1, 2 * D),
      p["wo"], p["bo"].reshape(1, D),
      p["norm_g"].reshape(1, D), p["norm_b"].reshape(1, D))


def ffn_block(x2d, p, eps=1e-5):
    M, D = x2d.shape
    F = p["w1"].shape[1]
    tm = _pick_tile(M)
    cost = pl.CostEstimate(
        flops=4 * M * D * F,
        transcendentals=0,
        bytes_accessed=4 * (2 * M * D + 2 * D * F + F + 4 * D),
    )
    return pl.pallas_call(
        functools.partial(_ffn_block_kernel, eps=eps),
        out_shape=jax.ShapeDtypeStruct((M, D), x2d.dtype),
        grid=(M // tm,),
        in_specs=[
            pl.BlockSpec((tm, D), lambda m: (m, 0)),
            pl.BlockSpec((D, F), lambda m: (0, 0)),       # weights resident
            pl.BlockSpec((1, F), lambda m: (0, 0)),
            pl.BlockSpec((F, D), lambda m: (0, 0)),
            pl.BlockSpec((1, D), lambda m: (0, 0)),
            pl.BlockSpec((1, D), lambda m: (0, 0)),
            pl.BlockSpec((1, D), lambda m: (0, 0)),
        ],
        out_specs=pl.BlockSpec((tm, D), lambda m: (m, 0)),
        compiler_params=pltpu.CompilerParams(dimension_semantics=("parallel",)),
        cost_estimate=cost,
    )(x2d, p["w1"], p["b1"].reshape(1, F), p["w2"], p["b2"].reshape(1, D),
      p["norm_g"].reshape(1, D), p["norm_b"].reshape(1, D))


def layernorm(x2d, gamma, beta, eps=1e-5):
    M, D = x2d.shape
    tm = _pick_tile(M)
    return pl.pallas_call(
        functools.partial(_layernorm_kernel, eps=eps),
        out_shape=jax.ShapeDtypeStruct((M, D), x2d.dtype),
        grid=(M // tm,),
        in_specs=[
            pl.BlockSpec((tm, D), lambda m: (m, 0)),
            pl.BlockSpec((1, D), lambda m: (0, 0)),
            pl.BlockSpec((1, D), lambda m: (0, 0)),
        ],
        out_specs=pl.BlockSpec((tm, D), lambda m: (m, 0)),
        compiler_params=pltpu.CompilerParams(dimension_semantics=("parallel",)),
    )(x2d, gamma.reshape(1, D), beta.reshape(1, D))


# --------------------------- Decoder (glue) -----------------------------

def decoder_layer(x, cross, p, n_heads):
    B, L, D = x.shape
    x = self_attn_block(x, p["self_attn"], n_heads)            # norm1(x + SA)
    x = cross_attn_block(x, cross, p["cross_attn"], n_heads)   # norm2(x + CA)
    y = ffn_block(x.reshape(B * L, D), p["ffn"])               # norm3(x + FFN)
    return y.reshape(B, L, D)


def decoder(x, cross, params, n_heads, x_mask=None, cross_mask=None):
    # TODO(synk): attention-mask support omitted — the module's forward is
    # exercised with the default x_mask=cross_mask=None.
    for lp in params["layers"]:
        x = decoder_layer(x, cross, lp, n_heads)
    if params.get("norm_g") is not None:
        B, L, D = x.shape
        x = layernorm(x.reshape(B * L, D),
                      params["norm_g"], params["norm_b"]).reshape(B, L, D)
    return x


def init_params(key, num_layers, d_model, n_heads, d_ff):
    def dense(k, fan_in, fan_out):
        kw, kb = jax.random.split(k)
        w = jax.random.normal(kw, (fan_in, fan_out), jnp.float32) / math.sqrt(fan_in)
        b = 0.01 * jax.random.normal(kb, (fan_out,), jnp.float32)
        return w, b

    d = d_model
    layers = []
    for lk in jax.random.split(key, num_layers):
        k_qkv, k_so, k_cq, k_ckv, k_co, k_f1, k_f2 = jax.random.split(lk, 7)
        wqkv, bqkv = dense(k_qkv, d, 3 * d)      # fused [wq|wk|wv]
        wso, bso = dense(k_so, d, d)
        wcq, bcq = dense(k_cq, d, d)
        wckv, bckv = dense(k_ckv, d, 2 * d)      # fused [wk|wv] for cross
        wco, bco = dense(k_co, d, d)
        w1, b1 = dense(k_f1, d, d_ff)
        w2, b2 = dense(k_f2, d_ff, d)
        layers.append({
            "self_attn": {
                "wqkv": wqkv, "bqkv": bqkv, "wo": wso, "bo": bso,
                "norm_g": jnp.ones((d,), jnp.float32),
                "norm_b": jnp.zeros((d,), jnp.float32),
            },
            "cross_attn": {
                "wq": wcq, "bq": bcq, "wkv": wckv, "bkv": bckv,
                "wo": wco, "bo": bco,
                "norm_g": jnp.ones((d,), jnp.float32),
                "norm_b": jnp.zeros((d,), jnp.float32),
            },
            "ffn": {
                "w1": w1, "b1": b1, "w2": w2, "b2": b2,
                "norm_g": jnp.ones((d,), jnp.float32),
                "norm_b": jnp.zeros((d,), jnp.float32),
            },
        })

    return {
        "layers": layers,
        "norm_g": jnp.ones((d_model,), jnp.float32),   # final nn.LayerNorm(d_model)
        "norm_b": jnp.zeros((d_model,), jnp.float32),
    }


if __name__ == "__main__":
    B, L_DEC, L_ENC, D, H, FF, N_LAYERS = 2, 8, 8, 32, 4, 64, 2
    key = jax.random.PRNGKey(0)
    kx, kc, kp = jax.random.split(key, 3)
    x = jax.random.normal(kx, (B, L_DEC, D), jnp.float32)
    cross = jax.random.normal(kc, (B, L_ENC, D), jnp.float32)
    params = init_params(kp, N_LAYERS, D, H, FF)

    decoder_fn = jax.jit(functools.partial(decoder, n_heads=H))
    out = decoder_fn(x, cross, params)
    out = jax.block_until_ready(out)

    assert out.shape == (B, L_DEC, D), out.shape
    assert bool(jnp.all(jnp.isfinite(out)))
    print("KERNEL_OK")
</pallas_src>

<mosaic_0001>
module attributes {stable_mosaic.version = 11 : i64} {
  func.func @_ffn_block_kernel(%arg0: i32, %arg1: memref<16x32xf32, #tpu.memory_space<vmem>>, %arg2: memref<32x64xf32, #tpu.memory_space<vmem>>, %arg3: memref<1x64xf32, #tpu.memory_space<vmem>>, %arg4: memref<64x32xf32, #tpu.memory_space<vmem>>, %arg5: memref<1x32xf32, #tpu.memory_space<vmem>>, %arg6: memref<1x32xf32, #tpu.memory_space<vmem>>, %arg7: memref<1x32xf32, #tpu.memory_space<vmem>>, %arg8: memref<16x32xf32, #tpu.memory_space<vmem>>) attributes {dimension_semantics = [#tpu.dimension_semantics<parallel>], iteration_bounds = array<i64: 1>, scalar_prefetch = 0 : i64, scratch_operands = 0 : i64, tpu.core_type = #tpu.core_type<tc>, window_params = [{transform_indices = @transform_0, window_bounds = array<i64: 16, 32>}, {pipeline_mode = #tpu.pipeline_mode<synchronous>, transform_indices = @transform_1, window_bounds = array<i64: 32, 64>}, {pipeline_mode = #tpu.pipeline_mode<synchronous>, transform_indices = @transform_2, window_bounds = array<i64: 1, 64>}, {pipeline_mode = #tpu.pipeline_mode<synchronous>, transform_indices = @transform_3, window_bounds = array<i64: 64, 32>}, {pipeline_mode = #tpu.pipeline_mode<synchronous>, transform_indices = @transform_4, window_bounds = array<i64: 1, 32>}, {pipeline_mode = #tpu.pipeline_mode<synchronous>, transform_indices = @transform_5, window_bounds = array<i64: 1, 32>}, {pipeline_mode = #tpu.pipeline_mode<synchronous>, transform_indices = @transform_6, window_bounds = array<i64: 1, 32>}, {transform_indices = @transform_7, window_bounds = array<i64: 16, 32>}]} {
    %c0 = arith.constant 0 : index
    %c0_0 = arith.constant 0 : index
    %0 = vector.load %arg1[%c0, %c0_0] : memref<16x32xf32, #tpu.memory_space<vmem>>, vector<16x32xf32>
    %c0_1 = arith.constant 0 : index
    %c0_2 = arith.constant 0 : index
    %1 = vector.load %arg2[%c0_1, %c0_2] : memref<32x64xf32, #tpu.memory_space<vmem>>, vector<32x64xf32>
    %cst = arith.constant dense<0.000000e+00> : vector<16x64xf32>
    %2 = tpu.matmul %0, %1, %cst {dimension_numbers = #tpu.dot_dimension_numbers<[1], [0], [0], [1], [0, 0, 1, 1], [], []>} : vector<16x32xf32>, vector<32x64xf32>, vector<16x64xf32> -> vector<16x64xf32>
    %c0_3 = arith.constant 0 : index
    %c0_4 = arith.constant 0 : index
    %3 = vector.load %arg3[%c0_3, %c0_4] : memref<1x64xf32, #tpu.memory_space<vmem>>, vector<1x64xf32>
    %4 = vector.broadcast %3 : vector<1x64xf32> to vector<16x64xf32>
    %5 = arith.addf %2, %4 : vector<16x64xf32>
    %cst_5 = arith.constant 0.000000e+00 : f32
    %6 = vector.broadcast %cst_5 : f32 to vector<16x64xf32>
    %7 = arith.maximumf %5, %6 : vector<16x64xf32>
    %c0_6 = arith.constant 0 : index
    %c0_7 = arith.constant 0 : index
    %8 = vector.load %arg4[%c0_6, %c0_7] : memref<64x32xf32, #tpu.memory_space<vmem>>, vector<64x32xf32>
    %cst_8 = arith.constant dense<0.000000e+00> : vector<16x32xf32>
    %9 = tpu.matmul %7, %8, %cst_8 {dimension_numbers = #tpu.dot_dimension_numbers<[1], [0], [0], [1], [0, 0, 1, 1], [], []>} : vector<16x64xf32>, vector<64x32xf32>, vector<16x32xf32> -> vector<16x32xf32>
    %c0_9 = arith.constant 0 : index
    %c0_10 = arith.constant 0 : index
    %10 = vector.load %arg5[%c0_9, %c0_10] : memref<1x32xf32, #tpu.memory_space<vmem>>, vector<1x32xf32>
    %11 = vector.broadcast %10 : vector<1x32xf32> to vector<16x32xf32>
    %12 = arith.addf %9, %11 : vector<16x32xf32>
    %13 = arith.addf %0, %12 : vector<16x32xf32>
    %cst_11 = arith.constant dense<0.000000e+00> : vector<16xf32>
    %14 = vector.multi_reduction <add>, %13, %cst_11 [1] : vector<16x32xf32> to vector<16xf32>
    %15 = vector.shape_cast %14 : vector<16xf32> to vector<16x1xf32>
    %cst_12 = arith.constant 3.200000e+01 : f32
    %16 = vector.broadcast %cst_12 : f32 to vector<16x1xf32>
    %17 = arith.divf %15, %16 : vector<16x1xf32>
    %18 = vector.broadcast %17 : vector<16x1xf32> to vector<16x32xf32>
    %19 = arith.subf %13, %18 : vector<16x32xf32>
    %20 = arith.mulf %19, %19 : vector<16x32xf32>
    %cst_13 = arith.constant dense<0.000000e+00> : vector<16xf32>
    %21 = vector.multi_reduction <add>, %20, %cst_13 [1] : vector<16x32xf32> to vector<16xf32>
    %22 = vector.shape_cast %21 : vector<16xf32> to vector<16x1xf32>
    %cst_14 = arith.constant 3.200000e+01 : f32
    %23 = vector.broadcast %cst_14 : f32 to vector<16x1xf32>
    %24 = arith.divf %22, %23 : vector<16x1xf32>
    %25 = vector.broadcast %17 : vector<16x1xf32> to vector<16x32xf32>
    %26 = arith.subf %13, %25 : vector<16x32xf32>
    %cst_15 = arith.constant 9.99999974E-6 : f32
    %27 = vector.broadcast %cst_15 : f32 to vector<16x1xf32>
    %28 = arith.addf %24, %27 : vector<16x1xf32>
    %29 = math.rsqrt %28 : vector<16x1xf32>
    %30 = vector.broadcast %29 : vector<16x1xf32> to vector<16x32xf32>
    %31 = arith.mulf %26, %30 : vector<16x32xf32>
    %c0_16 = arith.constant 0 : index
    %c0_17 = arith.constant 0 : index
    %32 = vector.load %arg6[%c0_16, %c0_17] : memref<1x32xf32, #tpu.memory_space<vmem>>, vector<1x32xf32>
    %33 = vector.broadcast %32 : vector<1x32xf32> to vector<16x32xf32>
    %34 = arith.mulf %31, %33 : vector<16x32xf32>
    %c0_18 = arith.constant 0 : index
    %c0_19 = arith.constant 0 : index
    %35 = vector.load %arg7[%c0_18, %c0_19] : memref<1x32xf32, #tpu.memory_space<vmem>>, vector<1x32xf32>
    %36 = vector.broadcast %35 : vector<1x32xf32> to vector<16x32xf32>
    %37 = arith.addf %34, %36 : vector<16x32xf32>
    %c0_20 = arith.constant 0 : index
    %c0_21 = arith.constant 0 : index
    %38 = vector.load %arg8[%c0_20, %c0_21] : memref<16x32xf32, #tpu.memory_space<vmem>>, vector<16x32xf32>
    tpu.vector_store %arg8[%c0_20, %c0_21], %37 {strides = array<i32>} : memref<16x32xf32, #tpu.memory_space<vmem>>, vector<16x32xf32>,
    return
  }
  func.func @transform_0(%arg0: i32) -> (i32, i32) {
    %c0_i32 = arith.constant 0 : i32
    %c0_i32_0 = arith.constant 0 : i32
    return %arg0, %c0_i32 : i32, i32
  }
  func.func @transform_1(%arg0: i32) -> (i32, i32) {
    %c0_i32 = arith.constant 0 : i32
    %c0_i32_0 = arith.constant 0 : i32
    %c0_i32_1 = arith.constant 0 : i32
    return %c0_i32, %c0_i32_0 : i32, i32
  }
  func.func @transform_2(%arg0: i32) -> (i32, i32) {
    %c0_i32 = arith.constant 0 : i32
    %c0_i32_0 = arith.constant 0 : i32
    %c0_i32_1 = arith.constant 0 : i32
    return %c0_i32, %c0_i32_0 : i32, i32
  }
  func.func @transform_3(%arg0: i32) -> (i32, i32) {
    %c0_i32 = arith.constant 0 : i32
    %c0_i32_0 = arith.constant 0 : i32
    %c0_i32_1 = arith.constant 0 : i32
    return %c0_i32, %c0_i32_0 : i32, i32
  }
  func.func @transform_4(%arg0: i32) -> (i32, i32) {
    %c0_i32 = arith.constant 0 : i32
    %c0_i32_0 = arith.constant 0 : i32
    %c0_i32_1 = arith.constant 0 : i32
    return %c0_i32, %c0_i32_0 : i32, i32
  }
  func.func @transform_5(%arg0: i32) -> (i32, i32) {
    %c0_i32 = arith.constant 0 : i32
    %c0_i32_0 = arith.constant 0 : i32
    %c0_i32_1 = arith.constant 0 : i32
    return %c0_i32, %c0_i32_0 : i32, i32
  }
  func.func @transform_6(%arg0: i32) -> (i32, i32) {
    %c0_i32 = arith.constant 0 : i32
    %c0_i32_0 = arith.constant 0 : i32
    %c0_i32_1 = arith.constant 0 : i32
    return %c0_i32, %c0_i32_0 : i32, i32
  }
  func.func @transform_7(%arg0: i32) -> (i32, i32) {
    %c0_i32 = arith.constant 0 : i32
    %c0_i32_0 = arith.constant 0 : i32
    return %arg0, %c0_i32 : i32, i32
  }
}

module attributes {stable_mosaic.version = 11 : i64} {
  func.func @_self_attn_block_kernel(%arg0: i32, %arg1: memref<1x8x32xf32, #tpu.memory_space<vmem>>, %arg2: memref<32x96xf32, #tpu.memory_space<vmem>>, %arg3: memref<1x96xf32, #tpu.memory_space<vmem>>, %arg4: memref<32x32xf32, #tpu.memory_space<vmem>>, %arg5: memref<1x32xf32, #tpu.memory_space<vmem>>, %arg6: memref<1x32xf32, #tpu.memory_space<vmem>>, %arg7: memref<1x32xf32, #tpu.memory_space<vmem>>, %arg8: memref<1x8x32xf32, #tpu.memory_space<vmem>>) attributes {dimension_semantics = [#tpu.dimension_semantics<parallel>], iteration_bounds = array<i64: 2>, scalar_prefetch = 0 : i64, scratch_operands = 0 : i64, tpu.core_type = #tpu.core_type<tc>, window_params = [{transform_indices = @transform_0, window_bounds = array<i64: 1, 8, 32>}, {pipeline_mode = #tpu.pipeline_mode<synchronous>, transform_indices = @transform_1, window_bounds = array<i64: 32, 96>}, {pipeline_mode = #tpu.pipeline_mode<synchronous>, transform_indices = @transform_2, window_bounds = array<i64: 1, 96>}, {pipeline_mode = #tpu.pipeline_mode<synchronous>, transform_indices = @transform_3, window_bounds = array<i64: 32, 32>}, {pipeline_mode = #tpu.pipeline_mode<synchronous>, transform_indices = @transform_4, window_bounds = array<i64: 1, 32>}, {pipeline_mode = #tpu.pipeline_mode<synchronous>, transform_indices = @transform_5, window_bounds = array<i64: 1, 32>}, {pipeline_mode = #tpu.pipeline_mode<synchronous>, transform_indices = @transform_6, window_bounds = array<i64: 1, 32>}, {transform_indices = @transform_7, window_bounds = array<i64: 1, 8, 32>}]} {
    %c0 = arith.constant 0 : index
    %c0_0 = arith.constant 0 : index
    %c0_1 = arith.constant 0 : index
    %0 = vector.load %arg1[%c0, %c0_0, %c0_1] : memref<1x8x32xf32, #tpu.memory_space<vmem>>, vector<1x8x32xf32>
    %1 = vector.shape_cast %0 : vector<1x8x32xf32> to vector<8x32xf32>
    %c0_2 = arith.constant 0 : index
    %c0_3 = arith.constant 0 : index
    %2 = vector.load %arg2[%c0_2, %c0_3] : memref<32x96xf32, #tpu.memory_space<vmem>>, vector<32x96xf32>
    %cst = arith.constant dense<0.000000e+00> : vector<8x96xf32>
    %3 = tpu.matmul %1, %2, %cst {dimension_numbers = #tpu.dot_dimension_numbers<[1], [0], [0], [1], [0, 0, 1, 1], [], []>} : vector<8x32xf32>, vector<32x96xf32>, vector<8x96xf32> -> vector<8x96xf32>
    %c0_4 = arith.constant 0 : index
    %c0_5 = arith.constant 0 : index
    %4 = vector.load %arg3[%c0_4, %c0_5] : memref<1x96xf32, #tpu.memory_space<vmem>>, vector<1x96xf32>
    %5 = vector.broadcast %4 : vector<1x96xf32> to vector<8x96xf32>
    %6 = arith.addf %3, %5 : vector<8x96xf32>
    %7 = vector.extract_strided_slice %6 {offsets = [0, 0], sizes = [8, 32], strides = [1, 1]} : vector<8x96xf32> to vector<8x32xf32>
    %8 = vector.extract_strided_slice %6 {offsets = [0, 32], sizes = [8, 32], strides = [1, 1]} : vector<8x96xf32> to vector<8x32xf32>
    %9 = vector.extract_strided_slice %6 {offsets = [0, 64], sizes = [8, 32], strides = [1, 1]} : vector<8x96xf32> to vector<8x32xf32>
    %c0_6 = arith.constant 0 : index
    %c0_7 = arith.constant 0 : index
    %10 = vector.load %arg4[%c0_6, %c0_7] : memref<32x32xf32, #tpu.memory_space<vmem>>, vector<32x32xf32>
    %c0_8 = arith.constant 0 : index
    %c0_9 = arith.constant 0 : index
    %11 = vector.load %arg5[%c0_8, %c0_9] : memref<1x32xf32, #tpu.memory_space<vmem>>, vector<1x32xf32>
    %c0_10 = arith.constant 0 : index
    %c0_11 = arith.constant 0 : index
    %12 = vector.load %arg6[%c0_10, %c0_11] : memref<1x32xf32, #tpu.memory_space<vmem>>, vector<1x32xf32>
    %c0_12 = arith.constant 0 : index
    %c0_13 = arith.constant 0 : index
    %13 = vector.load %arg7[%c0_12, %c0_13] : memref<1x32xf32, #tpu.memory_space<vmem>>, vector<1x32xf32>
    %14 = vector.extract_strided_slice %7 {offsets = [0, 0], sizes = [8, 8], strides = [1, 1]} : vector<8x32xf32> to vector<8x8xf32>
    %15 = vector.extract_strided_slice %8 {offsets = [0, 0], sizes = [8, 8], strides = [1, 1]} : vector<8x32xf32> to vector<8x8xf32>
    %16 = vector.extract_strided_slice %9 {offsets = [0, 0], sizes = [8, 8], strides = [1, 1]} : vector<8x32xf32> to vector<8x8xf32>
    %17 = tpu.transpose %15, [1, 0] : vector<8x8xf32> -> vector<8x8xf32>
    %cst_14 = arith.constant dense<0.000000e+00> : vector<8x8xf32>
    %18 = tpu.matmul %14, %17, %cst_14 {dimension_numbers = #tpu.dot_dimension_numbers<[1], [0], [0], [1], [0, 0, 1, 1], [], []>} : vector<8x8xf32>, vector<8x8xf32>, vector<8x8xf32> -> vector<8x8xf32>
    %cst_15 = arith.constant 0.353553385 : f32
    %19 = vector.broadcast %cst_15 : f32 to vector<8x8xf32>
    %20 = arith.mulf %18, %19 : vector<8x8xf32>
    %cst_16 = arith.constant dense<0xFF800000> : vector<8xf32>
    %21 = vector.multi_reduction <maximumf>, %20, %cst_16 [1] : vector<8x8xf32> to vector<8xf32>
    %22 = vector.shape_cast %21 : vector<8xf32> to vector<8x1xf32>
    %23 = vector.broadcast %22 : vector<8x1xf32> to vector<8x8xf32>
    %24 = arith.subf %20, %23 : vector<8x8xf32>
    %25 = math.exp %24 : vector<8x8xf32>
    %cst_17 = arith.constant dense<0.000000e+00> : vector<8xf32>
    %26 = vector.multi_reduction <add>, %25, %cst_17 [1] : vector<8x8xf32> to vector<8xf32>
    %27 = vector.shape_cast %26 : vector<8xf32> to vector<8x1xf32>
    %28 = tpu.reciprocal %27 {approx = true} : vector<8x1xf32> -> vector<8x1xf32>
    %29 = vector.broadcast %28 : vector<8x1xf32> to vector<8x8xf32>
    %30 = arith.mulf %25, %29 : vector<8x8xf32>
    %cst_18 = arith.constant dense<0.000000e+00> : vector<8x8xf32>
    %31 = tpu.matmul %30, %16, %cst_18 {dimension_numbers = #tpu.dot_dimension_numbers<[1], [0], [0], [1], [0, 0, 1, 1], [], []>} : vector<8x8xf32>, vector<8x8xf32>, vector<8x8xf32> -> vector<8x8xf32>
    %32 = vector.extract_strided_slice %7 {offsets = [0, 8], sizes = [8, 8], strides = [1, 1]} : vector<8x32xf32> to vector<8x8xf32>
    %33 = vector.extract_strided_slice %8 {offsets = [0, 8], sizes = [8, 8], strides = [1, 1]} : vector<8x32xf32> to vector<8x8xf32>
    %34 = vector.extract_strided_slice %9 {offsets = [0, 8], sizes = [8, 8], strides = [1, 1]} : vector<8x32xf32> to vector<8x8xf32>
    %35 = tpu.transpose %33, [1, 0] : vector<8x8xf32> -> vector<8x8xf32>
    %cst_19 = arith.constant dense<0.000000e+00> : vector<8x8xf32>
    %36 = tpu.matmul %32, %35, %cst_19 {dimension_numbers = #tpu.dot_dimension_numbers<[1], [0], [0], [1], [0, 0, 1, 1], [], []>} : vector<8x8xf32>, vector<8x8xf32>, vector<8x8xf32> -> vector<8x8xf32>
    %cst_20 = arith.constant 0.353553385 : f32
    %37 = vector.broadcast %cst_20 : f32 to vector<8x8xf32>
    %38 = arith.mulf %36, %37 : vector<8x8xf32>
    %cst_21 = arith.constant dense<0xFF800000> : vector<8xf32>
    %39 = vector.multi_reduction <maximumf>, %38, %cst_21 [1] : vector<8x8xf32> to vector<8xf32>
    %40 = vector.shape_cast %39 : vector<8xf32> to vector<8x1xf32>
    %41 = vector.broadcast %40 : vector<8x1xf32> to vector<8x8xf32>
    %42 = arith.subf %38, %41 : vector<8x8xf32>
    %43 = math.exp %42 : vector<8x8xf32>
    %cst_22 = arith.constant dense<0.000000e+00> : vector<8xf32>
    %44 = vector.multi_reduction <add>, %43, %cst_22 [1] : vector<8x8xf32> to vector<8xf32>
    %45 = vector.shape_cast %44 : vector<8xf32> to vector<8x1xf32>
    %46 = tpu.reciprocal %45 {approx = true} : vector<8x1xf32> -> vector<8x1xf32>
    %47 = vector.broadcast %46 : vector<8x1xf32> to vector<8x8xf32>
    %48 = arith.mulf %43, %47 : vector<8x8xf32>
    %cst_23 = arith.constant dense<0.000000e+00> : vector<8x8xf32>
    %49 = tpu.matmul %48, %34, %cst_23 {dimension_numbers = #tpu.dot_dimension_numbers<[1], [0], [0], [1], [0, 0, 1, 1], [], []>} : vector<8x8xf32>, vector<8x8xf32>, vector<8x8xf32> -> vector<8x8xf32>
    %50 = vector.extract_strided_slice %7 {offsets = [0, 16], sizes = [8, 8], strides = [1, 1]} : vector<8x32xf32> to vector<8x8xf32>
    %51 = vector.extract_strided_slice %8 {offsets = [0, 16], sizes = [8, 8], strides = [1, 1]} : vector<8x32xf32> to vector<8x8xf32>
    %52 = vector.extract_strided_slice %9 {offsets = [0, 16], sizes = [8, 8], strides = [1, 1]} : vector<8x32xf32> to vector<8x8xf32>
    %53 = tpu.transpose %51, [1, 0] : vector<8x8xf32> -> vector<8x8xf32>
    %cst_24 = arith.constant dense<0.000000e+00> : vector<8x8xf32>
    %54 = tpu.matmul %50, %53, %cst_24 {dimension_numbers = #tpu.dot_dimension_numbers<[1], [0], [0], [1], [0, 0, 1, 1], [], []>} : vector<8x8xf32>, vector<8x8xf32>, vector<8x8xf32> -> vector<8x8xf32>
    %cst_25 = arith.constant 0.353553385 : f32
    %55 = vector.broadcast %cst_25 : f32 to vector<8x8xf32>
    %56 = arith.mulf %54, %55 : vector<8x8xf32>
    %cst_26 = arith.constant dense<0xFF800000> : vector<8xf32>
    %57 = vector.multi_reduction <maximumf>, %56, %cst_26 [1] : vector<8x8xf32> to vector<8xf32>
    %58 = vector.shape_cast %57 : vector<8xf32> to vector<8x1xf32>
    %59 = vector.broadcast %58 : vector<8x1xf32> to vector<8x8xf32>
    %60 = arith.subf %56, %59 : vector<8x8xf32>
    %61 = math.exp %60 : vector<8x8xf32>
    %cst_27 = arith.constant dense<0.000000e+00> : vector<8xf32>
    %62 = vector.multi_reduction <add>, %61, %cst_27 [1] : vector<8x8xf32> to vector<8xf32>
    %63 = vector.shape_cast %62 : vector<8xf32> to vector<8x1xf32>
    %64 = tpu.reciprocal %63 {approx = true} : vector<8x1xf32> -> vector<8x1xf32>
    %65 = vector.broadcast %64 : vector<8x1xf32> to vector<8x8xf32>
    %66 = arith.mulf %61, %65 : vector<8x8xf32>
    %cst_28 = arith.constant dense<0.000000e+00> : vector<8x8xf32>
    %67 = tpu.matmul %66, %52, %cst_28 {dimension_numbers = #tpu.dot_dimension_numbers<[1], [0], [0], [1], [0, 0, 1, 1], [], []>} : vector<8x8xf32>, vector<8x8xf32>, vector<8x8xf32> -> vector<8x8xf32>
    %68 = vector.extract_strided_slice %7 {offsets = [0, 24], sizes = [8, 8], strides = [1, 1]} : vector<8x32xf32> to vector<8x8xf32>
    %69 = vector.extract_strided_slice %8 {offsets = [0, 24], sizes = [8, 8], strides = [1, 1]} : vector<8x32xf32> to vector<8x8xf32>
    %70 = vector.extract_strided_slice %9 {offsets = [0, 24], sizes = [8, 8], strides = [1, 1]} : vector<8x32xf32> to vector<8x8xf32>
    %71 = tpu.transpose %69, [1, 0] : vector<8x8xf32> -> vector<8x8xf32>
    %cst_29 = arith.constant dense<0.000000e+00> : vector<8x8xf32>
    %72 = tpu.matmul %68, %71, %cst_29 {dimension_numbers = #tpu.dot_dimension_numbers<[1], [0], [0], [1], [0, 0, 1, 1], [], []>} : vector<8x8xf32>, vector<8x8xf32>, vector<8x8xf32> -> vector<8x8xf32>
    %cst_30 = arith.constant 0.353553385 : f32
    %73 = vector.broadcast %cst_30 : f32 to vector<8x8xf32>
    %74 = arith.mulf %72, %73 : vector<8x8xf32>
    %cst_31 = arith.constant dense<0xFF800000> : vector<8xf32>
    %75 = vector.multi_reduction <maximumf>, %74, %cst_31 [1] : vector<8x8xf32> to vector<8xf32>
    %76 = vector.shape_cast %75 : vector<8xf32> to vector<8x1xf32>
    %77 = vector.broadcast %76 : vector<8x1xf32> to vector<8x8xf32>
    %78 = arith.subf %74, %77 : vector<8x8xf32>
    %79 = math.exp %78 : vector<8x8xf32>
    %cst_32 = arith.constant dense<0.000000e+00> : vector<8xf32>
    %80 = vector.multi_reduction <add>, %79, %cst_32 [1] : vector<8x8xf32> to vector<8xf32>
    %81 = vector.shape_cast %80 : vector<8xf32> to vector<8x1xf32>
    %82 = tpu.reciprocal %81 {approx = true} : vector<8x1xf32> -> vector<8x1xf32>
    %83 = vector.broadcast %82 : vector<8x1xf32> to vector<8x8xf32>
    %84 = arith.mulf %79, %83 : vector<8x8xf32>
    %cst_33 = arith.constant dense<0.000000e+00> : vector<8x8xf32>
    %85 = tpu.matmul %84, %70, %cst_33 {dimension_numbers = #tpu.dot_dimension_numbers<[1], [0], [0], [1], [0, 0, 1, 1], [], []>} : vector<8x8xf32>, vector<8x8xf32>, vector<8x8xf32> -> vector<8x8xf32>
    %86 = tpu.concatenate %31, %49, %67, %85 in 1 : vector<8x8xf32>, vector<8x8xf32>, vector<8x8xf32>, vector<8x8xf32> -> vector<8x32xf32>
    %cst_34 = arith.constant dense<0.000000e+00> : vector<8x32xf32>
    %87 = tpu.matmul %86, %10, %cst_34 {dimension_numbers = #tpu.dot_dimension_numbers<[1], [0], [0], [1], [0, 0, 1, 1], [], []>} : vector<8x32xf32>, vector<32x32xf32>, vector<8x32xf32> -> vector<8x32xf32>
    %88 = vector.broadcast %11 : vector<1x32xf32> to vector<8x32xf32>
    %89 = arith.addf %87, %88 : vector<8x32xf32>
    %90 = arith.addf %1, %89 : vector<8x32xf32>
    %cst_35 = arith.constant dense<0.000000e+00> : vector<8xf32>
    %91 = vector.multi_reduction <add>, %90, %cst_35 [1] : vector<8x32xf32> to vector<8xf32>
    %92 = vector.shape_cast %91 : vector<8xf32> to vector<8x1xf32>
    %cst_36 = arith.constant 3.200000e+01 : f32
    %93 = vector.broadcast %cst_36 : f32 to vector<8x1xf32>
    %94 = arith.divf %92, %93 : vector<8x1xf32>
    %95 = vector.broadcast %94 : vector<8x1xf32> to vector<8x32xf32>
    %96 = arith.subf %90, %95 : vector<8x32xf32>
    %97 = arith.mulf %96, %96 : vector<8x32xf32>
    %cst_37 = arith.constant dense<0.000000e+00> : vector<8xf32>
    %98 = vector.multi_reduction <add>, %97, %cst_37 [1] : vector<8x32xf32> to vector<8xf32>
    %99 = vector.shape_cast %98 : vector<8xf32> to vector<8x1xf32>
    %cst_38 = arith.constant 3.200000e+01 : f32
    %100 = vector.broadcast %cst_38 : f32 to vector<8x1xf32>
    %101 = arith.divf %99, %100 : vector<8x1xf32>
    %102 = vector.broadcast %94 : vector<8x1xf32> to vector<8x32xf32>
    %103 = arith.subf %90, %102 : vector<8x32xf32>
    %cst_39 = arith.constant 9.99999974E-6 : f32
    %104 = vector.broadcast %cst_39 : f32 to vector<8x1xf32>
    %105 = arith.addf %101, %104 : vector<8x1xf32>
    %106 = math.rsqrt %105 : vector<8x1xf32>
    %107 = vector.broadcast %106 : vector<8x1xf32> to vector<8x32xf32>
    %108 = arith.mulf %103, %107 : vector<8x32xf32>
    %109 = vector.broadcast %12 : vector<1x32xf32> to vector<8x32xf32>
    %110 = arith.mulf %108, %109 : vector<8x32xf32>
    %111 = vector.broadcast %13 : vector<1x32xf32> to vector<8x32xf32>
    %112 = arith.addf %110, %111 : vector<8x32xf32>
    %c0_40 = arith.constant 0 : index
    %c0_41 = arith.constant 0 : index
    %c0_42 = arith.constant 0 : index
    %113 = vector.load %arg8[%c0_40, %c0_41, %c0_42] : memref<1x8x32xf32, #tpu.memory_space<vmem>>, vector<1x8x32xf32>
    %114 = vector.shape_cast %113 : vector<1x8x32xf32> to vector<8x32xf32>
    %115 = vector.shape_cast %112 : vector<8x32xf32> to vector<1x8x32xf32>
    tpu.vector_store %arg8[%c0_40, %c0_41, %c0_42], %115 {strides = array<i32>} : memref<1x8x32xf32, #tpu.memory_space<vmem>>, vector<1x8x32xf32>,
    return
  }
  func.func @transform_0(%arg0: i32) -> (i32, i32, i32) {
    %c0_i32 = arith.constant 0 : i32
    %c0_i32_0 = arith.constant 0 : i32
    %c0_i32_1 = arith.constant 0 : i32
    return %arg0, %c0_i32, %c0_i32_0 : i32, i32, i32
  }
  func.func @transform_1(%arg0: i32) -> (i32, i32) {
    %c0_i32 = arith.constant 0 : i32
    %c0_i32_0 = arith.constant 0 : i32
    %c0_i32_1 = arith.constant 0 : i32
    return %c0_i32, %c0_i32_0 : i32, i32
  }
  func.func @transform_2(%arg0: i32) -> (i32, i32) {
    %c0_i32 = arith.constant 0 : i32
    %c0_i32_0 = arith.constant 0 : i32
    %c0_i32_1 = arith.constant 0 : i32
    return %c0_i32, %c0_i32_0 : i32, i32
  }
  func.func @transform_3(%arg0: i32) -> (i32, i32) {
    %c0_i32 = arith.constant 0 : i32
    %c0_i32_0 = arith.constant 0 : i32
    %c0_i32_1 = arith.constant 0 : i32
    return %c0_i32, %c0_i32_0 : i32, i32
  }
  func.func @transform_4(%arg0: i32) -> (i32, i32) {
    %c0_i32 = arith.constant 0 : i32
    %c0_i32_0 = arith.constant 0 : i32
    %c0_i32_1 = arith.constant 0 : i32
    return %c0_i32, %c0_i32_0 : i32, i32
  }
  func.func @transform_5(%arg0: i32) -> (i32, i32) {
    %c0_i32 = arith.constant 0 : i32
    %c0_i32_0 = arith.constant 0 : i32
    %c0_i32_1 = arith.constant 0 : i32
    return %c0_i32, %c0_i32_0 : i32, i32
  }
  func.func @transform_6(%arg0: i32) -> (i32, i32) {
    %c0_i32 = arith.constant 0 : i32
    %c0_i32_0 = arith.constant 0 : i32
    %c0_i32_1 = arith.constant 0 : i32
    return %c0_i32, %c0_i32_0 : i32, i32
  }
  func.func @transform_7(%arg0: i32) -> (i32, i32, i32) {
    %c0_i32 = arith.constant 0 : i32
    %c0_i32_0 = arith.constant 0 : i32
    %c0_i32_1 = arith.constant 0 : i32
    return %arg0, %c0_i32, %c0_i32_0 : i32, i32, i32
  }
}

module attributes {stable_mosaic.version = 11 : i64} {
  func.func @_cross_attn_block_kernel(%arg0: i32, %arg1: memref<1x8x32xf32, #tpu.memory_space<vmem>>, %arg2: memref<1x8x32xf32, #tpu.memory_space<vmem>>, %arg3: memref<32x32xf32, #tpu.memory_space<vmem>>, %arg4: memref<1x32xf32, #tpu.memory_space<vmem>>, %arg5: memref<32x64xf32, #tpu.memory_space<vmem>>, %arg6: memref<1x64xf32, #tpu.memory_space<vmem>>, %arg7: memref<32x32xf32, #tpu.memory_space<vmem>>, %arg8: memref<1x32xf32, #tpu.memory_space<vmem>>, %arg9: memref<1x32xf32, #tpu.memory_space<vmem>>, %arg10: memref<1x32xf32, #tpu.memory_space<vmem>>, %arg11: memref<1x8x32xf32, #tpu.memory_space<vmem>>) attributes {dimension_semantics = [#tpu.dimension_semantics<parallel>], iteration_bounds = array<i64: 2>, scalar_prefetch = 0 : i64, scratch_operands = 0 : i64, tpu.core_type = #tpu.core_type<tc>, window_params = [{transform_indices = @transform_0, window_bounds = array<i64: 1, 8, 32>}, {transform_indices = @transform_1, window_bounds = array<i64: 1, 8, 32>}, {pipeline_mode = #tpu.pipeline_mode<synchronous>, transform_indices = @transform_2, window_bounds = array<i64: 32, 32>}, {pipeline_mode = #tpu.pipeline_mode<synchronous>, transform_indices = @transform_3, window_bounds = array<i64: 1, 32>}, {pipeline_mode = #tpu.pipeline_mode<synchronous>, transform_indices = @transform_4, window_bounds = array<i64: 32, 64>}, {pipeline_mode = #tpu.pipeline_mode<synchronous>, transform_indices = @transform_5, window_bounds = array<i64: 1, 64>}, {pipeline_mode = #tpu.pipeline_mode<synchronous>, transform_indices = @transform_6, window_bounds = array<i64: 32, 32>}, {pipeline_mode = #tpu.pipeline_mode<synchronous>, transform_indices = @transform_7, window_bounds = array<i64: 1, 32>}, {pipeline_mode = #tpu.pipeline_mode<synchronous>, transform_indices = @transform_8, window_bounds = array<i64: 1, 32>}, {pipeline_mode = #tpu.pipeline_mode<synchronous>, transform_indices = @transform_9, window_bounds = array<i64: 1, 32>}, {transform_indices = @transform_10, window_bounds = array<i64: 1, 8, 32>}]} {
    %c0 = arith.constant 0 : index
    %c0_0 = arith.constant 0 : index
    %c0_1 = arith.constant 0 : index
    %0 = vector.load %arg1[%c0, %c0_0, %c0_1] : memref<1x8x32xf32, #tpu.memory_space<vmem>>, vector<1x8x32xf32>
    %1 = vector.shape_cast %0 : vector<1x8x32xf32> to vector<8x32xf32>
    %c0_2 = arith.constant 0 : index
    %c0_3 = arith.constant 0 : index
    %c0_4 = arith.constant 0 : index
    %2 = vector.load %arg2[%c0_2, %c0_3, %c0_4] : memref<1x8x32xf32, #tpu.memory_space<vmem>>, vector<1x8x32xf32>
    %3 = vector.shape_cast %2 : vector<1x8x32xf32> to vector<8x32xf32>
    %c0_5 = arith.constant 0 : index
    %c0_6 = arith.constant 0 : index
    %4 = vector.load %arg3[%c0_5, %c0_6] : memref<32x32xf32, #tpu.memory_space<vmem>>, vector<32x32xf32>
    %cst = arith.constant dense<0.000000e+00> : vector<8x32xf32>
    %5 = tpu.matmul %1, %4, %cst {dimension_numbers = #tpu.dot_dimension_numbers<[1], [0], [0], [1], [0, 0, 1, 1], [], []>} : vector<8x32xf32>, vector<32x32xf32>, vector<8x32xf32> -> vector<8x32xf32>
    %c0_7 = arith.constant 0 : index
    %c0_8 = arith.constant 0 : index
    %6 = vector.load %arg4[%c0_7, %c0_8] : memref<1x32xf32, #tpu.memory_space<vmem>>, vector<1x32xf32>
    %7 = vector.broadcast %6 : vector<1x32xf32> to vector<8x32xf32>
    %8 = arith.addf %5, %7 : vector<8x32xf32>
    %c0_9 = arith.constant 0 : index
    %c0_10 = arith.constant 0 : index
    %9 = vector.load %arg5[%c0_9, %c0_10] : memref<32x64xf32, #tpu.memory_space<vmem>>, vector<32x64xf32>
    %cst_11 = arith.constant dense<0.000000e+00> : vector<8x64xf32>
    %10 = tpu.matmul %3, %9, %cst_11 {dimension_numbers = #tpu.dot_dimension_numbers<[1], [0], [0], [1], [0, 0, 1, 1], [], []>} : vector<8x32xf32>, vector<32x64xf32>, vector<8x64xf32> -> vector<8x64xf32>
    %c0_12 = arith.constant 0 : index
    %c0_13 = arith.constant 0 : index
    %11 = vector.load %arg6[%c0_12, %c0_13] : memref<1x64xf32, #tpu.memory_space<vmem>>, vector<1x64xf32>
    %12 = vector.broadcast %11 : vector<1x64xf32> to vector<8x64xf32>
    %13 = arith.addf %10, %12 : vector<8x64xf32>
    %14 = vector.extract_strided_slice %13 {offsets = [0, 0], sizes = [8, 32], strides = [1, 1]} : vector<8x64xf32> to vector<8x32xf32>
    %15 = vector.extract_strided_slice %13 {offsets = [0, 32], sizes = [8, 32], strides = [1, 1]} : vector<8x64xf32> to vector<8x32xf32>
    %c0_14 = arith.constant 0 : index
    %c0_15 = arith.constant 0 : index
    %16 = vector.load %arg7[%c0_14, %c0_15] : memref<32x32xf32, #tpu.memory_space<vmem>>, vector<32x32xf32>
    %c0_16 = arith.constant 0 : index
    %c0_17 = arith.constant 0 : index
    %17 = vector.load %arg8[%c0_16, %c0_17] : memref<1x32xf32, #tpu.memory_space<vmem>>, vector<1x32xf32>
    %c0_18 = arith.constant 0 : index
    %c0_19 = arith.constant 0 : index
    %18 = vector.load %arg9[%c0_18, %c0_19] : memref<1x32xf32, #tpu.memory_space<vmem>>, vector<1x32xf32>
    %c0_20 = arith.constant 0 : index
    %c0_21 = arith.constant 0 : index
    %19 = vector.load %arg10[%c0_20, %c0_21] : memref<1x32xf32, #tpu.memory_space<vmem>>, vector<1x32xf32>
    %20 = vector.extract_strided_slice %8 {offsets = [0, 0], sizes = [8, 8], strides = [1, 1]} : vector<8x32xf32> to vector<8x8xf32>
    %21 = vector.extract_strided_slice %14 {offsets = [0, 0], sizes = [8, 8], strides = [1, 1]} : vector<8x32xf32> to vector<8x8xf32>
    %22 = vector.extract_strided_slice %15 {offsets = [0, 0], sizes = [8, 8], strides = [1, 1]} : vector<8x32xf32> to vector<8x8xf32>
    %23 = tpu.transpose %21, [1, 0] : vector<8x8xf32> -> vector<8x8xf32>
    %cst_22 = arith.constant dense<0.000000e+00> : vector<8x8xf32>
    %24 = tpu.matmul %20, %23, %cst_22 {dimension_numbers = #tpu.dot_dimension_numbers<[1], [0], [0], [1], [0, 0, 1, 1], [], []>} : vector<8x8xf32>, vector<8x8xf32>, vector<8x8xf32> -> vector<8x8xf32>
    %cst_23 = arith.constant 0.353553385 : f32
    %25 = vector.broadcast %cst_23 : f32 to vector<8x8xf32>
    %26 = arith.mulf %24, %25 : vector<8x8xf32>
    %cst_24 = arith.constant dense<0xFF800000> : vector<8xf32>
    %27 = vector.multi_reduction <maximumf>, %26, %cst_24 [1] : vector<8x8xf32> to vector<8xf32>
    %28 = vector.shape_cast %27 : vector<8xf32> to vector<8x1xf32>
    %29 = vector.broadcast %28 : vector<8x1xf32> to vector<8x8xf32>
    %30 = arith.subf %26, %29 : vector<8x8xf32>
    %31 = math.exp %30 : vector<8x8xf32>
    %cst_25 = arith.constant dense<0.000000e+00> : vector<8xf32>
    %32 = vector.multi_reduction <add>, %31, %cst_25 [1] : vector<8x8xf32> to vector<8xf32>
    %33 = vector.shape_cast %32 : vector<8xf32> to vector<8x1xf32>
    %34 = tpu.reciprocal %33 {approx = true} : vector<8x1xf32> -> vector<8x1xf32>
    %35 = vector.broadcast %34 : vector<8x1xf32> to vector<8x8xf32>
    %36 = arith.mulf %31, %35 : vector<8x8xf32>
    %cst_26 = arith.constant dense<0.000000e+00> : vector<8x8xf32>
    %37 = tpu.matmul %36, %22, %cst_26 {dimension_numbers = #tpu.dot_dimension_numbers<[1], [0], [0], [1], [0, 0, 1, 1], [], []>} : vector<8x8xf32>, vector<8x8xf32>, vector<8x8xf32> -> vector<8x8xf32>
    %38 = vector.extract_strided_slice %8 {offsets = [0, 8], sizes = [8, 8], strides = [1, 1]} : vector<8x32xf32> to vector<8x8xf32>
    %39 = vector.extract_strided_slice %14 {offsets = [0, 8], sizes = [8, 8], strides = [1, 1]} : vector<8x32xf32> to vector<8x8xf32>
    %40 = vector.extract_strided_slice %15 {offsets = [0, 8], sizes = [8, 8], strides = [1, 1]} : vector<8x32xf32> to vector<8x8xf32>
    %41 = tpu.transpose %39, [1, 0] : vector<8x8xf32> -> vector<8x8xf32>
    %cst_27 = arith.constant dense<0.000000e+00> : vector<8x8xf32>
    %42 = tpu.matmul %38, %41, %cst_27 {dimension_numbers = #tpu.dot_dimension_numbers<[1], [0], [0], [1], [0, 0, 1, 1], [], []>} : vector<8x8xf32>, vector<8x8xf32>, vector<8x8xf32> -> vector<8x8xf32>
    %cst_28 = arith.constant 0.353553385 : f32
    %43 = vector.broadcast %cst_28 : f32 to vector<8x8xf32>
    %44 = arith.mulf %42, %43 : vector<8x8xf32>
    %cst_29 = arith.constant dense<0xFF800000> : vector<8xf32>
    %45 = vector.multi_reduction <maximumf>, %44, %cst_29 [1] : vector<8x8xf32> to vector<8xf32>
    %46 = vector.shape_cast %45 : vector<8xf32> to vector<8x1xf32>
    %47 = vector.broadcast %46 : vector<8x1xf32> to vector<8x8xf32>
    %48 = arith.subf %44, %47 : vector<8x8xf32>
    %49 = math.exp %48 : vector<8x8xf32>
    %cst_30 = arith.constant dense<0.000000e+00> : vector<8xf32>
    %50 = vector.multi_reduction <add>, %49, %cst_30 [1] : vector<8x8xf32> to vector<8xf32>
    %51 = vector.shape_cast %50 : vector<8xf32> to vector<8x1xf32>
    %52 = tpu.reciprocal %51 {approx = true} : vector<8x1xf32> -> vector<8x1xf32>
    %53 = vector.broadcast %52 : vector<8x1xf32> to vector<8x8xf32>
    %54 = arith.mulf %49, %53 : vector<8x8xf32>
    %cst_31 = arith.constant dense<0.000000e+00> : vector<8x8xf32>
    %55 = tpu.matmul %54, %40, %cst_31 {dimension_numbers = #tpu.dot_dimension_numbers<[1], [0], [0], [1], [0, 0, 1, 1], [], []>} : vector<8x8xf32>, vector<8x8xf32>, vector<8x8xf32> -> vector<8x8xf32>
    %56 = vector.extract_strided_slice %8 {offsets = [0, 16], sizes = [8, 8], strides = [1, 1]} : vector<8x32xf32> to vector<8x8xf32>
    %57 = vector.extract_strided_slice %14 {offsets = [0, 16], sizes = [8, 8], strides = [1, 1]} : vector<8x32xf32> to vector<8x8xf32>
    %58 = vector.extract_strided_slice %15 {offsets = [0, 16], sizes = [8, 8], strides = [1, 1]} : vector<8x32xf32> to vector<8x8xf32>
    %59 = tpu.transpose %57, [1, 0] : vector<8x8xf32> -> vector<8x8xf32>
    %cst_32 = arith.constant dense<0.000000e+00> : vector<8x8xf32>
    %60 = tpu.matmul %56, %59, %cst_32 {dimension_numbers = #tpu.dot_dimension_numbers<[1], [0], [0], [1], [0, 0, 1, 1], [], []>} : vector<8x8xf32>, vector<8x8xf32>, vector<8x8xf32> -> vector<8x8xf32>
    %cst_33 = arith.constant 0.353553385 : f32
    %61 = vector.broadcast %cst_33 : f32 to vector<8x8xf32>
    %62 = arith.mulf %60, %61 : vector<8x8xf32>
    %cst_34 = arith.constant dense<0xFF800000> : vector<8xf32>
    %63 = vector.multi_reduction <maximumf>, %62, %cst_34 [1] : vector<8x8xf32> to vector<8xf32>
    %64 = vector.shape_cast %63 : vector<8xf32> to vector<8x1xf32>
    %65 = vector.broadcast %64 : vector<8x1xf32> to vector<8x8xf32>
    %66 = arith.subf %62, %65 : vector<8x8xf32>
    %67 = math.exp %66 : vector<8x8xf32>
    %cst_35 = arith.constant dense<0.000000e+00> : vector<8xf32>
    %68 = vector.multi_reduction <add>, %67, %cst_35 [1] : vector<8x8xf32> to vector<8xf32>
    %69 = vector.shape_cast %68 : vector<8xf32> to vector<8x1xf32>
    %70 = tpu.reciprocal %69 {approx = true} : vector<8x1xf32> -> vector<8x1xf32>
    %71 = vector.broadcast %70 : vector<8x1xf32> to vector<8x8xf32>
    %72 = arith.mulf %67, %71 : vector<8x8xf32>
    %cst_36 = arith.constant dense<0.000000e+00> : vector<8x8xf32>
    %73 = tpu.matmul %72, %58, %cst_36 {dimension_numbers = #tpu.dot_dimension_numbers<[1], [0], [0], [1], [0, 0, 1, 1], [], []>} : vector<8x8xf32>, vector<8x8xf32>, vector<8x8xf32> -> vector<8x8xf32>
    %74 = vector.extract_strided_slice %8 {offsets = [0, 24], sizes = [8, 8], strides = [1, 1]} : vector<8x32xf32> to vector<8x8xf32>
    %75 = vector.extract_strided_slice %14 {offsets = [0, 24], sizes = [8, 8], strides = [1, 1]} : vector<8x32xf32> to vector<8x8xf32>
    %76 = vector.extract_strided_slice %15 {offsets = [0, 24], sizes = [8, 8], strides = [1, 1]} : vector<8x32xf32> to vector<8x8xf32>
    %77 = tpu.transpose %75, [1, 0] : vector<8x8xf32> -> vector<8x8xf32>
    %cst_37 = arith.constant dense<0.000000e+00> : vector<8x8xf32>
    %78 = tpu.matmul %74, %77, %cst_37 {dimension_numbers = #tpu.dot_dimension_numbers<[1], [0], [0], [1], [0, 0, 1, 1], [], []>} : vector<8x8xf32>, vector<8x8xf32>, vector<8x8xf32> -> vector<8x8xf32>
    %cst_38 = arith.constant 0.353553385 : f32
    %79 = vector.broadcast %cst_38 : f32 to vector<8x8xf32>
    %80 = arith.mulf %78, %79 : vector<8x8xf32>
    %cst_39 = arith.constant dense<0xFF800000> : vector<8xf32>
    %81 = vector.multi_reduction <maximumf>, %80, %cst_39 [1] : vector<8x8xf32> to vector<8xf32>
    %82 = vector.shape_cast %81 : vector<8xf32> to vector<8x1xf32>
    %83 = vector.broadcast %82 : vector<8x1xf32> to vector<8x8xf32>
    %84 = arith.subf %80, %83 : vector<8x8xf32>
    %85 = math.exp %84 : vector<8x8xf32>
    %cst_40 = arith.constant dense<0.000000e+00> : vector<8xf32>
    %86 = vector.multi_reduction <add>, %85, %cst_40 [1] : vector<8x8xf32> to vector<8xf32>
    %87 = vector.shape_cast %86 : vector<8xf32> to vector<8x1xf32>
    %88 = tpu.reciprocal %87 {approx = true} : vector<8x1xf32> -> vector<8x1xf32>
    %89 = vector.broadcast %88 : vector<8x1xf32> to vector<8x8xf32>
    %90 = arith.mulf %85, %89 : vector<8x8xf32>
    %cst_41 = arith.constant dense<0.000000e+00> : vector<8x8xf32>
    %91 = tpu.matmul %90, %76, %cst_41 {dimension_numbers = #tpu.dot_dimension_numbers<[1], [0], [0], [1], [0, 0, 1, 1], [], []>} : vector<8x8xf32>, vector<8x8xf32>, vector<8x8xf32> -> vector<8x8xf32>
    %92 = tpu.concatenate %37, %55, %73, %91 in 1 : vector<8x8xf32>, vector<8x8xf32>, vector<8x8xf32>, vector<8x8xf32> -> vector<8x32xf32>
    %cst_42 = arith.constant dense<0.000000e+00> : vector<8x32xf32>
    %93 = tpu.matmul %92, %16, %cst_42 {dimension_numbers = #tpu.dot_dimension_numbers<[1], [0], [0], [1], [0, 0, 1, 1], [], []>} : vector<8x32xf32>, vector<32x32xf32>, vector<8x32xf32> -> vector<8x32xf32>
    %94 = vector.broadcast %17 : vector<1x32xf32> to vector<8x32xf32>
    %95 = arith.addf %93, %94 : vector<8x32xf32>
    %96 = arith.addf %1, %95 : vector<8x32xf32>
    %cst_43 = arith.constant dense<0.000000e+00> : vector<8xf32>
    %97 = vector.multi_reduction <add>, %96, %cst_43 [1] : vector<8x32xf32> to vector<8xf32>
    %98 = vector.shape_cast %97 : vector<8xf32> to vector<8x1xf32>
    %cst_44 = arith.constant 3.200000e+01 : f32
    %99 = vector.broadcast %cst_44 : f32 to vector<8x1xf32>
    %100 = arith.divf %98, %99 : vector<8x1xf32>
    %101 = vector.broadcast %100 : vector<8x1xf32> to vector<8x32xf32>
    %102 = arith.subf %96, %101 : vector<8x32xf32>
    %103 = arith.mulf %102, %102 : vector<8x32xf32>
    %cst_45 = arith.constant dense<0.000000e+00> : vector<8xf32>
    %104 = vector.multi_reduction <add>, %103, %cst_45 [1] : vector<8x32xf32> to vector<8xf32>
    %105 = vector.shape_cast %104 : vector<8xf32> to vector<8x1xf32>
    %cst_46 = arith.constant 3.200000e+01 : f32
    %106 = vector.broadcast %cst_46 : f32 to vector<8x1xf32>
    %107 = arith.divf %105, %106 : vector<8x1xf32>
    %108 = vector.broadcast %100 : vector<8x1xf32> to vector<8x32xf32>
    %109 = arith.subf %96, %108 : vector<8x32xf32>
    %cst_47 = arith.constant 9.99999974E-6 : f32
    %110 = vector.broadcast %cst_47 : f32 to vector<8x1xf32>
    %111 = arith.addf %107, %110 : vector<8x1xf32>
    %112 = math.rsqrt %111 : vector<8x1xf32>
    %113 = vector.broadcast %112 : vector<8x1xf32> to vector<8x32xf32>
    %114 = arith.mulf %109, %113 : vector<8x32xf32>
    %115 = vector.broadcast %18 : vector<1x32xf32> to vector<8x32xf32>
    %116 = arith.mulf %114, %115 : vector<8x32xf32>
    %117 = vector.broadcast %19 : vector<1x32xf32> to vector<8x32xf32>
    %118 = arith.addf %116, %117 : vector<8x32xf32>
    %c0_48 = arith.constant 0 : index
    %c0_49 = arith.constant 0 : index
    %c0_50 = arith.constant 0 : index
    %119 = vector.load %arg11[%c0_48, %c0_49, %c0_50] : memref<1x8x32xf32, #tpu.memory_space<vmem>>, vector<1x8x32xf32>
    %120 = vector.shape_cast %119 : vector<1x8x32xf32> to vector<8x32xf32>
    %121 = vector.shape_cast %118 : vector<8x32xf32> to vector<1x8x32xf32>
    tpu.vector_store %arg11[%c0_48, %c0_49, %c0_50], %121 {strides = array<i32>} : memref<1x8x32xf32, #tpu.memory_space<vmem>>, vector<1x8x32xf32>,
    return
  }
  func.func @transform_0(%arg0: i32) -> (i32, i32, i32) {
    %c0_i32 = arith.constant 0 : i32
    %c0_i32_0 = arith.constant 0 : i32
    %c0_i32_1 = arith.constant 0 : i32
    return %arg0, %c0_i32, %c0_i32_0 : i32, i32, i32
  }
  func.func @transform_1(%arg0: i32) -> (i32, i32, i32) {
    %c0_i32 = arith.constant 0 : i32
    %c0_i32_0 = arith.constant 0 : i32
    %c0_i32_1 = arith.constant 0 : i32
    return %arg0, %c0_i32, %c0_i32_0 : i32, i32, i32
  }
  func.func @transform_2(%arg0: i32) -> (i32, i32) {
    %c0_i32 = arith.constant 0 : i32
    %c0_i32_0 = arith.constant 0 : i32
    %c0_i32_1 = arith.constant 0 : i32
    return %c0_i32, %c0_i32_0 : i32, i32
  }
  func.func @transform_3(%arg0: i32) -> (i32, i32) {
    %c0_i32 = arith.constant 0 : i32
    %c0_i32_0 = arith.constant 0 : i32
    %c0_i32_1 = arith.constant 0 : i32
    return %c0_i32, %c0_i32_0 : i32, i32
  }
  func.func @transform_4(%arg0: i32) -> (i32, i32) {
    %c0_i32 = arith.constant 0 : i32
    %c0_i32_0 = arith.constant 0 : i32
    %c0_i32_1 = arith.constant 0 : i32
    return %c0_i32, %c0_i32_0 : i32, i32
  }
  func.func @transform_5(%arg0: i32) -> (i32, i32) {
    %c0_i32 = arith.constant 0 : i32
    %c0_i32_0 = arith.constant 0 : i32
    %c0_i32_1 = arith.constant 0 : i32
    return %c0_i32, %c0_i32_0 : i32, i32
  }
  func.func @transform_6(%arg0: i32) -> (i32, i32) {
    %c0_i32 = arith.constant 0 : i32
    %c0_i32_0 = arith.constant 0 : i32
    %c0_i32_1 = arith.constant 0 : i32
    return %c0_i32, %c0_i32_0 : i32, i32
  }
  func.func @transform_7(%arg0: i32) -> (i32, i32) {
    %c0_i32 = arith.constant 0 : i32
    %c0_i32_0 = arith.constant 0 : i32
    %c0_i32_1 = arith.constant 0 : i32
    return %c0_i32, %c0_i32_0 : i32, i32
  }
  func.func @transform_8(%arg0: i32) -> (i32, i32) {
    %c0_i32 = arith.constant 0 : i32
    %c0_i32_0 = arith.constant 0 : i32
    %c0_i32_1 = arith.constant 0 : i32
    return %c0_i32, %c0_i32_0 : i32, i32
  }
  func.func @transform_9(%arg0: i32) -> (i32, i32) {
    %c0_i32 = arith.constant 0 : i32
    %c0_i32_0 = arith.constant 0 : i32
    %c0_i32_1 = arith.constant 0 : i32
    return %c0_i32, %c0_i32_0 : i32, i32
  }
  func.func @transform_10(%arg0: i32) -> (i32, i32, i32) {
    %c0_i32 = arith.constant 0 : i32
    %c0_i32_0 = arith.constant 0 : i32
    %c0_i32_1 = arith.constant 0 : i32
    return %arg0, %c0_i32, %c0_i32_0 : i32, i32, i32
  }
}

module attributes {stable_mosaic.version = 11 : i64} {
  func.func @_self_attn_block_kernel(%arg0: i32, %arg1: memref<1x8x32xf32, #tpu.memory_space<vmem>>, %arg2: memref<32x96xf32, #tpu.memory_space<vmem>>, %arg3: memref<1x96xf32, #tpu.memory_space<vmem>>, %arg4: memref<32x32xf32, #tpu.memory_space<vmem>>, %arg5: memref<1x32xf32, #tpu.memory_space<vmem>>, %arg6: memref<1x32xf32, #tpu.memory_space<vmem>>, %arg7: memref<1x32xf32, #tpu.memory_space<vmem>>, %arg8: memref<1x8x32xf32, #tpu.memory_space<vmem>>) attributes {dimension_semantics = [#tpu.dimension_semantics<parallel>], iteration_bounds = array<i64: 2>, scalar_prefetch = 0 : i64, scratch_operands = 0 : i64, tpu.core_type = #tpu.core_type<tc>, window_params = [{transform_indices = @transform_0, window_bounds = array<i64: 1, 8, 32>}, {pipeline_mode = #tpu.pipeline_mode<synchronous>, transform_indices = @transform_1, window_bounds = array<i64: 32, 96>}, {pipeline_mode = #tpu.pipeline_mode<synchronous>, transform_indices = @transform_2, window_bounds = array<i64: 1, 96>}, {pipeline_mode = #tpu.pipeline_mode<synchronous>, transform_indices = @transform_3, window_bounds = array<i64: 32, 32>}, {pipeline_mode = #tpu.pipeline_mode<synchronous>, transform_indices = @transform_4, window_bounds = array<i64: 1, 32>}, {pipeline_mode = #tpu.pipeline_mode<synchronous>, transform_indices = @transform_5, window_bounds = array<i64: 1, 32>}, {pipeline_mode = #tpu.pipeline_mode<synchronous>, transform_indices = @transform_6, window_bounds = array<i64: 1, 32>}, {transform_indices = @transform_7, window_bounds = array<i64: 1, 8, 32>}]} {
    %c0 = arith.constant 0 : index
    %c0_0 = arith.constant 0 : index
    %c0_1 = arith.constant 0 : index
    %0 = vector.load %arg1[%c0, %c0_0, %c0_1] : memref<1x8x32xf32, #tpu.memory_space<vmem>>, vector<1x8x32xf32>
    %1 = vector.shape_cast %0 : vector<1x8x32xf32> to vector<8x32xf32>
    %c0_2 = arith.constant 0 : index
    %c0_3 = arith.constant 0 : index
    %2 = vector.load %arg2[%c0_2, %c0_3] : memref<32x96xf32, #tpu.memory_space<vmem>>, vector<32x96xf32>
    %cst = arith.constant dense<0.000000e+00> : vector<8x96xf32>
    %3 = tpu.matmul %1, %2, %cst {dimension_numbers = #tpu.dot_dimension_numbers<[1], [0], [0], [1], [0, 0, 1, 1], [], []>} : vector<8x32xf32>, vector<32x96xf32>, vector<8x96xf32> -> vector<8x96xf32>
    %c0_4 = arith.constant 0 : index
    %c0_5 = arith.constant 0 : index
    %4 = vector.load %arg3[%c0_4, %c0_5] : memref<1x96xf32, #tpu.memory_space<vmem>>, vector<1x96xf32>
    %5 = vector.broadcast %4 : vector<1x96xf32> to vector<8x96xf32>
    %6 = arith.addf %3, %5 : vector<8x96xf32>
    %7 = vector.extract_strided_slice %6 {offsets = [0, 0], sizes = [8, 32], strides = [1, 1]} : vector<8x96xf32> to vector<8x32xf32>
    %8 = vector.extract_strided_slice %6 {offsets = [0, 32], sizes = [8, 32], strides = [1, 1]} : vector<8x96xf32> to vector<8x32xf32>
    %9 = vector.extract_strided_slice %6 {offsets = [0, 64], sizes = [8, 32], strides = [1, 1]} : vector<8x96xf32> to vector<8x32xf32>
    %c0_6 = arith.constant 0 : index
    %c0_7 = arith.constant 0 : index
    %10 = vector.load %arg4[%c0_6, %c0_7] : memref<32x32xf32, #tpu.memory_space<vmem>>, vector<32x32xf32>
    %c0_8 = arith.constant 0 : index
    %c0_9 = arith.constant 0 : index
    %11 = vector.load %arg5[%c0_8, %c0_9] : memref<1x32xf32, #tpu.memory_space<vmem>>, vector<1x32xf32>
    %c0_10 = arith.constant 0 : index
    %c0_11 = arith.constant 0 : index
    %12 = vector.load %arg6[%c0_10, %c0_11] : memref<1x32xf32, #tpu.memory_space<vmem>>, vector<1x32xf32>
    %c0_12 = arith.constant 0 : index
    %c0_13 = arith.constant 0 : index
    %13 = vector.load %arg7[%c0_12, %c0_13] : memref<1x32xf32, #tpu.memory_space<vmem>>, vector<1x32xf32>
    %14 = vector.extract_strided_slice %7 {offsets = [0, 0], sizes = [8, 8], strides = [1, 1]} : vector<8x32xf32> to vector<8x8xf32>
    %15 = vector.extract_strided_slice %8 {offsets = [0, 0], sizes = [8, 8], strides = [1, 1]} : vector<8x32xf32> to vector<8x8xf32>
    %16 = vector.extract_strided_slice %9 {offsets = [0, 0], sizes = [8, 8], strides = [1, 1]} : vector<8x32xf32> to vector<8x8xf32>
    %17 = tpu.transpose %15, [1, 0] : vector<8x8xf32> -> vector<8x8xf32>
    %cst_14 = arith.constant dense<0.000000e+00> : vector<8x8xf32>
    %18 = tpu.matmul %14, %17, %cst_14 {dimension_numbers = #tpu.dot_dimension_numbers<[1], [0], [0], [1], [0, 0, 1, 1], [], []>} : vector<8x8xf32>, vector<8x8xf32>, vector<8x8xf32> -> vector<8x8xf32>
    %cst_15 = arith.constant 0.353553385 : f32
    %19 = vector.broadcast %cst_15 : f32 to vector<8x8xf32>
    %20 = arith.mulf %18, %19 : vector<8x8xf32>
    %cst_16 = arith.constant dense<0xFF800000> : vector<8xf32>
    %21 = vector.multi_reduction <maximumf>, %20, %cst_16 [1] : vector<8x8xf32> to vector<8xf32>
    %22 = vector.shape_cast %21 : vector<8xf32> to vector<8x1xf32>
    %23 = vector.broadcast %22 : vector<8x1xf32> to vector<8x8xf32>
    %24 = arith.subf %20, %23 : vector<8x8xf32>
    %25 = math.exp %24 : vector<8x8xf32>
    %cst_17 = arith.constant dense<0.000000e+00> : vector<8xf32>
    %26 = vector.multi_reduction <add>, %25, %cst_17 [1] : vector<8x8xf32> to vector<8xf32>
    %27 = vector.shape_cast %26 : vector<8xf32> to vector<8x1xf32>
    %28 = tpu.reciprocal %27 {approx = true} : vector<8x1xf32> -> vector<8x1xf32>
    %29 = vector.broadcast %28 : vector<8x1xf32> to vector<8x8xf32>
    %30 = arith.mulf %25, %29 : vector<8x8xf32>
    %cst_18 = arith.constant dense<0.000000e+00> : vector<8x8xf32>
    %31 = tpu.matmul %30, %16, %cst_18 {dimension_numbers = #tpu.dot_dimension_numbers<[1], [0], [0], [1], [0, 0, 1, 1], [], []>} : vector<8x8xf32>, vector<8x8xf32>, vector<8x8xf32> -> vector<8x8xf32>
    %32 = vector.extract_strided_slice %7 {offsets = [0, 8], sizes = [8, 8], strides = [1, 1]} : vector<8x32xf32> to vector<8x8xf32>
    %33 = vector.extract_strided_slice %8 {offsets = [0, 8], sizes = [8, 8], strides = [1, 1]} : vector<8x32xf32> to vector<8x8xf32>
    %34 = vector.extract_strided_slice %9 {offsets = [0, 8], sizes = [8, 8], strides = [1, 1]} : vector<8x32xf32> to vector<8x8xf32>
    %35 = tpu.transpose %33, [1, 0] : vector<8x8xf32> -> vector<8x8xf32>
    %cst_19 = arith.constant dense<0.000000e+00> : vector<8x8xf32>
    %36 = tpu.matmul %32, %35, %cst_19 {dimension_numbers = #tpu.dot_dimension_numbers<[1], [0], [0], [1], [0, 0, 1, 1], [], []>} : vector<8x8xf32>, vector<8x8xf32>, vector<8x8xf32> -> vector<8x8xf32>
    %cst_20 = arith.constant 0.353553385 : f32
    %37 = vector.broadcast %cst_20 : f32 to vector<8x8xf32>
    %38 = arith.mulf %36, %37 : vector<8x8xf32>
    %cst_21 = arith.constant dense<0xFF800000> : vector<8xf32>
    %39 = vector.multi_reduction <maximumf>, %38, %cst_21 [1] : vector<8x8xf32> to vector<8xf32>
    %40 = vector.shape_cast %39 : vector<8xf32> to vector<8x1xf32>
    %41 = vector.broadcast %40 : vector<8x1xf32> to vector<8x8xf32>
    %42 = arith.subf %38, %41 : vector<8x8xf32>
    %43 = math.exp %42 : vector<8x8xf32>
    %cst_22 = arith.constant dense<0.000000e+00> : vector<8xf32>
    %44 = vector.multi_reduction <add>, %43, %cst_22 [1] : vector<8x8xf32> to vector<8xf32>
    %45 = vector.shape_cast %44 : vector<8xf32> to vector<8x1xf32>
    %46 = tpu.reciprocal %45 {approx = true} : vector<8x1xf32> -> vector<8x1xf32>
    %47 = vector.broadcast %46 : vector<8x1xf32> to vector<8x8xf32>
    %48 = arith.mulf %43, %47 : vector<8x8xf32>
    %cst_23 = arith.constant dense<0.000000e+00> : vector<8x8xf32>
    %49 = tpu.matmul %48, %34, %cst_23 {dimension_numbers = #tpu.dot_dimension_numbers<[1], [0], [0], [1], [0, 0, 1, 1], [], []>} : vector<8x8xf32>, vector<8x8xf32>, vector<8x8xf32> -> vector<8x8xf32>
    %50 = vector.extract_strided_slice %7 {offsets = [0, 16], sizes = [8, 8], strides = [1, 1]} : vector<8x32xf32> to vector<8x8xf32>
    %51 = vector.extract_strided_slice %8 {offsets = [0, 16], sizes = [8, 8], strides = [1, 1]} : vector<8x32xf32> to vector<8x8xf32>
    %52 = vector.extract_strided_slice %9 {offsets = [0, 16], sizes = [8, 8], strides = [1, 1]} : vector<8x32xf32> to vector<8x8xf32>
    %53 = tpu.transpose %51, [1, 0] : vector<8x8xf32> -> vector<8x8xf32>
    %cst_24 = arith.constant dense<0.000000e+00> : vector<8x8xf32>
    %54 = tpu.matmul %50, %53, %cst_24 {dimension_numbers = #tpu.dot_dimension_numbers<[1], [0], [0], [1], [0, 0, 1, 1], [], []>} : vector<8x8xf32>, vector<8x8xf32>, vector<8x8xf32> -> vector<8x8xf32>
    %cst_25 = arith.constant 0.353553385 : f32
    %55 = vector.broadcast %cst_25 : f32 to vector<8x8xf32>
    %56 = arith.mulf %54, %55 : vector<8x8xf32>
    %cst_26 = arith.constant dense<0xFF800000> : vector<8xf32>
    %57 = vector.multi_reduction <maximumf>, %56, %cst_26 [1] : vector<8x8xf32> to vector<8xf32>
    %58 = vector.shape_cast %57 : vector<8xf32> to vector<8x1xf32>
    %59 = vector.broadcast %58 : vector<8x1xf32> to vector<8x8xf32>
    %60 = arith.subf %56, %59 : vector<8x8xf32>
    %61 = math.exp %60 : vector<8x8xf32>
    %cst_27 = arith.constant dense<0.000000e+00> : vector<8xf32>
    %62 = vector.multi_reduction <add>, %61, %cst_27 [1] : vector<8x8xf32> to vector<8xf32>
    %63 = vector.shape_cast %62 : vector<8xf32> to vector<8x1xf32>
    %64 = tpu.reciprocal %63 {approx = true} : vector<8x1xf32> -> vector<8x1xf32>
    %65 = vector.broadcast %64 : vector<8x1xf32> to vector<8x8xf32>
    %66 = arith.mulf %61, %65 : vector<8x8xf32>
    %cst_28 = arith.constant dense<0.000000e+00> : vector<8x8xf32>
    %67 = tpu.matmul %66, %52, %cst_28 {dimension_numbers = #tpu.dot_dimension_numbers<[1], [0], [0], [1], [0, 0, 1, 1], [], []>} : vector<8x8xf32>, vector<8x8xf32>, vector<8x8xf32> -> vector<8x8xf32>
    %68 = vector.extract_strided_slice %7 {offsets = [0, 24], sizes = [8, 8], strides = [1, 1]} : vector<8x32xf32> to vector<8x8xf32>
    %69 = vector.extract_strided_slice %8 {offsets = [0, 24], sizes = [8, 8], strides = [1, 1]} : vector<8x32xf32> to vector<8x8xf32>
    %70 = vector.extract_strided_slice %9 {offsets = [0, 24], sizes = [8, 8], strides = [1, 1]} : vector<8x32xf32> to vector<8x8xf32>
    %71 = tpu.transpose %69, [1, 0] : vector<8x8xf32> -> vector<8x8xf32>
    %cst_29 = arith.constant dense<0.000000e+00> : vector<8x8xf32>
    %72 = tpu.matmul %68, %71, %cst_29 {dimension_numbers = #tpu.dot_dimension_numbers<[1], [0], [0], [1], [0, 0, 1, 1], [], []>} : vector<8x8xf32>, vector<8x8xf32>, vector<8x8xf32> -> vector<8x8xf32>
    %cst_30 = arith.constant 0.353553385 : f32
    %73 = vector.broadcast %cst_30 : f32 to vector<8x8xf32>
    %74 = arith.mulf %72, %73 : vector<8x8xf32>
    %cst_31 = arith.constant dense<0xFF800000> : vector<8xf32>
    %75 = vector.multi_reduction <maximumf>, %74, %cst_31 [1] : vector<8x8xf32> to vector<8xf32>
    %76 = vector.shape_cast %75 : vector<8xf32> to vector<8x1xf32>
    %77 = vector.broadcast %76 : vector<8x1xf32> to vector<8x8xf32>
    %78 = arith.subf %74, %77 : vector<8x8xf32>
    %79 = math.exp %78 : vector<8x8xf32>
    %cst_32 = arith.constant dense<0.000000e+00> : vector<8xf32>
    %80 = vector.multi_reduction <add>, %79, %cst_32 [1] : vector<8x8xf32> to vector<8xf32>
    %81 = vector.shape_cast %80 : vector<8xf32> to vector<8x1xf32>
    %82 = tpu.reciprocal %81 {approx = true} : vector<8x1xf32> -> vector<8x1xf32>
    %83 = vector.broadcast %82 : vector<8x1xf32> to vector<8x8xf32>
    %84 = arith.mulf %79, %83 : vector<8x8xf32>
    %cst_33 = arith.constant dense<0.000000e+00> : vector<8x8xf32>
    %85 = tpu.matmul %84, %70, %cst_33 {dimension_numbers = #tpu.dot_dimension_numbers<[1], [0], [0], [1], [0, 0, 1, 1], [], []>} : vector<8x8xf32>, vector<8x8xf32>, vector<8x8xf32> -> vector<8x8xf32>
    %86 = tpu.concatenate %31, %49, %67, %85 in 1 : vector<8x8xf32>, vector<8x8xf32>, vector<8x8xf32>, vector<8x8xf32> -> vector<8x32xf32>
    %cst_34 = arith.constant dense<0.000000e+00> : vector<8x32xf32>
    %87 = tpu.matmul %86, %10, %cst_34 {dimension_numbers = #tpu.dot_dimension_numbers<[1], [0], [0], [1], [0, 0, 1, 1], [], []>} : vector<8x32xf32>, vector<32x32xf32>, vector<8x32xf32> -> vector<8x32xf32>
    %88 = vector.broadcast %11 : vector<1x32xf32> to vector<8x32xf32>
    %89 = arith.addf %87, %88 : vector<8x32xf32>
    %90 = arith.addf %1, %89 : vector<8x32xf32>
    %cst_35 = arith.constant dense<0.000000e+00> : vector<8xf32>
    %91 = vector.multi_reduction <add>, %90, %cst_35 [1] : vector<8x32xf32> to vector<8xf32>
    %92 = vector.shape_cast %91 : vector<8xf32> to vector<8x1xf32>
    %cst_36 = arith.constant 3.200000e+01 : f32
    %93 = vector.broadcast %cst_36 : f32 to vector<8x1xf32>
    %94 = arith.divf %92, %93 : vector<8x1xf32>
    %95 = vector.broadcast %94 : vector<8x1xf32> to vector<8x32xf32>
    %96 = arith.subf %90, %95 : vector<8x32xf32>
    %97 = arith.mulf %96, %96 : vector<8x32xf32>
    %cst_37 = arith.constant dense<0.000000e+00> : vector<8xf32>
    %98 = vector.multi_reduction <add>, %97, %cst_37 [1] : vector<8x32xf32> to vector<8xf32>
    %99 = vector.shape_cast %98 : vector<8xf32> to vector<8x1xf32>
    %cst_38 = arith.constant 3.200000e+01 : f32
    %100 = vector.broadcast %cst_38 : f32 to vector<8x1xf32>
    %101 = arith.divf %99, %100 : vector<8x1xf32>
    %102 = vector.broadcast %94 : vector<8x1xf32> to vector<8x32xf32>
    %103 = arith.subf %90, %102 : vector<8x32xf32>
    %cst_39 = arith.constant 9.99999974E-6 : f32
    %104 = vector.broadcast %cst_39 : f32 to vector<8x1xf32>
    %105 = arith.addf %101, %104 : vector<8x1xf32>
    %106 = math.rsqrt %105 : vector<8x1xf32>
    %107 = vector.broadcast %106 : vector<8x1xf32> to vector<8x32xf32>
    %108 = arith.mulf %103, %107 : vector<8x32xf32>
    %109 = vector.broadcast %12 : vector<1x32xf32> to vector<8x32xf32>
    %110 = arith.mulf %108, %109 : vector<8x32xf32>
    %111 = vector.broadcast %13 : vector<1x32xf32> to vector<8x32xf32>
    %112 = arith.addf %110, %111 : vector<8x32xf32>
    %c0_40 = arith.constant 0 : index
    %c0_41 = arith.constant 0 : index
    %c0_42 = arith.constant 0 : index
    %113 = vector.load %arg8[%c0_40, %c0_41, %c0_42] : memref<1x8x32xf32, #tpu.memory_space<vmem>>, vector<1x8x32xf32>
    %114 = vector.shape_cast %113 : vector<1x8x32xf32> to vector<8x32xf32>
    %115 = vector.shape_cast %112 : vector<8x32xf32> to vector<1x8x32xf32>
    tpu.vector_store %arg8[%c0_40, %c0_41, %c0_42], %115 {strides = array<i32>} : memref<1x8x32xf32, #tpu.memory_space<vmem>>, vector<1x8x32xf32>,
    return
  }
  func.func @transform_0(%arg0: i32) -> (i32, i32, i32) {
    %c0_i32 = arith.constant 0 : i32
    %c0_i32_0 = arith.constant 0 : i32
    %c0_i32_1 = arith.constant 0 : i32
    return %arg0, %c0_i32, %c0_i32_0 : i32, i32, i32
  }
  func.func @transform_1(%arg0: i32) -> (i32, i32) {
    %c0_i32 = arith.constant 0 : i32
    %c0_i32_0 = arith.constant 0 : i32
    %c0_i32_1 = arith.constant 0 : i32
    return %c0_i32, %c0_i32_0 : i32, i32
  }
  func.func @transform_2(%arg0: i32) -> (i32, i32) {
    %c0_i32 = arith.constant 0 : i32
    %c0_i32_0 = arith.constant 0 : i32
    %c0_i32_1 = arith.constant 0 : i32
    return %c0_i32, %c0_i32_0 : i32, i32
  }
  func.func @transform_3(%arg0: i32) -> (i32, i32) {
    %c0_i32 = arith.constant 0 : i32
    %c0_i32_0 = arith.constant 0 : i32
    %c0_i32_1 = arith.constant 0 : i32
    return %c0_i32, %c0_i32_0 : i32, i32
  }
  func.func @transform_4(%arg0: i32) -> (i32, i32) {
    %c0_i32 = arith.constant 0 : i32
    %c0_i32_0 = arith.constant 0 : i32
    %c0_i32_1 = arith.constant 0 : i32
    return %c0_i32, %c0_i32_0 : i32, i32
  }
  func.func @transform_5(%arg0: i32) -> (i32, i32) {
    %c0_i32 = arith.constant 0 : i32
    %c0_i32_0 = arith.constant 0 : i32
    %c0_i32_1 = arith.constant 0 : i32
    return %c0_i32, %c0_i32_0 : i32, i32
  }
  func.func @transform_6(%arg0: i32) -> (i32, i32) {
    %c0_i32 = arith.constant 0 : i32
    %c0_i32_0 = arith.constant 0 : i32
    %c0_i32_1 = arith.constant 0 : i32
    return %c0_i32, %c0_i32_0 : i32, i32
  }
  func.func @transform_7(%arg0: i32) -> (i32, i32, i32) {
    %c0_i32 = arith.constant 0 : i32
    %c0_i32_0 = arith.constant 0 : i32
    %c0_i32_1 = arith.constant 0 : i32
    return %arg0, %c0_i32, %c0_i32_0 : i32, i32, i32
  }
}

module attributes {stable_mosaic.version = 11 : i64} {
  func.func @_cross_attn_block_kernel(%arg0: i32, %arg1: memref<1x8x32xf32, #tpu.memory_space<vmem>>, %arg2: memref<1x8x32xf32, #tpu.memory_space<vmem>>, %arg3: memref<32x32xf32, #tpu.memory_space<vmem>>, %arg4: memref<1x32xf32, #tpu.memory_space<vmem>>, %arg5: memref<32x64xf32, #tpu.memory_space<vmem>>, %arg6: memref<1x64xf32, #tpu.memory_space<vmem>>, %arg7: memref<32x32xf32, #tpu.memory_space<vmem>>, %arg8: memref<1x32xf32, #tpu.memory_space<vmem>>, %arg9: memref<1x32xf32, #tpu.memory_space<vmem>>, %arg10: memref<1x32xf32, #tpu.memory_space<vmem>>, %arg11: memref<1x8x32xf32, #tpu.memory_space<vmem>>) attributes {dimension_semantics = [#tpu.dimension_semantics<parallel>], iteration_bounds = array<i64: 2>, scalar_prefetch = 0 : i64, scratch_operands = 0 : i64, tpu.core_type = #tpu.core_type<tc>, window_params = [{transform_indices = @transform_0, window_bounds = array<i64: 1, 8, 32>}, {transform_indices = @transform_1, window_bounds = array<i64: 1, 8, 32>}, {pipeline_mode = #tpu.pipeline_mode<synchronous>, transform_indices = @transform_2, window_bounds = array<i64: 32, 32>}, {pipeline_mode = #tpu.pipeline_mode<synchronous>, transform_indices = @transform_3, window_bounds = array<i64: 1, 32>}, {pipeline_mode = #tpu.pipeline_mode<synchronous>, transform_indices = @transform_4, window_bounds = array<i64: 32, 64>}, {pipeline_mode = #tpu.pipeline_mode<synchronous>, transform_indices = @transform_5, window_bounds = array<i64: 1, 64>}, {pipeline_mode = #tpu.pipeline_mode<synchronous>, transform_indices = @transform_6, window_bounds = array<i64: 32, 32>}, {pipeline_mode = #tpu.pipeline_mode<synchronous>, transform_indices = @transform_7, window_bounds = array<i64: 1, 32>}, {pipeline_mode = #tpu.pipeline_mode<synchronous>, transform_indices = @transform_8, window_bounds = array<i64: 1, 32>}, {pipeline_mode = #tpu.pipeline_mode<synchronous>, transform_indices = @transform_9, window_bounds = array<i64: 1, 32>}, {transform_indices = @transform_10, window_bounds = array<i64: 1, 8, 32>}]} {
    %c0 = arith.constant 0 : index
    %c0_0 = arith.constant 0 : index
    %c0_1 = arith.constant 0 : index
    %0 = vector.load %arg1[%c0, %c0_0, %c0_1] : memref<1x8x32xf32, #tpu.memory_space<vmem>>, vector<1x8x32xf32>
    %1 = vector.shape_cast %0 : vector<1x8x32xf32> to vector<8x32xf32>
    %c0_2 = arith.constant 0 : index
    %c0_3 = arith.constant 0 : index
    %c0_4 = arith.constant 0 : index
    %2 = vector.load %arg2[%c0_2, %c0_3, %c0_4] : memref<1x8x32xf32, #tpu.memory_space<vmem>>, vector<1x8x32xf32>
    %3 = vector.shape_cast %2 : vector<1x8x32xf32> to vector<8x32xf32>
    %c0_5 = arith.constant 0 : index
    %c0_6 = arith.constant 0 : index
    %4 = vector.load %arg3[%c0_5, %c0_6] : memref<32x32xf32, #tpu.memory_space<vmem>>, vector<32x32xf32>
    %cst = arith.constant dense<0.000000e+00> : vector<8x32xf32>
    %5 = tpu.matmul %1, %4, %cst {dimension_numbers = #tpu.dot_dimension_numbers<[1], [0], [0], [1], [0, 0, 1, 1], [], []>} : vector<8x32xf32>, vector<32x32xf32>, vector<8x32xf32> -> vector<8x32xf32>
    %c0_7 = arith.constant 0 : index
    %c0_8 = arith.constant 0 : index
    %6 = vector.load %arg4[%c0_7, %c0_8] : memref<1x32xf32, #tpu.memory_space<vmem>>, vector<1x32xf32>
    %7 = vector.broadcast %6 : vector<1x32xf32> to vector<8x32xf32>
    %8 = arith.addf %5, %7 : vector<8x32xf32>
    %c0_9 = arith.constant 0 : index
    %c0_10 = arith.constant 0 : index
    %9 = vector.load %arg5[%c0_9, %c0_10] : memref<32x64xf32, #tpu.memory_space<vmem>>, vector<32x64xf32>
    %cst_11 = arith.constant dense<0.000000e+00> : vector<8x64xf32>
    %10 = tpu.matmul %3, %9, %cst_11 {dimension_numbers = #tpu.dot_dimension_numbers<[1], [0], [0], [1], [0, 0, 1, 1], [], []>} : vector<8x32xf32>, vector<32x64xf32>, vector<8x64xf32> -> vector<8x64xf32>
    %c0_12 = arith.constant 0 : index
    %c0_13 = arith.constant 0 : index
    %11 = vector.load %arg6[%c0_12, %c0_13] : memref<1x64xf32, #tpu.memory_space<vmem>>, vector<1x64xf32>
    %12 = vector.broadcast %11 : vector<1x64xf32> to vector<8x64xf32>
    %13 = arith.addf %10, %12 : vector<8x64xf32>
    %14 = vector.extract_strided_slice %13 {offsets = [0, 0], sizes = [8, 32], strides = [1, 1]} : vector<8x64xf32> to vector<8x32xf32>
    %15 = vector.extract_strided_slice %13 {offsets = [0, 32], sizes = [8, 32], strides = [1, 1]} : vector<8x64xf32> to vector<8x32xf32>
    %c0_14 = arith.constant 0 : index
    %c0_15 = arith.constant 0 : index
    %16 = vector.load %arg7[%c0_14, %c0_15] : memref<32x32xf32, #tpu.memory_space<vmem>>, vector<32x32xf32>
    %c0_16 = arith.constant 0 : index
    %c0_17 = arith.constant 0 : index
    %17 = vector.load %arg8[%c0_16, %c0_17] : memref<1x32xf32, #tpu.memory_space<vmem>>, vector<1x32xf32>
    %c0_18 = arith.constant 0 : index
    %c0_19 = arith.constant 0 : index
    %18 = vector.load %arg9[%c0_18, %c0_19] : memref<1x32xf32, #tpu.memory_space<vmem>>, vector<1x32xf32>
    %c0_20 = arith.constant 0 : index
    %c0_21 = arith.constant 0 : index
    %19 = vector.load %arg10[%c0_20, %c0_21] : memref<1x32xf32, #tpu.memory_space<vmem>>, vector<1x32xf32>
    %20 = vector.extract_strided_slice %8 {offsets = [0, 0], sizes = [8, 8], strides = [1, 1]} : vector<8x32xf32> to vector<8x8xf32>
    %21 = vector.extract_strided_slice %14 {offsets = [0, 0], sizes = [8, 8], strides = [1, 1]} : vector<8x32xf32> to vector<8x8xf32>
    %22 = vector.extract_strided_slice %15 {offsets = [0, 0], sizes = [8, 8], strides = [1, 1]} : vector<8x32xf32> to vector<8x8xf32>
    %23 = tpu.transpose %21, [1, 0] : vector<8x8xf32> -> vector<8x8xf32>
    %cst_22 = arith.constant dense<0.000000e+00> : vector<8x8xf32>
    %24 = tpu.matmul %20, %23, %cst_22 {dimension_numbers = #tpu.dot_dimension_numbers<[1], [0], [0], [1], [0, 0, 1, 1], [], []>} : vector<8x8xf32>, vector<8x8xf32>, vector<8x8xf32> -> vector<8x8xf32>
    %cst_23 = arith.constant 0.353553385 : f32
    %25 = vector.broadcast %cst_23 : f32 to vector<8x8xf32>
    %26 = arith.mulf %24, %25 : vector<8x8xf32>
    %cst_24 = arith.constant dense<0xFF800000> : vector<8xf32>
    %27 = vector.multi_reduction <maximumf>, %26, %cst_24 [1] : vector<8x8xf32> to vector<8xf32>
    %28 = vector.shape_cast %27 : vector<8xf32> to vector<8x1xf32>
    %29 = vector.broadcast %28 : vector<8x1xf32> to vector<8x8xf32>
    %30 = arith.subf %26, %29 : vector<8x8xf32>
    %31 = math.exp %30 : vector<8x8xf32>
    %cst_25 = arith.constant dense<0.000000e+00> : vector<8xf32>
    %32 = vector.multi_reduction <add>, %31, %cst_25 [1] : vector<8x8xf32> to vector<8xf32>
    %33 = vector.shape_cast %32 : vector<8xf32> to vector<8x1xf32>
    %34 = tpu.reciprocal %33 {approx = true} : vector<8x1xf32> -> vector<8x1xf32>
    %35 = vector.broadcast %34 : vector<8x1xf32> to vector<8x8xf32>
    %36 = arith.mulf %31, %35 : vector<8x8xf32>
    %cst_26 = arith.constant dense<0.000000e+00> : vector<8x8xf32>
    %37 = tpu.matmul %36, %22, %cst_26 {dimension_numbers = #tpu.dot_dimension_numbers<[1], [0], [0], [1], [0, 0, 1, 1], [], []>} : vector<8x8xf32>, vector<8x8xf32>, vector<8x8xf32> -> vector<8x8xf32>
    %38 = vector.extract_strided_slice %8 {offsets = [0, 8], sizes = [8, 8], strides = [1, 1]} : vector<8x32xf32> to vector<8x8xf32>
    %39 = vector.extract_strided_slice %14 {offsets = [0, 8], sizes = [8, 8], strides = [1, 1]} : vector<8x32xf32> to vector<8x8xf32>
    %40 = vector.extract_strided_slice %15 {offsets = [0, 8], sizes = [8, 8], strides = [1, 1]} : vector<8x32xf32> to vector<8x8xf32>
    %41 = tpu.transpose %39, [1, 0] : vector<8x8xf32> -> vector<8x8xf32>
    %cst_27 = arith.constant dense<0.000000e+00> : vector<8x8xf32>
    %42 = tpu.matmul %38, %41, %cst_27 {dimension_numbers = #tpu.dot_dimension_numbers<[1], [0], [0], [1], [0, 0, 1, 1], [], []>} : vector<8x8xf32>, vector<8x8xf32>, vector<8x8xf32> -> vector<8x8xf32>
    %cst_28 = arith.constant 0.353553385 : f32
    %43 = vector.broadcast %cst_28 : f32 to vector<8x8xf32>
    %44 = arith.mulf %42, %43 : vector<8x8xf32>
    %cst_29 = arith.constant dense<0xFF800000> : vector<8xf32>
    %45 = vector.multi_reduction <maximumf>, %44, %cst_29 [1] : vector<8x8xf32> to vector<8xf32>
    %46 = vector.shape_cast %45 : vector<8xf32> to vector<8x1xf32>
    %47 = vector.broadcast %46 : vector<8x1xf32> to vector<8x8xf32>
    %48 = arith.subf %44, %47 : vector<8x8xf32>
    %49 = math.exp %48 : vector<8x8xf32>
    %cst_30 = arith.constant dense<0.000000e+00> : vector<8xf32>
    %50 = vector.multi_reduction <add>, %49, %cst_30 [1] : vector<8x8xf32> to vector<8xf32>
    %51 = vector.shape_cast %50 : vector<8xf32> to vector<8x1xf32>
    %52 = tpu.reciprocal %51 {approx = true} : vector<8x1xf32> -> vector<8x1xf32>
    %53 = vector.broadcast %52 : vector<8x1xf32> to vector<8x8xf32>
    %54 = arith.mulf %49, %53 : vector<8x8xf32>
    %cst_31 = arith.constant dense<0.000000e+00> : vector<8x8xf32>
    %55 = tpu.matmul %54, %40, %cst_31 {dimension_numbers = #tpu.dot_dimension_numbers<[1], [0], [0], [1], [0, 0, 1, 1], [], []>} : vector<8x8xf32>, vector<8x8xf32>, vector<8x8xf32> -> vector<8x8xf32>
    %56 = vector.extract_strided_slice %8 {offsets = [0, 16], sizes = [8, 8], strides = [1, 1]} : vector<8x32xf32> to vector<8x8xf32>
    %57 = vector.extract_strided_slice %14 {offsets = [0, 16], sizes = [8, 8], strides = [1, 1]} : vector<8x32xf32> to vector<8x8xf32>
    %58 = vector.extract_strided_slice %15 {offsets = [0, 16], sizes = [8, 8], strides = [1, 1]} : vector<8x32xf32> to vector<8x8xf32>
    %59 = tpu.transpose %57, [1, 0] : vector<8x8xf32> -> vector<8x8xf32>
    %cst_32 = arith.constant dense<0.000000e+00> : vector<8x8xf32>
    %60 = tpu.matmul %56, %59, %cst_32 {dimension_numbers = #tpu.dot_dimension_numbers<[1], [0], [0], [1], [0, 0, 1, 1], [], []>} : vector<8x8xf32>, vector<8x8xf32>, vector<8x8xf32> -> vector<8x8xf32>
    %cst_33 = arith.constant 0.353553385 : f32
    %61 = vector.broadcast %cst_33 : f32 to vector<8x8xf32>
    %62 = arith.mulf %60, %61 : vector<8x8xf32>
    %cst_34 = arith.constant dense<0xFF800000> : vector<8xf32>
    %63 = vector.multi_reduction <maximumf>, %62, %cst_34 [1] : vector<8x8xf32> to vector<8xf32>
    %64 = vector.shape_cast %63 : vector<8xf32> to vector<8x1xf32>
    %65 = vector.broadcast %64 : vector<8x1xf32> to vector<8x8xf32>
    %66 = arith.subf %62, %65 : vector<8x8xf32>
    %67 = math.exp %66 : vector<8x8xf32>
    %cst_35 = arith.constant dense<0.000000e+00> : vector<8xf32>
    %68 = vector.multi_reduction <add>, %67, %cst_35 [1] : vector<8x8xf32> to vector<8xf32>
    %69 = vector.shape_cast %68 : vector<8xf32> to vector<8x1xf32>
    %70 = tpu.reciprocal %69 {approx = true} : vector<8x1xf32> -> vector<8x1xf32>
    %71 = vector.broadcast %70 : vector<8x1xf32> to vector<8x8xf32>
    %72 = arith.mulf %67, %71 : vector<8x8xf32>
    %cst_36 = arith.constant dense<0.000000e+00> : vector<8x8xf32>
    %73 = tpu.matmul %72, %58, %cst_36 {dimension_numbers = #tpu.dot_dimension_numbers<[1], [0], [0], [1], [0, 0, 1, 1], [], []>} : vector<8x8xf32>, vector<8x8xf32>, vector<8x8xf32> -> vector<8x8xf32>
    %74 = vector.extract_strided_slice %8 {offsets = [0, 24], sizes = [8, 8], strides = [1, 1]} : vector<8x32xf32> to vector<8x8xf32>
    %75 = vector.extract_strided_slice %14 {offsets = [0, 24], sizes = [8, 8], strides = [1, 1]} : vector<8x32xf32> to vector<8x8xf32>
    %76 = vector.extract_strided_slice %15 {offsets = [0, 24], sizes = [8, 8], strides = [1, 1]} : vector<8x32xf32> to vector<8x8xf32>
    %77 = tpu.transpose %75, [1, 0] : vector<8x8xf32> -> vector<8x8xf32>
    %cst_37 = arith.constant dense<0.000000e+00> : vector<8x8xf32>
    %78 = tpu.matmul %74, %77, %cst_37 {dimension_numbers = #tpu.dot_dimension_numbers<[1], [0], [0], [1], [0, 0, 1, 1], [], []>} : vector<8x8xf32>, vector<8x8xf32>, vector<8x8xf32> -> vector<8x8xf32>
    %cst_38 = arith.constant 0.353553385 : f32
    %79 = vector.broadcast %cst_38 : f32 to vector<8x8xf32>
    %80 = arith.mulf %78, %79 : vector<8x8xf32>
    %cst_39 = arith.constant dense<0xFF800000> : vector<8xf32>
    %81 = vector.multi_reduction <maximumf>, %80, %cst_39 [1] : vector<8x8xf32> to vector<8xf32>
    %82 = vector.shape_cast %81 : vector<8xf32> to vector<8x1xf32>
    %83 = vector.broadcast %82 : vector<8x1xf32> to vector<8x8xf32>
    %84 = arith.subf %80, %83 : vector<8x8xf32>
    %85 = math.exp %84 : vector<8x8xf32>
    %cst_40 = arith.constant dense<0.000000e+00> : vector<8xf32>
    %86 = vector.multi_reduction <add>, %85, %cst_40 [1] : vector<8x8xf32> to vector<8xf32>
    %87 = vector.shape_cast %86 : vector<8xf32> to vector<8x1xf32>
    %88 = tpu.reciprocal %87 {approx = true} : vector<8x1xf32> -> vector<8x1xf32>
    %89 = vector.broadcast %88 : vector<8x1xf32> to vector<8x8xf32>
    %90 = arith.mulf %85, %89 : vector<8x8xf32>
    %cst_41 = arith.constant dense<0.000000e+00> : vector<8x8xf32>
    %91 = tpu.matmul %90, %76, %cst_41 {dimension_numbers = #tpu.dot_dimension_numbers<[1], [0], [0], [1], [0, 0, 1, 1], [], []>} : vector<8x8xf32>, vector<8x8xf32>, vector<8x8xf32> -> vector<8x8xf32>
    %92 = tpu.concatenate %37, %55, %73, %91 in 1 : vector<8x8xf32>, vector<8x8xf32>, vector<8x8xf32>, vector<8x8xf32> -> vector<8x32xf32>
    %cst_42 = arith.constant dense<0.000000e+00> : vector<8x32xf32>
    %93 = tpu.matmul %92, %16, %cst_42 {dimension_numbers = #tpu.dot_dimension_numbers<[1], [0], [0], [1], [0, 0, 1, 1], [], []>} : vector<8x32xf32>, vector<32x32xf32>, vector<8x32xf32> -> vector<8x32xf32>
    %94 = vector.broadcast %17 : vector<1x32xf32> to vector<8x32xf32>
    %95 = arith.addf %93, %94 : vector<8x32xf32>
    %96 = arith.addf %1, %95 : vector<8x32xf32>
    %cst_43 = arith.constant dense<0.000000e+00> : vector<8xf32>
    %97 = vector.multi_reduction <add>, %96, %cst_43 [1] : vector<8x32xf32> to vector<8xf32>
    %98 = vector.shape_cast %97 : vector<8xf32> to vector<8x1xf32>
    %cst_44 = arith.constant 3.200000e+01 : f32
    %99 = vector.broadcast %cst_44 : f32 to vector<8x1xf32>
    %100 = arith.divf %98, %99 : vector<8x1xf32>
    %101 = vector.broadcast %100 : vector<8x1xf32> to vector<8x32xf32>
    %102 = arith.subf %96, %101 : vector<8x32xf32>
    %103 = arith.mulf %102, %102 : vector<8x32xf32>
    %cst_45 = arith.constant dense<0.000000e+00> : vector<8xf32>
    %104 = vector.multi_reduction <add>, %103, %cst_45 [1] : vector<8x32xf32> to vector<8xf32>
    %105 = vector.shape_cast %104 : vector<8xf32> to vector<8x1xf32>
    %cst_46 = arith.constant 3.200000e+01 : f32
    %106 = vector.broadcast %cst_46 : f32 to vector<8x1xf32>
    %107 = arith.divf %105, %106 : vector<8x1xf32>
    %108 = vector.broadcast %100 : vector<8x1xf32> to vector<8x32xf32>
    %109 = arith.subf %96, %108 : vector<8x32xf32>
    %cst_47 = arith.constant 9.99999974E-6 : f32
    %110 = vector.broadcast %cst_47 : f32 to vector<8x1xf32>
    %111 = arith.addf %107, %110 : vector<8x1xf32>
    %112 = math.rsqrt %111 : vector<8x1xf32>
    %113 = vector.broadcast %112 : vector<8x1xf32> to vector<8x32xf32>
    %114 = arith.mulf %109, %113 : vector<8x32xf32>
    %115 = vector.broadcast %18 : vector<1x32xf32> to vector<8x32xf32>
    %116 = arith.mulf %114, %115 : vector<8x32xf32>
    %117 = vector.broadcast %19 : vector<1x32xf32> to vector<8x32xf32>
    %118 = arith.addf %116, %117 : vector<8x32xf32>
    %c0_48 = arith.constant 0 : index
    %c0_49 = arith.constant 0 : index
    %c0_50 = arith.constant 0 : index
    %119 = vector.load %arg11[%c0_48, %c0_49, %c0_50] : memref<1x8x32xf32, #tpu.memory_space<vmem>>, vector<1x8x32xf32>
    %120 = vector.shape_cast %119 : vector<1x8x32xf32> to vector<8x32xf32>
    %121 = vector.shape_cast %118 : vector<8x32xf32> to vector<1x8x32xf32>
    tpu.vector_store %arg11[%c0_48, %c0_49, %c0_50], %121 {strides = array<i32>} : memref<1x8x32xf32, #tpu.memory_space<vmem>>, vector<1x8x32xf32>,
    return
  }
  func.func @transform_0(%arg0: i32) -> (i32, i32, i32) {
    %c0_i32 = arith.constant 0 : i32
    %c0_i32_0 = arith.constant 0 : i32
    %c0_i32_1 = arith.constant 0 : i32
    return %arg0, %c0_i32, %c0_i32_0 : i32, i32, i32
  }
  func.func @transform_1(%arg0: i32) -> (i32, i32, i32) {
    %c0_i32 = arith.constant 0 : i32
    %c0_i32_0 = arith.constant 0 : i32
    %c0_i32_1 = arith.constant 0 : i32
    return %arg0, %c0_i32, %c0_i32_0 : i32, i32, i32
  }
  func.func @transform_2(%arg0: i32) -> (i32, i32) {
    %c0_i32 = arith.constant 0 : i32
    %c0_i32_0 = arith.constant 0 : i32
    %c0_i32_1 = arith.constant 0 : i32
    return %c0_i32, %c0_i32_0 : i32, i32
  }
  func.func @transform_3(%arg0: i32) -> (i32, i32) {
    %c0_i32 = arith.constant 0 : i32
    %c0_i32_0 = arith.constant 0 : i32
    %c0_i32_1 = arith.constant 0 : i32
    return %c0_i32, %c0_i32_0 : i32, i32
  }
  func.func @transform_4(%arg0: i32) -> (i32, i32) {
    %c0_i32 = arith.constant 0 : i32
    %c0_i32_0 = arith.constant 0 : i32
    %c0_i32_1 = arith.constant 0 : i32
    return %c0_i32, %c0_i32_0 : i32, i32
  }
  func.func @transform_5(%arg0: i32) -> (i32, i32) {
    %c0_i32 = arith.constant 0 : i32
    %c0_i32_0 = arith.constant 0 : i32
    %c0_i32_1 = arith.constant 0 : i32
    return %c0_i32, %c0_i32_0 : i32, i32
  }
  func.func @transform_6(%arg0: i32) -> (i32, i32) {
    %c0_i32 = arith.constant 0 : i32
    %c0_i32_0 = arith.constant 0 : i32
    %c0_i32_1 = arith.constant 0 : i32
    return %c0_i32, %c0_i32_0 : i32, i32
  }
  func.func @transform_7(%arg0: i32) -> (i32, i32) {
    %c0_i32 = arith.constant 0 : i32
    %c0_i32_0 = arith.constant 0 : i32
    %c0_i32_1 = arith.constant 0 : i32
    return %c0_i32, %c0_i32_0 : i32, i32
  }
  func.func @transform_8(%arg0: i32) -> (i32, i32) {
    %c0_i32 = arith.constant 0 : i32
    %c0_i32_0 = arith.constant 0 : i32
    %c0_i32_1 = arith.constant 0 : i32
    return %c0_i32, %c0_i32_0 : i32, i32
  }
  func.func @transform_9(%arg0: i32) -> (i32, i32) {
    %c0_i32 = arith.constant 0 : i32
    %c0_i32_0 = arith.constant 0 : i32
    %c0_i32_1 = arith.constant 0 : i32
    return %c0_i32, %c0_i32_0 : i32, i32
  }
  func.func @transform_10(%arg0: i32) -> (i32, i32, i32) {
    %c0_i32 = arith.constant 0 : i32
    %c0_i32_0 = arith.constant 0 : i32
    %c0_i32_1 = arith.constant 0 : i32
    return %arg0, %c0_i32, %c0_i32_0 : i32, i32, i32
  }
}

module attributes {stable_mosaic.version = 11 : i64} {
  func.func @_layernorm_kernel(%arg0: i32, %arg1: memref<16x32xf32, #tpu.memory_space<vmem>>, %arg2: memref<1x32xf32, #tpu.memory_space<vmem>>, %arg3: memref<1x32xf32, #tpu.memory_space<vmem>>, %arg4: memref<16x32xf32, #tpu.memory_space<vmem>>) attributes {dimension_semantics = [#tpu.dimension_semantics<parallel>], iteration_bounds = array<i64: 1>, scalar_prefetch = 0 : i64, scratch_operands = 0 : i64, tpu.core_type = #tpu.core_type<tc>, window_params = [{transform_indices = @transform_0, window_bounds = array<i64: 16, 32>}, {pipeline_mode = #tpu.pipeline_mode<synchronous>, transform_indices = @transform_1, window_bounds = array<i64: 1, 32>}, {pipeline_mode = #tpu.pipeline_mode<synchronous>, transform_indices = @transform_2, window_bounds = array<i64: 1, 32>}, {transform_indices = @transform_3, window_bounds = array<i64: 16, 32>}]} {
    %c0 = arith.constant 0 : index
    %c0_0 = arith.constant 0 : index
    %0 = vector.load %arg1[%c0, %c0_0] : memref<16x32xf32, #tpu.memory_space<vmem>>, vector<16x32xf32>
    %cst = arith.constant dense<0.000000e+00> : vector<16xf32>
    %1 = vector.multi_reduction <add>, %0, %cst [1] : vector<16x32xf32> to vector<16xf32>
    %2 = vector.shape_cast %1 : vector<16xf32> to vector<16x1xf32>
    %cst_1 = arith.constant 3.200000e+01 : f32
    %3 = vector.broadcast %cst_1 : f32 to vector<16x1xf32>
    %4 = arith.divf %2, %3 : vector<16x1xf32>
    %5 = vector.broadcast %4 : vector<16x1xf32> to vector<16x32xf32>
    %6 = arith.subf %0, %5 : vector<16x32xf32>
    %7 = arith.mulf %6, %6 : vector<16x32xf32>
    %cst_2 = arith.constant dense<0.000000e+00> : vector<16xf32>
    %8 = vector.multi_reduction <add>, %7, %cst_2 [1] : vector<16x32xf32> to vector<16xf32>
    %9 = vector.shape_cast %8 : vector<16xf32> to vector<16x1xf32>
    %cst_3 = arith.constant 3.200000e+01 : f32
    %10 = vector.broadcast %cst_3 : f32 to vector<16x1xf32>
    %11 = arith.divf %9, %10 : vector<16x1xf32>
    %12 = vector.broadcast %4 : vector<16x1xf32> to vector<16x32xf32>
    %13 = arith.subf %0, %12 : vector<16x32xf32>
    %cst_4 = arith.constant 9.99999974E-6 : f32
    %14 = vector.broadcast %cst_4 : f32 to vector<16x1xf32>
    %15 = arith.addf %11, %14 : vector<16x1xf32>
    %16 = math.rsqrt %15 : vector<16x1xf32>
    %17 = vector.broadcast %16 : vector<16x1xf32> to vector<16x32xf32>
    %18 = arith.mulf %13, %17 : vector<16x32xf32>
    %c0_5 = arith.constant 0 : index
    %c0_6 = arith.constant 0 : index
    %19 = vector.load %arg2[%c0_5, %c0_6] : memref<1x32xf32, #tpu.memory_space<vmem>>, vector<1x32xf32>
    %20 = vector.broadcast %19 : vector<1x32xf32> to vector<16x32xf32>
    %21 = arith.mulf %18, %20 : vector<16x32xf32>
    %c0_7 = arith.constant 0 : index
    %c0_8 = arith.constant 0 : index
    %22 = vector.load %arg3[%c0_7, %c0_8] : memref<1x32xf32, #tpu.memory_space<vmem>>, vector<1x32xf32>
    %23 = vector.broadcast %22 : vector<1x32xf32> to vector<16x32xf32>
    %24 = arith.addf %21, %23 : vector<16x32xf32>
    %c0_9 = arith.constant 0 : index
    %c0_10 = arith.constant 0 : index
    %25 = vector.load %arg4[%c0_9, %c0_10] : memref<16x32xf32, #tpu.memory_space<vmem>>, vector<16x32xf32>
    tpu.vector_store %arg4[%c0_9, %c0_10], %24 {strides = array<i32>} : memref<16x32xf32, #tpu.memory_space<vmem>>, vector<16x32xf32>,
    return
  }
  func.func @transform_0(%arg0: i32) -> (i32, i32) {
    %c0_i32 = arith.constant 0 : i32
    %c0_i32_0 = arith.constant 0 : i32
    return %arg0, %c0_i32 : i32, i32
  }
  func.func @transform_1(%arg0: i32) -> (i32, i32) {
    %c0_i32 = arith.constant 0 : i32
    %c0_i32_0 = arith.constant 0 : i32
    %c0_i32_1 = arith.constant 0 : i32
    return %c0_i32, %c0_i32_0 : i32, i32
  }
  func.func @transform_2(%arg0: i32) -> (i32, i32) {
    %c0_i32 = arith.constant 0 : i32
    %c0_i32_0 = arith.constant 0 : i32
    %c0_i32_1 = arith.constant 0 : i32
    return %c0_i32, %c0_i32_0 : i32, i32
  }
  func.func @transform_3(%arg0: i32) -> (i32, i32) {
    %c0_i32 = arith.constant 0 : i32
    %c0_i32_0 = arith.constant 0 : i32
    return %arg0, %c0_i32 : i32, i32
  }
}

</mosaic_0001>

<bundles_post_ra>
// kernel: decoder.7
= control target key start
LH: loop header
LB: loop body
LE: loop exit
PB: predicated region body
PF: predicated region fallthrough
CT: control target
= control target key end

     0   :  { %12 = vsyncpa [#allocation3], 0  ;;  %s1375_s0 = inlined_call_operand.hbm [shape: f32[2,8,32], index: 0, kind: input, shape index: {}]   ;;  %s1376_s1 = inlined_call_operand.vmem [shape: f32[32,96], index: 1, kind: input, shape index: {}]   ;;  %s1377_s2 = inlined_call_operand.vmem [shape: f32[1,96], index: 2, kind: input, shape index: {}]   ;;  %s1378_s3 = inlined_call_operand.hbm [shape: f32[32,32], index: 3, kind: input, shape index: {}]   ;;  %s1379_s4 = inlined_call_operand.vmem [shape: f32[1,32], index: 4, kind: input, shape index: {}]   ;;  %s1380_s5 = inlined_call_operand.hbm [shape: f32[1,32], index: 5, kind: input, shape index: {}]   ;;  %s1381_s6 = inlined_call_operand.hbm [shape: f32[1,32], index: 6, kind: input, shape index: {}]   ;;  %s1382_s7 = inlined_call_operand.vmem [shape: f32[2,8,32], index: 7, kind: output, shape index: {}]  }
   0x1   :  { %14 = vsyncpa [#allocation3 + $0x1], 0 }
   0x2   :  { %15 = vsyncpa [#allocation5], 0 }
   0x3   :  { %16 = vsyncpa [#allocation8], 0  ;;  %s1187_s24 = smov 0   ;;  %s1189_s25 = smov 0  }
   0x4   :  { %s1191_s26 = smov 0   ;;  %s1193_s27 = smov 0  }
   0x5 LB: > { %s222_s30 = sshll.u32 %s1378_s3, 4  ;;  %s1211_s8 = sadd.s32 4294967295, %s1125_s27   ;;  %s1125_s27 = sphi %s1193_s27, %s1390_s27   ;;  %s1121_s26 = sphi %s1191_s26, %s1389_s26   ;;  %s1117_s25 = sphi %s1189_s25, %s1388_s25   ;;  %s1113_s24 = sphi %s1187_s24, %s1387_s24   ;;  %s223_s30 = int_to_ptr.hbm [resolvable:$true] %s222_s30 }
   0x6   : > { %p823_p0 = scmp.ge.s32.totalorder %s1125_s27, 1  ;;  %p43_p1 = scmp.eq.s32.totalorder %s1211_s8, 0 }
   0x7   : > { %p205_p2 = scmp.lt.s32.totalorder %s1125_s27, 3  ;;  %s1127_s10 = smov [#allocation4]  }
   0x8   : > { %s224_s11 = sshll.u32 %s1127_s10, 4  ;;  %s240_s14 = sshll.u32 %s1380_s5, 4  ;;  %s225_s11 = int_to_ptr.vmem [resolvable:$true] %s224_s11  ;;  %s241_s14 = int_to_ptr.hbm [resolvable:$true] %s240_s14 }
   0x9   : > { %p1216_p3 = pnand %p823_p0, %p205_p2  ;;  %s252_s18 = sshll.u32 %s1381_s6, 4  ;;  %s253_s18 = int_to_ptr.hbm [resolvable:$true] %s252_s18 }
   0xa   : > { %s1128_s19 = smov [#allocation6]   ;;  %s1129_s21 = smov 128  }
   0xb   : > { %p866_p4 = pneg %p1216_p3  ;;  %s242_s20 = sshll.u32 %s1128_s19, 4  ;;  %s243_s20 = int_to_ptr.vmem [resolvable:$true] %s242_s20 }
   0xc   : > { %s1130_s22 = smov 8   ;;  %s1131_s23 = smov [#allocation7]  }
   0xd   : > { %p1227_p5 = pnand %p866_p4, %p43_p1  ;;  %s254_s28 = sshll.u32 %s1131_s23, 4  ;;  %s255_s28 = int_to_ptr.vmem [resolvable:$true] %s254_s28 }
   0xe   : > { %s1241_s29 = sadd.s32 1, %s1125_s27   ;;  %s29_s12 = sadd.s32 1, %s1121_s26 }
   0xf   : > { %869 = dma.hbm_to_vmem [thread:$0]  (!%p1227_p5), %s223_s30, 512, %s225_s11, [#allocation5], %s1129_s21, %s1129_s21, %s1130_s22  }
  0x10   : > { %872 = dma.hbm_to_vmem [thread:$0]  (!%p1227_p5), %s241_s14, 16, %s243_s20, [#allocation5]  }
  0x11   : > { %875 = dma.hbm_to_vmem [thread:$0]  (!%p1227_p5), %s253_s18, 16, %s255_s28, [#allocation8]  }
  0x12   : > { %s26_s10 = ssub.s32 %s1125_s27, %s1241_s29  ;;  %p36_p7 = scmp.ne.s32.totalorder %s1121_s26, %s1117_s25 }
  0x13   : > { %p27_p6 = scmp.eq.s32.totalorder %s26_s10, 0  ;;  %p37_p8 = scmp.eq.s32.totalorder %s1125_s27, 0 }
  0x14   : > { %p42_p9 = scmp.ne.s32.totalorder %s1117_s25, %s1113_s24  ;;  %p883_p12 = scmp.lt.s32.totalorder %s1125_s27, 2 }
  0x15   : > { %s1252_s30 = scalar_select %p27_p6, %s1121_s26, %s29_s12  }
  0x16   : > { %p38_p10 = por %p37_p8, %p36_p7  ;;  %p1256_p11 = por %p43_p1, %p42_p9 }
  0x17   : > { %s265_s13 = sand.u32 1, %s1121_s26   ;;  %s829_s15 = sshll.u32 %s1125_s27, 3 }
  0x18   : > { %s828_s14 = sshll.u32 %s265_s13, 3  ;;  %s273_s18 = scalar_lea.hbm %s1375_s0, %s829_s15 }
  0x19   : > { %s269_s19 = scalar_lea.vmem [#allocation2], %s828_s14  ;;  %s275_s21 = sshll.u32 %s273_s18, 4  ;;  %s276_s21 = int_to_ptr.hbm [resolvable:$true] %s275_s21 }
  0x1a   : > { %s277_s20 = sshll.u32 %s269_s19, 4  ;;  %p1266_p13 = pnand %p883_p12, %p38_p10  ;;  %s278_s20 = int_to_ptr.vmem [resolvable:$true] %s277_s20 }
  0x1b   : > { %s266_s22 = scalar_lea.sflag [#allocation3], %s265_s13  ;;  %s1053_s23 = sshra.s32 %s276_s21, 4  ;;  %s1054_s23 = int_to_ptr.hbm [resolvable:$true] %s1053_s23 }
  0x1c   : > { %s1055_s28 = scalar_lea.hbm %s1054_s23, 8  ;;  %p1057_p2 = pneg %p1266_p13 }
  0x1d   : > { %p1056_p0 = scmp.ne.s32.totalorder %s1054_s23, %s1055_s28  ;;  %s1060_s12 = scalar_lea.hbm %s1375_s0, 16 }
  0x1e   : > { %p1061_p6 = scmp.lt.s32.totalorder %s1054_s23, %s1375_s0  ;;  %p1062_p7 = scmp.lt.s32.totalorder %s1060_s12, %s1055_s28 }
  0x1f   : > { %p1058_p4 = pnand %p1057_p2, %p1056_p0 }
  0x20   : > { %p1063_p8 = por %p1062_p7, %p1061_p6 }
  0x21   : > { %p1059_p5 = pneg %p1058_p4 }
  0x23   : > { %p1064_p9 = pnand %p1063_p8, %p1059_p5 }
  0x25   : > { %1067 = shalt.err (!%p1064_p9)
}
  0x26   : > { %879 = dma.hbm_to_vmem [thread:$0]  (!%p1266_p13), %s276_s21, 128, %s278_s20, %s266_s22  }
  0x27   : > { %286 = sbr.rel (%p1216_p3) target bundleno = 1371 (0x55b), region = 48  ;;  %s288_s13 = sand.u32 (!%p1216_p3), 1, %s1117_s25  }
  0x28   : > { %s831_s16 = sshll.u32 (!%p1216_p3), %s288_s13, 3  ;;  %s289_s17 = scalar_lea.sflag (!%p1216_p3), [#allocation3], %s288_s13 }
  0x29   : > { %s292_s18 = scalar_lea.vmem (!%p1216_p3), [#allocation2], %s831_s16 }
  0x2c   : > { %1100 = dma.done.wait (%p1256_p11), %s289_s17, 128  }
  0x2d   : > { %1102 = vsyncadd (%p1256_p11), %s289_s17, 4294967168 }
  0x2e   : > { %1104 = dma.done.wait (%p43_p1), [#allocation5], 528  }
  0x2f   : > { %1106 = vsyncadd (%p43_p1), [#allocation5], 4294966768 }
  0x30   : > { %1108 = dma.done.wait (%p43_p1), [#allocation8], 16  }
  0x31   : > { %1110 = vsyncadd (%p43_p1), [#allocation8], 4294967280  ;;  %v346_v0 = vld [vmem:[%s1376_s1 + $0x18] sm:$0xff]  ;;  %v345_v1 = vld [vmem:[%s1376_s1 + $0x10] sm:$0xff]  ;;  %vm351_vm0 = vcmask 261120   ;;  %s1132_s10 = smov 72  }
  0x32   : > { %367 = vmatpush.msra.mxu0 %v346_v0  ;;  %v344_v2 = vld [vmem:[%s1376_s1 + $0x8] sm:$0xff]  ;;  %v343_v3 = vld [vmem:[%s1376_s1] sm:$0xff]  ;;  %s1133_s12 = smov 120   ;;  %s1134_s14 = smov 96   ;;  %vm385_vm1 = vcmask 64512   ;;  %vm659_vm2 = vcmask 130048  }
  0x33   : > { %v1307_v4 = vld [vmem:[%s292_s18] sm:$0xff]  ;;  %s1135_s15 = smov 112   ;;  %s1136_s13 = smov 80   ;;  %vm661_vm3 = vcmask 195584  }
  0x34   : > { %368 = vmatpush.msra.mxu0 %v345_v1  ;;  %v939_v5 = vld [vmem:[%s1377_s2] ss:$0 sm:$0xff]  ;;  %s1137_s16 = smov 88   ;;  %s1138_s17 = smov 104  }
  0x35   : > { %s1139_s18 = smov 64   ;;  %s1140_s9 = smov 40  }
  0x36   : > { %369 = vmatpush.msra.mxu0 %v344_v2  ;;  %s1141_s19 = smov 56   ;;  %s1142_s20 = smov 48  }
  0x37   : > { %s1143_s21 = smov 16   ;;  %s1144_s11 = smov 8  }
  0x38   : > { %370 = vmatpush.msra.mxu0 %v343_v3  ;;  %s1145_s24 = smov 24   ;;  %v378_v3 = vld [vmem:[#allocation4 + $0x18] sm:$0xff]  ;;  %p338_p1 = scmp.lt.s32.totalorder %s1211_s8, 1 }
  0x39   : > { %836 = vmatmul.msk.f32.vlgmr.msra.gmra.mxu0 %vm351_vm0, %v1307_v4 }
  0x3a   : > { %s1392_s8 = smov (!%p338_p1, %s1211_s8), 1 }
  0x3b   : > { %s835_s28 = sshll.u32 %s1392_s8, 3 }
  0xb6   : > { %v372_v6 = vpop.f32.mrf.mxu0 }
  0xb7   : > { %v1314_v7 = vadd.f32 %v939_v5, %v372_v6  ;;  %v377_v5 = vld [vmem:[#allocation4 + $0x10] sm:$0xff]  ;;  %v376_v6 = vld [vmem:[#allocation4 + $0x8] sm:$0xff] }
  0xb9   : > { %582 = vrot.lane.b32.xlu2 %v1314_v7, %s1132_s10  ;;  %448 = vrot.lane.b32.xlu1 %v1314_v7, %s1133_s12  ;;  %s341_s12 = scalar_lea.vmem %s1382_s7, %s835_s28 }
  0xba   : > { %383 = vrot.lane.b32.xlu0 %v1314_v7, %s1134_s14 }
  0xc1   : > { %514 = vrot.lane.b32.xlu2 %v1314_v7, %s1135_s15  ;;  %516 = vrot.lane.b32.xlu1 %v1314_v7, %s1136_s13 }
  0xc2   : > { %450 = vrot.lane.b32.xlu0 %v1314_v7, %s1137_s16 }
  0xca   : > { %580 = vrot.lane.b32.xlu0 %v1314_v7, %s1138_s17 }
 0x113   : > { %v583_v8 = vpop.permute.xlu2 %582 }
 0x114   : > { %846 = vmatpush.xpose.msk.msrb.mxu0 %vm385_vm1, %v583_v8 }
 0x11b   : > { %v515_v13 = vpop.permute.xlu2 %514 }
 0x12b   : > { %v449_v9 = vpop.permute.xlu1 %448 }
 0x12c   : > { %v384_v10 = vpop.permute.xlu0 %383 }
 0x12d   : > { %837 = vmatpush.xpose.msk.msra.mxu1 %vm385_vm1, %v384_v10 }
 0x130   : > { %838 = vmatmul.msk.f32.vlgmr.msra.gmra.mxu1 %vm385_vm1, %v1314_v7 }
 0x133   : > { %v517_v11 = vpop.permute.xlu1 %516 }
 0x134   : > { %v451_v12 = vpop.permute.xlu0 %450  ;;  %843 = vmatpush.xpose.msk.msrb.mxu1 %vm385_vm1, %v517_v11 }
 0x135   : > { %840 = vmatpush.xpose.msk.msra.mxu3 %vm385_vm1, %v451_v12 }
 0x138   : > { %841 = vmatmul.msk.f32.vlgmr.msra.gmra.mxu3 %vm385_vm1, %v449_v9  ;;  %844 = vmatmul.msk.f32.vlgmr.msrb.gmra.mxu1 %vm385_vm1, %v515_v13 }
 0x139   : > { %681 = vmatpush.msra.mxu1 %v378_v3 }
 0x13b   : > { %682 = vmatpush.msra.mxu1 %v377_v5 }
 0x13c   : > { %v581_v14 = vpop.permute.xlu0 %580 }
 0x13d   : > { %847 = vmatmul.msk.f32.vlgmr.msrb.gmra.mxu0 %vm385_vm1, %v581_v14  ;;  %683 = vmatpush.msra.mxu1 %v376_v6  ;;  %v940_v14 = vld [vmem:[%s1379_s4] ss:$0 sm:$0xff] }
 0x1ad   : > { %v407_v15 = vpop.f32.mrf.mxu1 }
 0x1ae   : > { %v410_v16 = vmul.f32 0.35355338, %v407_v15 }
 0x1b0   : > { %v411_v17 = vsel %vm385_vm1, %v410_v16, -inf }
 0x1b1   : > { %412 = vmax.xlane.f32.xlu1 %v411_v17 }
 0x1b5   : > { %v539_v18 = vpop.f32.mrf.mxu1 }
 0x1b6   : > { %v542_v19 = vmul.f32 0.35355338, %v539_v18 }
 0x1b8   : > { %v543_v20 = vsel %vm385_vm1, %v542_v19, -inf }
 0x1b9   : > { %544 = vmax.xlane.f32.xlu0 %v543_v20 }
 0x1ba   : > { %v605_v24 = vpop.f32.mrf.mxu0 }
 0x1bb   : > { %v473_v21 = vpop.f32.mrf.mxu3  ;;  %v608_v25 = vmul.f32 0.35355338, %v605_v24 }
 0x1bc   : > { %v476_v22 = vmul.f32 0.35355338, %v473_v21 }
 0x1bd   : > { %v609_v26 = vsel %vm385_vm1, %v608_v25, -inf }
 0x1be   : > { %v477_v23 = vsel %vm385_vm1, %v476_v22, -inf }
 0x1bf   : > { %478 = vmax.xlane.f32.xlu2 %v477_v23 }
 0x1c7   : > { %610 = vmax.xlane.f32.xlu2 %v609_v26 }
 0x1cd   : > { %422 = vrot.lane.b32.xlu0 %v1314_v7, %s1139_s18 }
 0x1d5   : > { %620 = vrot.lane.b32.xlu0 %v1314_v7, %s1140_s9 }
 0x224   : > { %v413_v27 = vpop.xlane.xlu1 %412 }
 0x225   : > { %v414_v28 = vsub.f32 %v410_v16, %v413_v27 }
 0x227   : > { %v415_v29 = vmul.f32 1.442695, %v414_v28 }
 0x229   : > { %943 = vpow2.f32 %v415_v29 }
 0x22c   : > { %v545_v30 = vpop.xlane.xlu0 %544 }
 0x22d   : > { %v546_v31 = vsub.f32 %v542_v19, %v545_v30  ;;  %v1146_v19 = vmov 32.0  }
 0x22f   : > { %v944_v32 = vpop.eup %943  ;;  %v547_v33 = vmul.f32 1.442695, %v546_v31 }
 0x230   : > { %v417_v34 = vsel %vm385_vm1, %v944_v32, 0.0 }
 0x231   : > { %945 = vpow2.f32 %v547_v33  ;;  %418 = vadd.xlane.f32.xlu1 %v417_v34 }
 0x232   : > { %v479_v35 = vpop.xlane.xlu2 %478 }
 0x233   : > { %v480_v40 = vsub.f32 %v476_v22, %v479_v35 }
 0x235   : > { %v481_v43 = vmul.f32 1.442695, %v480_v40 }
 0x237   : > { %v946_v36 = vpop.eup %945 }
 0x238   : > { %v549_v37 = vsel %vm385_vm1, %v946_v36, 0.0 }
 0x239   : > { %550 = vadd.xlane.f32.xlu1 %v549_v37 }
 0x23a   : > { %v611_v38 = vpop.xlane.xlu2 %610 }
 0x23b   : > { %v612_v39 = vsub.f32 %v608_v25, %v611_v38 }
 0x23d   : > { %v613_v41 = vmul.f32 1.442695, %v612_v39  ;;  %v941_v39 = vld [vmem:[#allocation6] ss:$0 sm:$0xff] }
 0x23f   : > { %947 = vpow2.f32 %v613_v41  ;;  %v423_v42 = vpop.permute.xlu0 %422  ;;  %v942_v41 = vld [vmem:[#allocation7] ss:$0 sm:$0xff] }
 0x240   : > { %443 = vmatpush.msra.mxu2 %v423_v42  ;;  %949 = vpow2.f32 %v481_v43 }
 0x245   : > { %v948_v44 = vpop.eup %947 }
 0x246   : > { %v615_v45 = vsel %vm385_vm1, %v948_v44, 0.0  ;;  %v950_v46 = vpop.eup %949 }
 0x247   : > { %616 = vadd.xlane.f32.xlu2 %v615_v45  ;;  %v483_v47 = vsel %vm385_vm1, %v950_v46, 0.0  ;;  %v621_v55 = vpop.permute.xlu0 %620 }
 0x24f   : > { %484 = vadd.xlane.f32.xlu2 %v483_v47 }
 0x252   : > { %488 = vrot.lane.b32.xlu1 %v1314_v7, %s1141_s19 }
 0x267   : > { %554 = vrot.lane.b32.xlu2 %v1314_v7, %s1142_s20  ;;  %v375_v7 = vld [vmem:[#allocation4] sm:$0xff] }
 0x268   : > { %684 = vmatpush.msra.mxu1 %v375_v7 }
 0x2a4   : > { %v419_v48 = vpop.xlane.xlu1 %418 }
 0x2a5   : > { %951 = vrcp.f32 %v419_v48 }
 0x2ab   : > { %v952_v49 = vpop.eup %951 }
 0x2ac   : > { %v421_v50 = vmul.f32 %v952_v49, %v944_v32  ;;  %v551_v52 = vpop.xlane.xlu1 %550 }
 0x2ad   : > { %953 = vrcp.f32 %v551_v52 }
 0x2ae   : > { %839 = vmatmul.msk.f32.vlgmr.msra.gmra.mxu2 %vm385_vm1, %v421_v50 }
 0x2b3   : > { %v954_v56 = vpop.eup %953 }
 0x2b4   : > { %v553_v60 = vmul.f32 %v954_v56, %v946_v36 }
 0x2ba   : > { %v617_v51 = vpop.xlane.xlu2 %616 }
 0x2c2   : > { %v485_v53 = vpop.xlane.xlu2 %484 }
 0x2c3   : > { %955 = vrcp.f32 %v485_v53 }
 0x2c4   : > { %v489_v54 = vpop.permute.xlu1 %488  ;;  %957 = vrcp.f32 %v617_v51 }
 0x2c5   : > { %509 = vmatpush.msrb.mxu2 %v489_v54  ;;  %959 = vrcp.f32 %v1146_v19 }
 0x2c7   : > { %641 = vmatpush.msra.mxu2 %v621_v55 }
 0x2c9   : > { %v956_v57 = vpop.eup %955 }
 0x2ca   : > { %v555_v58 = vpop.permute.xlu2 %554  ;;  %v487_v59 = vmul.f32 %v956_v57, %v950_v46  ;;  %v958_v61 = vpop.eup %957 }
 0x2cb   : > { %575 = vmatpush.msrb.mxu3 %v555_v58  ;;  %v619_v62 = vmul.f32 %v958_v61, %v948_v44  ;;  %v960_v20 = vpop.eup %959 }
 0x2cc   : > { %842 = vmatmul.msk.f32.vlgmr.msrb.gmra.mxu2 %vm385_vm1, %v487_v59  ;;  %845 = vmatmul.msk.f32.vlgmr.msrb.gmra.mxu3 %vm385_vm1, %v553_v60  ;;  %v694_v21 = vmul.f32 32.0, %v960_v20  ;;  %vm698_vm4 = vweird.f32 %v960_v20 }
 0x2ce   : > { %v695_v22 = vsub.f32 1.0, %v694_v21 }
 0x2d0   : > { %v696_v23 = vmul.f32 %v960_v20, %v695_v22 }
 0x2d2   : > { %v697_v24 = vadd.f32 %v960_v20, %v696_v23 }
 0x2d4   : > { %848 = vmatmul.msk.f32.vlgmr.msra.gmra.mxu2 %vm385_vm1, %v619_v62  ;;  %v699_v25 = vsel %vm698_vm4, %v960_v20, %v697_v24 }
 0x331   : > { %v445_v63 = vpop.f32.mrf.mxu2 }
 0x34f   : > { %v511_v0 = vpop.f32.mrf.mxu2  ;;  %v577_v1 = vpop.f32.mrf.mxu3 }
 0x350   : > { %651 = vrot.lane.b32.xlu1 %v577_v1, %s1143_s21  ;;  %647 = vrot.lane.b32.xlu0 %v511_v0, %s1144_s11 }
 0x357   : > { %v643_v2 = vpop.f32.mrf.mxu2 }
 0x358   : > { %655 = vrot.lane.b32.xlu0 %v643_v2, %s1145_s24 }
 0x3c2   : > { %v648_v8 = vpop.permute.xlu0 %647  ;;  %v652_v9 = vpop.permute.xlu1 %651 }
 0x3c3   : > { %v658_v10 = vsel %vm385_vm1, %v445_v63, %v648_v8 }
 0x3c4   : > { %v660_v11 = vsel %vm659_vm2, %v658_v10, %v652_v9 }
 0x3ca   : > { %v656_v12 = vpop.permute.xlu0 %655 }
 0x3cb   : > { %v662_v13 = vsel %vm661_vm3, %v660_v11, %v656_v12 }
 0x3cc   : > { %849 = vmatmul.msk.f32.vlgmr.msra.gmra.mxu1 %vm351_vm0, %v662_v13 }
 0x449   : > { %v686_v15 = vpop.f32.mrf.mxu1 }
 0x44a   : > { %v687_v16 = vadd.f32 %v940_v14, %v686_v15 }
 0x44c   : > { %v689_v17 = vadd.f32 %v687_v16, %v1307_v4 }
 0x44e   : > { %v690_v18 = vsel %vm351_vm0, %v689_v17, 0.0 }
 0x44f   : > { %691 = vadd.xlane.f32.xlu2 %v690_v18 }
 0x4c2   : > { %v692_v26 = vpop.xlane.xlu2 %691 }
 0x4c3   : > { %v700_v27 = vmul.f32 %v699_v25, %v692_v26 }
 0x4c5   : > { %v701_v28 = vsub.f32 %v689_v17, %v700_v27 }
 0x4c7   : > { %v702_v29 = vmul.f32 %v701_v28, %v701_v28 }
 0x4c9   : > { %v703_v4 = vsel %vm351_vm0, %v702_v29, 0.0 }
 0x4ca   : > { %704 = vadd.xlane.f32.xlu1 %v703_v4 }
 0x53d   : > { %v705_v30 = vpop.xlane.xlu1 %704 }
 0x53e   : > { %v706_v31 = vmul.f32 %v705_v30, %v699_v25 }
 0x540   : > { %v707_v32 = vadd.f32 1e-05, %v706_v31 }
 0x542   : > { %961 = vrsqrt.f32 %v707_v32  ;;  %vm714_vm6 = vweird.f32 %v707_v32 }
 0x548   : > { %v962_v33 = vpop.eup %961 }
 0x549   : > { %v709_v34 = vmul.f32 %v962_v33, %v707_v32  ;;  %vm715_vm5 = vweird.f32 %v962_v33 }
 0x54a   : > { %vm716_vm7 = vmor %vm714_vm6, %vm715_vm5 }
 0x54b   : > { %v710_v35 = vmul.f32 %v962_v33, %v709_v34 }
 0x54d   : > { %v711_v36 = vmul.f32 0.5, %v710_v35 }
 0x54f   : > { %v712_v37 = vsub.f32 1.5, %v711_v36 }
 0x551   : > { %v713_v38 = vmul.f32 %v962_v33, %v712_v37 }
 0x553   : > { %v717_v40 = vsel %vm716_vm7, %v962_v33, %v713_v38 }
 0x554   : > { %v718_v42 = vmul.f32 %v717_v40, %v701_v28 }
 0x556   : > { %v722_v43 = vmul.f32 %v941_v39, %v718_v42 }
 0x558   : > { %v726_v44 = vadd.f32 %v942_v41, %v722_v43 }
 0x55a   : > { %727 = vst.msk [vmem:[%s341_s12] sm:$0xff] %vm351_vm0, %v726_v44 }
 0x55b PF: > { %p19_p3 = scmp.ge.s32.totalorder %s1241_s29, 4   ;;  %s1387_s24 = smov %s1117_s25 }
 0x55c   : > { %s1388_s25 = smov %s1121_s26  ;;  %s1389_s26 = smov %s1252_s30 }
 0x55d   : > { %s1390_s27 = smov %s1241_s29  ;;  %21 = sbr.rel (!%p19_p3) target bundleno = 5 (0x5), region = 100 }
 0x562   :  { %747 = vsyncpa [#allocation3], 1 }
 0x563   :  { %749 = vsyncpa [#allocation3 + $0x1], 1 }
 0x564   :  { %750 = vsyncpa [#allocation5], 1 }
 0x565   :  { %751 = vsyncpa [#allocation8], 1 }

// kernel: decoder.9
= control target key start
LH: loop header
LB: loop body
LE: loop exit
PB: predicated region body
PF: predicated region fallthrough
CT: control target
= control target key end

     0   :  { %vm36_vm0 = vcmask 261120   ;;  %vm80_vm1 = vcmask 523264   ;;  %v208_v30 = vmov 32.0   ;;  %s317_s1 = inlined_call_operand.vmem [shape: f32[32,64], index: 1, kind: input, shape index: {}]   ;;  %s318_s3 = inlined_call_operand.vmem [shape: f32[64,32], index: 3, kind: input, shape index: {}]   ;;  %s319_s0 = inlined_call_operand.vmem [shape: f32[16,32], index: 0, kind: input, shape index: {}]   ;;  %s320_s2 = inlined_call_operand.vmem [shape: f32[1,64], index: 2, kind: input, shape index: {}]   ;;  %s321_s4 = inlined_call_operand.vmem [shape: f32[1,32], index: 4, kind: input, shape index: {}]   ;;  %s322_s5 = inlined_call_operand.vmem [shape: f32[1,32], index: 5, kind: input, shape index: {}]   ;;  %s323_s6 = inlined_call_operand.vmem [shape: f32[1,32], index: 6, kind: input, shape index: {}]   ;;  %s324_s7 = inlined_call_operand.vmem [shape: f32[16,32], index: 7, kind: output, shape index: {}]  }
   0x1   :  { %v31_v0 = vld [vmem:[%s317_s1 + $0x18] sm:$0xff]  ;;  %v30_v1 = vld [vmem:[%s317_s1 + $0x10] sm:$0xff]  ;;  %v29_v2 = vld [vmem:[%s317_s1 + $0x8] sm:$0xff]  ;;  %202 = vrcp.f32 %v208_v30 }
   0x2   :  { %55 = vmatpush.msra.mxu0 %v31_v0  ;;  %185 = vmatpush.msra.mxu3 %v31_v0  ;;  %v75_v3 = vld [vmem:[%s318_s3 + $0x38] sm:$0xff]  ;;  %v74_v4 = vld [vmem:[%s318_s3 + $0x30] sm:$0xff]  ;;  %v28_v5 = vld [vmem:[%s317_s1] sm:$0xff] }
   0x3   :  { %95 = vmatpush.msra.mxu1 %v75_v3  ;;  %189 = vmatpush.msra.mxu2 %v75_v3  ;;  %v26_v6 = vld [vmem:[%s319_s0] sm:$0xff]  ;;  %v27_v7 = vld [vmem:[%s319_s0 + $0x8] sm:$0xff]  ;;  %v71_v10 = vld [vmem:[%s318_s3 + $0x18] sm:$0xff] }
   0x4   :  { %56 = vmatpush.msra.mxu0 %v30_v1  ;;  %186 = vmatpush.msra.mxu3 %v30_v1  ;;  %v73_v8 = vld [vmem:[%s318_s3 + $0x28] sm:$0xff]  ;;  %v72_v9 = vld [vmem:[%s318_s3 + $0x20] sm:$0xff]  ;;  %v70_v11 = vld [vmem:[%s318_s3 + $0x10] sm:$0xff] }
   0x5   :  { %96 = vmatpush.msra.mxu1 %v74_v4  ;;  %190 = vmatpush.msra.mxu2 %v74_v4  ;;  %v69_v12 = vld [vmem:[%s318_s3 + $0x8] sm:$0xff]  ;;  %v68_v13 = vld [vmem:[%s318_s3] sm:$0xff] }
   0x6   :  { %57 = vmatpush.msra.mxu0 %v29_v2  ;;  %187 = vmatpush.msra.mxu3 %v29_v2  ;;  %v198_v14 = vld [vmem:[%s320_s2] ss:$0 sm:$0xff] }
   0x7   :  { %97 = vmatpush.msra.mxu1 %v73_v8  ;;  %191 = vmatpush.msra.mxu2 %v73_v8  ;;  %v199_v21 = vld [vmem:[%s321_s4] ss:$0 sm:$0xff]  ;;  %v203_v31 = vpop.eup %202 }
   0x8   :  { %58 = vmatpush.msra.mxu0 %v28_v5  ;;  %188 = vmatpush.msra.mxu3 %v28_v5  ;;  %v119_v32 = vmul.f32 32.0, %v203_v31  ;;  %vm123_vm2 = vweird.f32 %v203_v31  ;;  %v200_v59 = vld [vmem:[%s322_s5] ss:$0 sm:$0xff] }
   0x9   :  { %181 = vmatmul.msk.f32.vlgmr.msra.gmra.mxu0 %vm36_vm0, %v26_v6  ;;  %182 = vmatmul.msk.f32.vlgmr.msra.gmra.mxu3 %vm36_vm0, %v27_v7  ;;  %v201_v62 = vld [vmem:[%s323_s6] ss:$0 sm:$0xff] }
   0xa   :  { %98 = vmatpush.msra.mxu1 %v72_v9  ;;  %192 = vmatpush.msra.mxu2 %v72_v9  ;;  %v120_v33 = vsub.f32 1.0, %v119_v32 }
   0xc   :  { %99 = vmatpush.msra.mxu1 %v71_v10  ;;  %193 = vmatpush.msra.mxu2 %v71_v10  ;;  %v121_v34 = vmul.f32 %v203_v31, %v120_v33 }
   0xe   :  { %100 = vmatpush.msra.mxu1 %v70_v11  ;;  %194 = vmatpush.msra.mxu2 %v70_v11  ;;  %v122_v35 = vadd.f32 %v203_v31, %v121_v34 }
  0x10   :  { %101 = vmatpush.msra.mxu1 %v69_v12  ;;  %195 = vmatpush.msra.mxu2 %v69_v12  ;;  %v124_v36 = vsel %vm123_vm2, %v203_v31, %v122_v35 }
  0x12   :  { %102 = vmatpush.msra.mxu1 %v68_v13  ;;  %196 = vmatpush.msra.mxu2 %v68_v13 }
  0x86   :  { %v60_v15 = vpop.f32.mrf.mxu0 }
  0x87   :  { %v61_v16 = vadd.f32 %v198_v14, %v60_v15 }
  0x89   :  { %v66_v17 = vmax.f32 %v61_v16, 0.0 }
  0x8b   :  { %183 = vmatmul.msk.f32.vlgmr.msra.gmra.mxu1 %vm80_vm1, %v66_v17 }
  0x8c   :  { %v63_v18 = vpop.f32.mrf.mxu3 }
  0x8d   :  { %v64_v19 = vadd.f32 %v198_v14, %v63_v18 }
  0x8f   :  { %v67_v20 = vmax.f32 %v64_v19, 0.0 }
  0x91   :  { %184 = vmatmul.msk.f32.vlgmr.msra.gmra.mxu2 %vm80_vm1, %v67_v20 }
 0x108   :  { %v104_v22 = vpop.f32.mrf.mxu1 }
 0x109   :  { %v105_v23 = vadd.f32 %v199_v21, %v104_v22 }
 0x10b   :  { %v110_v24 = vadd.f32 %v105_v23, %v26_v6 }
 0x10d   :  { %v112_v25 = vsel %vm36_vm0, %v110_v24, 0.0 }
 0x10e   :  { %113 = vadd.xlane.f32.xlu0 %v112_v25 }
 0x114   :  { %v107_v26 = vpop.f32.mrf.mxu2 }
 0x115   :  { %v108_v27 = vadd.f32 %v199_v21, %v107_v26 }
 0x117   :  { %v111_v28 = vadd.f32 %v108_v27, %v27_v7 }
 0x119   :  { %v115_v29 = vsel %vm36_vm0, %v111_v28, 0.0 }
 0x11a   :  { %116 = vadd.xlane.f32.xlu0 %v115_v29 }
 0x181   :  { %v114_v37 = vpop.xlane.xlu0 %113 }
 0x182   :  { %v125_v38 = vmul.f32 %v124_v36, %v114_v37 }
 0x184   :  { %v127_v39 = vsub.f32 %v110_v24, %v125_v38 }
 0x186   :  { %v129_v40 = vmul.f32 %v127_v39, %v127_v39 }
 0x188   :  { %v131_v41 = vsel %vm36_vm0, %v129_v40, 0.0 }
 0x189   :  { %132 = vadd.xlane.f32.xlu1 %v131_v41 }
 0x18d   :  { %v117_v42 = vpop.xlane.xlu0 %116 }
 0x18e   :  { %v126_v43 = vmul.f32 %v124_v36, %v117_v42 }
 0x190   :  { %v128_v44 = vsub.f32 %v111_v28, %v126_v43 }
 0x192   :  { %v130_v45 = vmul.f32 %v128_v44, %v128_v44 }
 0x194   :  { %v134_v46 = vsel %vm36_vm0, %v130_v45, 0.0 }
 0x195   :  { %135 = vadd.xlane.f32.xlu1 %v134_v46 }
 0x1fc   :  { %v133_v47 = vpop.xlane.xlu1 %132 }
 0x1fd   :  { %v137_v48 = vmul.f32 %v133_v47, %v124_v36 }
 0x1ff   :  { %v139_v49 = vadd.f32 1e-05, %v137_v48 }
 0x201   :  { %204 = vrsqrt.f32 %v139_v49  ;;  %vm147_vm4 = vweird.f32 %v139_v49 }
 0x207   :  { %v205_v50 = vpop.eup %204 }
 0x208   :  { %v142_v51 = vmul.f32 %v205_v50, %v139_v49  ;;  %v136_v52 = vpop.xlane.xlu1 %135  ;;  %vm148_vm3 = vweird.f32 %v205_v50 }
 0x209   :  { %v138_v53 = vmul.f32 %v136_v52, %v124_v36  ;;  %vm149_vm5 = vmor %vm147_vm4, %vm148_vm3 }
 0x20a   :  { %v143_v54 = vmul.f32 %v205_v50, %v142_v51 }
 0x20b   :  { %v140_v55 = vadd.f32 1e-05, %v138_v53 }
 0x20c   :  { %v144_v56 = vmul.f32 0.5, %v143_v54 }
 0x20d   :  { %206 = vrsqrt.f32 %v140_v55  ;;  %vm157_vm7 = vweird.f32 %v140_v55 }
 0x20e   :  { %v145_v57 = vsub.f32 1.5, %v144_v56 }
 0x210   :  { %v146_v58 = vmul.f32 %v205_v50, %v145_v57 }
 0x212   :  { %v150_v60 = vsel %vm149_vm5, %v205_v50, %v146_v58 }
 0x213   :  { %v207_v61 = vpop.eup %206  ;;  %v161_v63 = vmul.f32 %v150_v60, %v127_v39 }
 0x214   :  { %v152_v0 = vmul.f32 %v207_v61, %v140_v55  ;;  %vm158_vm6 = vweird.f32 %v207_v61 }
 0x215   :  { %v167_v1 = vmul.f32 %v200_v59, %v161_v63  ;;  %vm159_vm8 = vmor %vm157_vm7, %vm158_vm6 }
 0x216   :  { %v153_v2 = vmul.f32 %v207_v61, %v152_v0 }
 0x217   :  { %v173_v3 = vadd.f32 %v201_v62, %v167_v1 }
 0x218   :  { %v154_v4 = vmul.f32 0.5, %v153_v2 }
 0x219   :  { %175 = vst.msk [vmem:[%s324_s7] sm:$0xff] %vm36_vm0, %v173_v3 }
 0x21a   :  { %v155_v5 = vsub.f32 1.5, %v154_v4 }
 0x21c   :  { %v156_v6 = vmul.f32 %v207_v61, %v155_v5 }
 0x21e   :  { %v160_v7 = vsel %vm159_vm8, %v207_v61, %v156_v6 }
 0x21f   :  { %v162_v8 = vmul.f32 %v160_v7, %v128_v44 }
 0x221   :  { %v168_v9 = vmul.f32 %v200_v59, %v162_v8 }
 0x223   :  { %v174_v10 = vadd.f32 %v201_v62, %v168_v9 }
 0x225   :  { %176 = vst.msk [vmem:[%s324_s7 + $0x8] sm:$0xff] %vm36_vm0, %v174_v10 }

// kernel: decoder.8
= control target key start
LH: loop header
LB: loop body
LE: loop exit
PB: predicated region body
PF: predicated region fallthrough
CT: control target
= control target key end

     0   :  { %15 = vsyncpa [#allocation3], 0  ;;  %s1267_s0 = inlined_call_operand.vmem [shape: f32[2,8,32], index: 0, kind: input, shape index: {}]   ;;  %s1268_s1 = inlined_call_operand.vmem [shape: f32[2,8,32], index: 1, kind: input, shape index: {}]   ;;  %s1269_s2 = inlined_call_operand.vmem [shape: f32[32,32], index: 2, kind: input, shape index: {}]   ;;  %s1270_s3 = inlined_call_operand.vmem [shape: f32[1,32], index: 3, kind: input, shape index: {}]   ;;  %s1271_s4 = inlined_call_operand.hbm [shape: f32[32,64], index: 4, kind: input, shape index: {}]   ;;  %s1272_s5 = inlined_call_operand.vmem [shape: f32[1,64], index: 5, kind: input, shape index: {}]   ;;  %s1273_s6 = inlined_call_operand.hbm [shape: f32[32,32], index: 6, kind: input, shape index: {}]   ;;  %s1274_s7 = inlined_call_operand.vmem [shape: f32[1,32], index: 7, kind: input, shape index: {}]   ;;  %s1275_s8 = inlined_call_operand.vmem [shape: f32[1,32], index: 8, kind: input, shape index: {}]   ;;  %s1276_s9 = inlined_call_operand.vmem [shape: f32[1,32], index: 9, kind: input, shape index: {}]   ;;  %s1277_s10 = inlined_call_operand.vmem [shape: f32[2,8,32], index: 10, kind: output, shape index: {}]  }
   0x1   :  { %16 = vsyncpa [#allocation5], 0  ;;  %s1152_s13 = smov 0  }
   0x2 LB: > { %s290_s16 = sshll.u32 %s1271_s4, 4  ;;  %s910_s17 = sadd.s32 4294967295, %s1080_s13   ;;  %s1080_s13 = sphi %s1152_s13, %s22_s13   ;;  %s291_s16 = int_to_ptr.hbm [resolvable:$true] %s290_s16 }
   0x3   : > { %p912_p0 = scmp.ge.s32.totalorder %s1080_s13, 1  ;;  %p273_p1 = scmp.lt.s32.totalorder %s1080_s13, 3 }
   0x4   : > { %p954_p2 = scmp.eq.s32.totalorder %s910_s17, 0  ;;  %s1082_s19 = smov [#allocation2]  }
   0x5   : > { %p1163_p3 = pnand %p912_p0, %p273_p1  ;;  %s292_s20 = sshll.u32 %s1082_s19, 4  ;;  %s293_s20 = int_to_ptr.vmem [resolvable:$true] %s292_s20 }
   0x6   : > { %s307_s23 = sshll.u32 %s1273_s6, 4  ;;  %s1083_s24 = smov [#allocation4]   ;;  %s308_s23 = int_to_ptr.hbm [resolvable:$true] %s307_s23 }
   0x7   : > { %p947_p4 = pneg %p1163_p3  ;;  %s309_s25 = sshll.u32 %s1083_s24, 4  ;;  %s310_s25 = int_to_ptr.vmem [resolvable:$true] %s309_s25 }
   0x8   : > { %s1084_s26 = smov 128   ;;  %s1085_s27 = smov 8  }
   0x9   : > { %p948_p5 = pnand %p954_p2, %p947_p4  ;;  %348 = sbr.rel (%p1163_p3) target bundleno = 1607 (0x647), region = 60 }
   0xb   : > { %950 = dma.hbm_to_vmem [thread:$0]  (!%p948_p5), %s291_s16, 512, %s293_s20, [#allocation3], %s1084_s26, %s1084_s26, %s1085_s27  }
   0xc   : > { %953 = dma.hbm_to_vmem [thread:$0]  (!%p948_p5), %s308_s23, 512, %s310_s25, [#allocation5], %s1084_s26, %s1084_s26, %s1085_s27  }
   0xe   : > { %1071 = dma.done.wait (%p954_p2), [#allocation3], 512  }
   0xf   : > { %1073 = vsyncadd (%p954_p2), [#allocation3], 4294966784 }
  0x10   : > { %1075 = dma.done.wait (%p954_p2), [#allocation5], 512  }
  0x11   : > { %1077 = vsyncadd (%p954_p2), [#allocation5], 4294966784  ;;  %p394_p6 = scmp.lt.s32.totalorder %s910_s17, 1  ;;  %v411_v0 = vld [vmem:[%s1269_s2 + $0x18] sm:$0xff]  ;;  %v410_v2 = vld [vmem:[%s1269_s2 + $0x10] sm:$0xff]  ;;  %vm416_vm0 = vcmask 261120  }
  0x12   : > { %v443_v1 = vld [vmem:[#allocation2 + $0x18] sm:$0xff]  ;;  %432 = vmatpush.msra.mxu0 %v411_v0  ;;  %v442_v3 = vld [vmem:[#allocation2 + $0x10] sm:$0xff]  ;;  %v409_v4 = vld [vmem:[%s1269_s2 + $0x8] sm:$0xff]  ;;  %vm478_vm1 = vcmask 64512   ;;  %s1086_s29 = smov 96   ;;  %s1087_s30 = smov 120  }
  0x13   : > { %s1280_s17 = smov (!%p394_p6, %s910_s17), 1  ;;  %463 = vmatpush.msra.mxu1 %v443_v1  ;;  %v441_v5 = vld [vmem:[#allocation2 + $0x8] sm:$0xff]  ;;  %v408_v6 = vld [vmem:[%s1269_s2] sm:$0xff]  ;;  %s1088_s11 = smov 104   ;;  %vm754_vm2 = vcmask 130048   ;;  %vm756_vm3 = vcmask 195584  }
  0x14   : > { %s1179_s28 = sshll.u32 %s1280_s17, 3  ;;  %433 = vmatpush.msra.mxu0 %v410_v2  ;;  %v440_v7 = vld [vmem:[#allocation2] sm:$0xff]  ;;  %s1089_s12 = smov 112  }
  0x15   : > { %s397_s18 = scalar_lea.vmem %s1267_s0, %s1179_s28  ;;  %s401_s21 = scalar_lea.vmem %s1268_s1, %s1179_s28  ;;  %464 = vmatpush.msra.mxu1 %v442_v3  ;;  %v981_v10 = vld [vmem:[%s1270_s3] ss:$0 sm:$0xff] }
  0x16   : > { %434 = vmatpush.msra.mxu0 %v409_v4  ;;  %v1201_v8 = vld [vmem:[%s397_s18] sm:$0xff]  ;;  %s1090_s14 = smov 72   ;;  %s1091_s15 = smov 88  }
  0x17   : > { %465 = vmatpush.msra.mxu1 %v441_v5  ;;  %v407_v9 = vld [vmem:[%s401_s21] sm:$0xff]  ;;  %s1092_s16 = smov 80   ;;  %s1093_s17 = smov 8  }
  0x18   : > { %435 = vmatpush.msra.mxu0 %v408_v6  ;;  %v982_v11 = vld [vmem:[%s1272_s5] ss:$0 sm:$0xff]  ;;  %s1094_s18 = smov 24   ;;  %s1095_s19 = smov 16  }
  0x19   : > { %466 = vmatpush.msra.mxu1 %v440_v7  ;;  %922 = vmatmul.msk.f32.vlgmr.msra.gmra.mxu0 %vm416_vm0, %v1201_v8 }
  0x1a   : > { %923 = vmatmul.msk.f32.vlgmr.msra.gmra.mxu1 %vm416_vm0, %v407_v9 }
  0x96   : > { %v437_v12 = vpop.f32.mrf.mxu0 }
  0x97   : > { %v468_v13 = vpop.f32.mrf.mxu1  ;;  %v438_v14 = vadd.f32 %v981_v10, %v437_v12  ;;  %v473_v12 = vld [vmem:[#allocation4 + $0x10] sm:$0xff] }
  0x98   : > { %v1212_v15 = vadd.f32 %v982_v11, %v468_v13  ;;  %v474_v11 = vld [vmem:[#allocation4 + $0x18] sm:$0xff]  ;;  %v472_v13 = vld [vmem:[#allocation4 + $0x8] sm:$0xff] }
  0x99   : > { %543 = vrot.lane.b32.xlu2 %v438_v14, %s1087_s30 }
  0x9a   : > { %517 = vrot.lane.b32.xlu1 %v1212_v15, %s1086_s29  ;;  %924 = vmatpush.xpose.msk.msra.mxu2 %vm478_vm1, %v1212_v15  ;;  %s405_s29 = scalar_lea.vmem %s1277_s10, %s1179_s28 }
  0x9d   : > { %925 = vmatmul.msk.f32.vlgmr.msra.gmra.mxu2 %vm478_vm1, %v438_v14 }
  0xa1   : > { %677 = vrot.lane.b32.xlu2 %v1212_v15, %s1088_s11 }
  0xa2   : > { %545 = vrot.lane.b32.xlu1 %v1212_v15, %s1087_s30 }
  0xa9   : > { %609 = vrot.lane.b32.xlu2 %v438_v14, %s1089_s12 }
  0xaa   : > { %611 = vrot.lane.b32.xlu1 %v1212_v15, %s1089_s12 }
  0xf3   : > { %v544_v16 = vpop.permute.xlu2 %543 }
  0xfb   : > { %v678_v19 = vpop.permute.xlu2 %677 }
 0x103   : > { %v610_v21 = vpop.permute.xlu2 %609 }
 0x10c   : > { %v518_v17 = vpop.permute.xlu1 %517 }
 0x10d   : > { %538 = vmatpush.msra.mxu3 %v518_v17 }
 0x114   : > { %v546_v18 = vpop.permute.xlu1 %545 }
 0x115   : > { %927 = vmatpush.xpose.msk.msrb.mxu3 %vm478_vm1, %v546_v18 }
 0x11c   : > { %v612_v20 = vpop.permute.xlu1 %611 }
 0x11d   : > { %930 = vmatpush.xpose.msk.msrb.mxu0 %vm478_vm1, %v612_v20 }
 0x120   : > { %v502_v22 = vpop.f32.mrf.mxu2  ;;  %931 = vmatmul.msk.f32.vlgmr.msrb.gmra.mxu0 %vm478_vm1, %v610_v21  ;;  %v983_v21 = vld [vmem:[%s1274_s7] ss:$0 sm:$0xff] }
 0x121   : > { %v505_v23 = vmul.f32 0.35355338, %v502_v22  ;;  %776 = vmatpush.msra.mxu0 %v474_v11 }
 0x123   : > { %v506_v24 = vsel %vm478_vm1, %v505_v23, -inf  ;;  %777 = vmatpush.msra.mxu0 %v473_v12 }
 0x124   : > { %507 = vmax.xlane.f32.xlu0 %v506_v24 }
 0x125   : > { %778 = vmatpush.msra.mxu0 %v472_v13 }
 0x197   : > { %v508_v25 = vpop.xlane.xlu0 %507 }
 0x198   : > { %v509_v26 = vsub.f32 %v505_v23, %v508_v25 }
 0x19a   : > { %v510_v27 = vmul.f32 1.442695, %v509_v26  ;;  %v1096_v26 = vmov 32.0  }
 0x19c   : > { %986 = vpow2.f32 %v510_v27 }
 0x19d   : > { %v634_v30 = vpop.f32.mrf.mxu0 }
 0x19e   : > { %v637_v31 = vmul.f32 0.35355338, %v634_v30 }
 0x1a0   : > { %v638_v32 = vsel %vm478_vm1, %v637_v31, -inf }
 0x1a2   : > { %v987_v28 = vpop.eup %986 }
 0x1a3   : > { %v512_v29 = vsel %vm478_vm1, %v987_v28, 0.0 }
 0x1a4   : > { %513 = vadd.xlane.f32.xlu0 %v512_v29 }
 0x1b8   : > { %675 = vrot.lane.b32.xlu0 %v438_v14, %s1088_s11  ;;  %v471_v14 = vld [vmem:[#allocation4] sm:$0xff] }
 0x1b9   : > { %779 = vmatpush.msra.mxu0 %v471_v14 }
 0x1e2   : > { %639 = vmax.xlane.f32.xlu0 %v638_v32 }
 0x1f6   : > { %715 = vrot.lane.b32.xlu0 %v1212_v15, %s1090_s14 }
 0x217   : > { %v514_v33 = vpop.xlane.xlu0 %513 }
 0x218   : > { %988 = vrcp.f32 %v514_v33 }
 0x21e   : > { %v989_v34 = vpop.eup %988 }
 0x21f   : > { %v516_v35 = vmul.f32 %v989_v34, %v987_v28 }
 0x221   : > { %926 = vmatmul.msk.f32.vlgmr.msra.gmra.mxu3 %vm478_vm1, %v516_v35 }
 0x222   : > { %933 = vmatpush.xpose.msk.msra.mxu3 %vm478_vm1, %v678_v19 }
 0x229   : > { %928 = vmatmul.msk.f32.vlgmr.msrb.gmra.mxu3 %vm478_vm1, %v544_v16 }
 0x22a   : > { %v676_v36 = vpop.permute.xlu0 %675 }
 0x231   : > { %934 = vmatmul.msk.f32.vlgmr.msra.gmra.mxu3 %vm478_vm1, %v676_v36 }
 0x255   : > { %v640_v37 = vpop.xlane.xlu0 %639 }
 0x256   : > { %v641_v39 = vsub.f32 %v637_v31, %v640_v37 }
 0x258   : > { %v642_v40 = vmul.f32 1.442695, %v641_v39 }
 0x25a   : > { %990 = vpow2.f32 %v642_v40 }
 0x260   : > { %v991_v44 = vpop.eup %990 }
 0x261   : > { %v644_v48 = vsel %vm478_vm1, %v991_v44, 0.0 }
 0x268   : > { %v716_v1 = vpop.permute.xlu0 %715 }
 0x2a4   : > { %v1232_v38 = vpop.f32.mrf.mxu3 }
 0x2ac   : > { %v568_v41 = vpop.f32.mrf.mxu3 }
 0x2ad   : > { %v571_v42 = vmul.f32 0.35355338, %v568_v41 }
 0x2af   : > { %v572_v43 = vsel %vm478_vm1, %v571_v42, -inf }
 0x2b0   : > { %573 = vmax.xlane.f32.xlu1 %v572_v43 }
 0x2b4   : > { %v700_v45 = vpop.f32.mrf.mxu3 }
 0x2b5   : > { %v703_v46 = vmul.f32 0.35355338, %v700_v45 }
 0x2b7   : > { %v704_v47 = vsel %vm478_vm1, %v703_v46, -inf }
 0x2b8   : > { %705 = vmax.xlane.f32.xlu2 %v704_v47  ;;  %645 = vadd.xlane.f32.xlu1 %v644_v48  ;;  %v985_v48 = vld [vmem:[%s1276_s9] ss:$0 sm:$0xff] }
 0x323   : > { %v574_v49 = vpop.xlane.xlu1 %573 }
 0x324   : > { %v575_v50 = vsub.f32 %v571_v42, %v574_v49 }
 0x326   : > { %v576_v51 = vmul.f32 1.442695, %v575_v50 }
 0x328   : > { %992 = vpow2.f32 %v576_v51 }
 0x32b   : > { %v706_v52 = vpop.xlane.xlu2 %705  ;;  %v646_v59 = vpop.xlane.xlu1 %645 }
 0x32c   : > { %v707_v53 = vsub.f32 %v703_v46, %v706_v52  ;;  %v984_v46 = vld [vmem:[%s1275_s8] ss:$0 sm:$0xff] }
 0x32e   : > { %v993_v54 = vpop.eup %992  ;;  %v708_v55 = vmul.f32 1.442695, %v707_v53 }
 0x32f   : > { %v578_v56 = vsel %vm478_vm1, %v993_v54, 0.0 }
 0x330   : > { %994 = vpow2.f32 %v708_v55  ;;  %579 = vadd.xlane.f32.xlu2 %v578_v56 }
 0x336   : > { %v995_v57 = vpop.eup %994 }
 0x337   : > { %v710_v58 = vsel %vm478_vm1, %v995_v57, 0.0 }
 0x338   : > { %711 = vadd.xlane.f32.xlu1 %v710_v58 }
 0x348   : > { %583 = vrot.lane.b32.xlu2 %v1212_v15, %s1091_s15 }
 0x351   : > { %649 = vrot.lane.b32.xlu1 %v1212_v15, %s1092_s16 }
 0x3a3   : > { %v580_v60 = vpop.xlane.xlu2 %579 }
 0x3a4   : > { %996 = vrcp.f32 %v580_v60 }
 0x3aa   : > { %v997_v61 = vpop.eup %996 }
 0x3ab   : > { %v584_v62 = vpop.permute.xlu2 %583  ;;  %v712_v63 = vpop.xlane.xlu1 %711  ;;  %v582_v0 = vmul.f32 %v997_v61, %v993_v54 }
 0x3ac   : > { %998 = vrcp.f32 %v712_v63  ;;  %604 = vmatpush.msrb.mxu2 %v584_v62 }
 0x3ad   : > { %929 = vmatmul.msk.f32.vlgmr.msrb.gmra.mxu2 %vm478_vm1, %v582_v0  ;;  %1000 = vrcp.f32 %v646_v59 }
 0x3ae   : > { %736 = vmatpush.msra.mxu2 %v716_v1  ;;  %1002 = vrcp.f32 %v1096_v26 }
 0x3b2   : > { %v999_v2 = vpop.eup %998 }
 0x3b3   : > { %v714_v3 = vmul.f32 %v999_v2, %v995_v57  ;;  %v1001_v4 = vpop.eup %1000 }
 0x3b4   : > { %v648_v6 = vmul.f32 %v1001_v4, %v991_v44  ;;  %v1003_v27 = vpop.eup %1002 }
 0x3b5   : > { %935 = vmatmul.msk.f32.vlgmr.msra.gmra.mxu2 %vm478_vm1, %v714_v3  ;;  %v789_v28 = vmul.f32 32.0, %v1003_v27  ;;  %vm793_vm4 = vweird.f32 %v1003_v27 }
 0x3b7   : > { %v790_v29 = vsub.f32 1.0, %v789_v28 }
 0x3b9   : > { %v791_v30 = vmul.f32 %v1003_v27, %v790_v29 }
 0x3bb   : > { %v792_v31 = vadd.f32 %v1003_v27, %v791_v30 }
 0x3bd   : > { %v794_v32 = vsel %vm793_vm4, %v1003_v27, %v792_v31 }
 0x3c3   : > { %v650_v5 = vpop.permute.xlu1 %649 }
 0x3c4   : > { %670 = vmatpush.msrb.mxu1 %v650_v5 }
 0x3c5   : > { %932 = vmatmul.msk.f32.vlgmr.msrb.gmra.mxu1 %vm478_vm1, %v648_v6 }
 0x430   : > { %v606_v7 = vpop.f32.mrf.mxu2 }
 0x431   : > { %742 = vrot.lane.b32.xlu2 %v606_v7, %s1093_s17 }
 0x438   : > { %v738_v9 = vpop.f32.mrf.mxu2 }
 0x439   : > { %750 = vrot.lane.b32.xlu2 %v738_v9, %s1094_s18 }
 0x442   : > { %v672_v10 = vpop.f32.mrf.mxu1 }
 0x443   : > { %746 = vrot.lane.b32.xlu0 %v672_v10, %s1095_s19 }
 0x48b   : > { %v743_v15 = vpop.permute.xlu2 %742 }
 0x48c   : > { %v753_v16 = vsel %vm478_vm1, %v1232_v38, %v743_v15 }
 0x493   : > { %v751_v18 = vpop.permute.xlu2 %750 }
 0x4b5   : > { %v747_v17 = vpop.permute.xlu0 %746 }
 0x4b6   : > { %v755_v19 = vsel %vm754_vm2, %v753_v16, %v747_v17 }
 0x4b7   : > { %v757_v20 = vsel %vm756_vm3, %v755_v19, %v751_v18 }
 0x4b8   : > { %936 = vmatmul.msk.f32.vlgmr.msra.gmra.mxu0 %vm416_vm0, %v757_v20 }
 0x535   : > { %v781_v22 = vpop.f32.mrf.mxu0 }
 0x536   : > { %v782_v23 = vadd.f32 %v983_v21, %v781_v22 }
 0x538   : > { %v784_v24 = vadd.f32 %v782_v23, %v1201_v8 }
 0x53a   : > { %v785_v25 = vsel %vm416_vm0, %v784_v24, 0.0 }
 0x53b   : > { %786 = vadd.xlane.f32.xlu0 %v785_v25 }
 0x5ae   : > { %v787_v33 = vpop.xlane.xlu0 %786 }
 0x5af   : > { %v795_v34 = vmul.f32 %v794_v32, %v787_v33 }
 0x5b1   : > { %v796_v35 = vsub.f32 %v784_v24, %v795_v34 }
 0x5b3   : > { %v797_v36 = vmul.f32 %v796_v35, %v796_v35 }
 0x5b5   : > { %v798_v37 = vsel %vm416_vm0, %v797_v36, 0.0 }
 0x5b6   : > { %799 = vadd.xlane.f32.xlu1 %v798_v37 }
 0x629   : > { %v800_v8 = vpop.xlane.xlu1 %799 }
 0x62a   : > { %v801_v38 = vmul.f32 %v800_v8, %v794_v32 }
 0x62c   : > { %v802_v39 = vadd.f32 1e-05, %v801_v38 }
 0x62e   : > { %1004 = vrsqrt.f32 %v802_v39  ;;  %vm809_vm6 = vweird.f32 %v802_v39 }
 0x634   : > { %v1005_v40 = vpop.eup %1004 }
 0x635   : > { %v804_v41 = vmul.f32 %v1005_v40, %v802_v39  ;;  %vm810_vm5 = vweird.f32 %v1005_v40 }
 0x636   : > { %vm811_vm7 = vmor %vm809_vm6, %vm810_vm5 }
 0x637   : > { %v805_v42 = vmul.f32 %v1005_v40, %v804_v41 }
 0x639   : > { %v806_v43 = vmul.f32 0.5, %v805_v42 }
 0x63b   : > { %v807_v44 = vsub.f32 1.5, %v806_v43 }
 0x63d   : > { %v808_v45 = vmul.f32 %v1005_v40, %v807_v44 }
 0x63f   : > { %v812_v47 = vsel %vm811_vm7, %v1005_v40, %v808_v45 }
 0x640   : > { %v813_v49 = vmul.f32 %v812_v47, %v796_v35 }
 0x642   : > { %v817_v50 = vmul.f32 %v984_v46, %v813_v49 }
 0x644   : > { %v821_v51 = vadd.f32 %v985_v48, %v817_v50 }
 0x646   : > { %822 = vst.msk [vmem:[%s405_s29] sm:$0xff] %vm416_vm0, %v821_v51 }
 0x647 PF: > { %s22_s13 = sadd.s32 1, %s1080_s13  }
 0x648   : > { %p19_p7 = scmp.ge.s32.totalorder %s22_s13, 4  }
 0x64a   :  { %21 = sbr.rel (!%p19_p7) target bundleno = 2 (0x2), region = 102 }
 0x64f   :  { %842 = vsyncpa [#allocation3], 1 }
 0x650   :  { %844 = vsyncpa [#allocation3 + $0x1], 1 }
 0x651   :  { %845 = vsyncpa [#allocation5], 1 }

// kernel: decoder.10
= control target key start
LH: loop header
LB: loop body
LE: loop exit
PB: predicated region body
PF: predicated region fallthrough
CT: control target
= control target key end

     0   :  { %s846_s24 = smov 0   ;;  %s950_s0 = inlined_call_operand.vmem [shape: f32[2,8,32], index: 0, kind: input, shape index: {}]   ;;  %s951_s1 = inlined_call_operand.vmem [shape: f32[32,96], index: 1, kind: input, shape index: {}]   ;;  %s952_s2 = inlined_call_operand.vmem [shape: f32[1,96], index: 2, kind: input, shape index: {}]   ;;  %s953_s3 = inlined_call_operand.vmem [shape: f32[32,32], index: 3, kind: input, shape index: {}]   ;;  %s954_s4 = inlined_call_operand.vmem [shape: f32[1,32], index: 4, kind: input, shape index: {}]   ;;  %s955_s5 = inlined_call_operand.vmem [shape: f32[1,32], index: 5, kind: input, shape index: {}]   ;;  %s956_s6 = inlined_call_operand.vmem [shape: f32[1,32], index: 6, kind: input, shape index: {}]   ;;  %s957_s7 = inlined_call_operand.vmem [shape: f32[2,8,32], index: 7, kind: output, shape index: {}]  }
   0x1 LB: > { %s713_s25 = sadd.s32 4294967295, %s789_s24   ;;  %p717_p0 = scmp.ge.s32.totalorder %s789_s24, 1  ;;  %s789_s24 = sphi %s846_s24, %s17_s24  }
   0x2   : > { %p236_p1 = scmp.lt.s32.totalorder %s789_s24, 3 }
   0x4   : > { %p237_p2 = pnand %p717_p0, %p236_p1 }
   0x5   : > { %p266_p3 = scmp.lt.s32.totalorder (!%p237_p2), %s713_s25, 1  ;;  %s791_s17 = smov (!%p237_p2), 72  }
   0x6   : > { %240 = sbr.rel (%p237_p2) target bundleno = 1333 (0x535), region = 48  ;;  %s792_s18 = smov (!%p237_p2), 120  }
   0x7   : > { %s793_s19 = smov (!%p237_p2), 96   ;;  %s794_s20 = smov (!%p237_p2), 112  }
   0x8   : > { %s795_s21 = smov (!%p237_p2), 80   ;;  %s796_s22 = smov (!%p237_p2), 88  }
   0x9   : > { %s797_s23 = smov (!%p237_p2), 104   ;;  %s798_s26 = smov (!%p237_p2), 64  }
   0xa   : > { %s799_s27 = smov (!%p237_p2), 40   ;;  %s800_s28 = smov (!%p237_p2), 56  }
   0xb   : > { %v278_v0 = vld [vmem:[%s951_s1 + $0x18] sm:$0xff]  ;;  %v277_v1 = vld [vmem:[%s951_s1 + $0x10] sm:$0xff]  ;;  %v276_v2 = vld [vmem:[%s951_s1 + $0x8] sm:$0xff]  ;;  %s959_s25 = smov (!%p266_p3, %s713_s25), 1  ;;  %vm283_vm0 = vcmask 261120   ;;  %vm317_vm1 = vcmask 64512  }
   0xc   : > { %299 = vmatpush.msra.mxu0 %v278_v0  ;;  %v275_v3 = vld [vmem:[%s951_s1] sm:$0xff]  ;;  %s718_s11 = sshll.u32 %s959_s25, 3  ;;  %s801_s29 = smov 48   ;;  %vm591_vm2 = vcmask 130048   ;;  %vm593_vm3 = vcmask 195584  }
   0xd   : > { %s269_s14 = scalar_lea.vmem %s950_s0, %s718_s11  ;;  %v759_v5 = vld [vmem:[%s952_s2] ss:$0 sm:$0xff]  ;;  %s802_s30 = smov 16  }
   0xe   : > { %300 = vmatpush.msra.mxu0 %v277_v1  ;;  %v874_v4 = vld [vmem:[%s269_s14] sm:$0xff]  ;;  %s803_s8 = smov 8   ;;  %s804_s9 = smov 24  }
  0x10   : > { %301 = vmatpush.msra.mxu0 %v276_v2 }
  0x12   : > { %302 = vmatpush.msra.mxu0 %v275_v3  ;;  %v310_v3 = vld [vmem:[%s953_s3 + $0x18] sm:$0xff] }
  0x13   : > { %720 = vmatmul.msk.f32.vlgmr.msra.gmra.mxu0 %vm283_vm0, %v874_v4 }
  0x90   : > { %v304_v6 = vpop.f32.mrf.mxu0 }
  0x91   : > { %v881_v7 = vadd.f32 %v759_v5, %v304_v6  ;;  %v309_v5 = vld [vmem:[%s953_s3 + $0x10] sm:$0xff]  ;;  %v308_v6 = vld [vmem:[%s953_s3 + $0x8] sm:$0xff] }
  0x93   : > { %514 = vrot.lane.b32.xlu2 %v881_v7, %s791_s17  ;;  %380 = vrot.lane.b32.xlu1 %v881_v7, %s792_s18 }
  0x94   : > { %315 = vrot.lane.b32.xlu0 %v881_v7, %s793_s19 }
  0x9b   : > { %446 = vrot.lane.b32.xlu2 %v881_v7, %s794_s20  ;;  %448 = vrot.lane.b32.xlu1 %v881_v7, %s795_s21 }
  0x9c   : > { %382 = vrot.lane.b32.xlu0 %v881_v7, %s796_s22 }
  0xa4   : > { %512 = vrot.lane.b32.xlu0 %v881_v7, %s797_s23 }
  0xed   : > { %v515_v8 = vpop.permute.xlu2 %514 }
  0xee   : > { %730 = vmatpush.xpose.msk.msrb.mxu0 %vm317_vm1, %v515_v8 }
  0xf5   : > { %v447_v13 = vpop.permute.xlu2 %446 }
 0x105   : > { %v381_v9 = vpop.permute.xlu1 %380 }
 0x106   : > { %v316_v10 = vpop.permute.xlu0 %315 }
 0x107   : > { %721 = vmatpush.xpose.msk.msra.mxu1 %vm317_vm1, %v316_v10 }
 0x10a   : > { %722 = vmatmul.msk.f32.vlgmr.msra.gmra.mxu1 %vm317_vm1, %v881_v7 }
 0x10d   : > { %v449_v11 = vpop.permute.xlu1 %448 }
 0x10e   : > { %v383_v12 = vpop.permute.xlu0 %382  ;;  %727 = vmatpush.xpose.msk.msrb.mxu1 %vm317_vm1, %v449_v11 }
 0x10f   : > { %724 = vmatpush.xpose.msk.msra.mxu3 %vm317_vm1, %v383_v12 }
 0x112   : > { %725 = vmatmul.msk.f32.vlgmr.msra.gmra.mxu3 %vm317_vm1, %v381_v9  ;;  %728 = vmatmul.msk.f32.vlgmr.msrb.gmra.mxu1 %vm317_vm1, %v447_v13 }
 0x113   : > { %613 = vmatpush.msra.mxu1 %v310_v3 }
 0x115   : > { %614 = vmatpush.msra.mxu1 %v309_v5 }
 0x116   : > { %v513_v14 = vpop.permute.xlu0 %512 }
 0x117   : > { %731 = vmatmul.msk.f32.vlgmr.msrb.gmra.mxu0 %vm317_vm1, %v513_v14  ;;  %615 = vmatpush.msra.mxu1 %v308_v6  ;;  %v760_v14 = vld [vmem:[%s954_s4] ss:$0 sm:$0xff] }
 0x187   : > { %v339_v15 = vpop.f32.mrf.mxu1 }
 0x188   : > { %v342_v16 = vmul.f32 0.35355338, %v339_v15 }
 0x18a   : > { %v343_v17 = vsel %vm317_vm1, %v342_v16, -inf }
 0x18b   : > { %344 = vmax.xlane.f32.xlu1 %v343_v17 }
 0x18f   : > { %v471_v18 = vpop.f32.mrf.mxu1 }
 0x190   : > { %v474_v19 = vmul.f32 0.35355338, %v471_v18 }
 0x192   : > { %v475_v20 = vsel %vm317_vm1, %v474_v19, -inf }
 0x193   : > { %476 = vmax.xlane.f32.xlu0 %v475_v20 }
 0x194   : > { %v537_v24 = vpop.f32.mrf.mxu0 }
 0x195   : > { %v405_v21 = vpop.f32.mrf.mxu3  ;;  %v540_v25 = vmul.f32 0.35355338, %v537_v24 }
 0x196   : > { %v408_v22 = vmul.f32 0.35355338, %v405_v21 }
 0x197   : > { %v541_v26 = vsel %vm317_vm1, %v540_v25, -inf }
 0x198   : > { %v409_v23 = vsel %vm317_vm1, %v408_v22, -inf }
 0x199   : > { %410 = vmax.xlane.f32.xlu2 %v409_v23 }
 0x1a1   : > { %542 = vmax.xlane.f32.xlu2 %v541_v26 }
 0x1a7   : > { %354 = vrot.lane.b32.xlu0 %v881_v7, %s798_s26 }
 0x1af   : > { %552 = vrot.lane.b32.xlu0 %v881_v7, %s799_s27 }
 0x1fe   : > { %v345_v27 = vpop.xlane.xlu1 %344 }
 0x1ff   : > { %v346_v28 = vsub.f32 %v342_v16, %v345_v27 }
 0x201   : > { %v347_v29 = vmul.f32 1.442695, %v346_v28 }
 0x203   : > { %763 = vpow2.f32 %v347_v29 }
 0x206   : > { %v477_v30 = vpop.xlane.xlu0 %476 }
 0x207   : > { %v478_v31 = vsub.f32 %v474_v19, %v477_v30  ;;  %v805_v19 = vmov 32.0  }
 0x209   : > { %v764_v32 = vpop.eup %763  ;;  %v479_v33 = vmul.f32 1.442695, %v478_v31 }
 0x20a   : > { %v349_v34 = vsel %vm317_vm1, %v764_v32, 0.0 }
 0x20b   : > { %765 = vpow2.f32 %v479_v33  ;;  %350 = vadd.xlane.f32.xlu1 %v349_v34 }
 0x20c   : > { %v411_v35 = vpop.xlane.xlu2 %410 }
 0x20d   : > { %v412_v40 = vsub.f32 %v408_v22, %v411_v35 }
 0x20f   : > { %v413_v43 = vmul.f32 1.442695, %v412_v40 }
 0x211   : > { %v766_v36 = vpop.eup %765 }
 0x212   : > { %v481_v37 = vsel %vm317_vm1, %v766_v36, 0.0 }
 0x213   : > { %482 = vadd.xlane.f32.xlu1 %v481_v37 }
 0x214   : > { %v543_v38 = vpop.xlane.xlu2 %542 }
 0x215   : > { %v544_v39 = vsub.f32 %v540_v25, %v543_v38 }
 0x217   : > { %v545_v41 = vmul.f32 1.442695, %v544_v39  ;;  %v761_v39 = vld [vmem:[%s955_s5] ss:$0 sm:$0xff] }
 0x219   : > { %767 = vpow2.f32 %v545_v41  ;;  %v355_v42 = vpop.permute.xlu0 %354  ;;  %v762_v41 = vld [vmem:[%s956_s6] ss:$0 sm:$0xff] }
 0x21a   : > { %375 = vmatpush.msra.mxu2 %v355_v42  ;;  %769 = vpow2.f32 %v413_v43 }
 0x21f   : > { %v768_v44 = vpop.eup %767 }
 0x220   : > { %v547_v45 = vsel %vm317_vm1, %v768_v44, 0.0  ;;  %v770_v46 = vpop.eup %769 }
 0x221   : > { %548 = vadd.xlane.f32.xlu2 %v547_v45  ;;  %v415_v47 = vsel %vm317_vm1, %v770_v46, 0.0  ;;  %v553_v55 = vpop.permute.xlu0 %552 }
 0x229   : > { %416 = vadd.xlane.f32.xlu2 %v415_v47 }
 0x22c   : > { %420 = vrot.lane.b32.xlu1 %v881_v7, %s800_s28 }
 0x241   : > { %486 = vrot.lane.b32.xlu2 %v881_v7, %s801_s29  ;;  %v307_v7 = vld [vmem:[%s953_s3] sm:$0xff]  ;;  %s273_s29 = scalar_lea.vmem %s957_s7, %s718_s11 }
 0x242   : > { %616 = vmatpush.msra.mxu1 %v307_v7 }
 0x27e   : > { %v351_v48 = vpop.xlane.xlu1 %350 }
 0x27f   : > { %771 = vrcp.f32 %v351_v48 }
 0x285   : > { %v772_v49 = vpop.eup %771 }
 0x286   : > { %v353_v50 = vmul.f32 %v772_v49, %v764_v32  ;;  %v483_v52 = vpop.xlane.xlu1 %482 }
 0x287   : > { %773 = vrcp.f32 %v483_v52 }
 0x288   : > { %723 = vmatmul.msk.f32.vlgmr.msra.gmra.mxu2 %vm317_vm1, %v353_v50 }
 0x28d   : > { %v774_v56 = vpop.eup %773 }
 0x28e   : > { %v485_v60 = vmul.f32 %v774_v56, %v766_v36 }
 0x294   : > { %v549_v51 = vpop.xlane.xlu2 %548 }
 0x29c   : > { %v417_v53 = vpop.xlane.xlu2 %416 }
 0x29d   : > { %775 = vrcp.f32 %v417_v53 }
 0x29e   : > { %v421_v54 = vpop.permute.xlu1 %420  ;;  %777 = vrcp.f32 %v549_v51 }
 0x29f   : > { %441 = vmatpush.msrb.mxu2 %v421_v54  ;;  %779 = vrcp.f32 %v805_v19 }
 0x2a1   : > { %573 = vmatpush.msra.mxu2 %v553_v55 }
 0x2a3   : > { %v776_v57 = vpop.eup %775 }
 0x2a4   : > { %v487_v58 = vpop.permute.xlu2 %486  ;;  %v419_v59 = vmul.f32 %v776_v57, %v770_v46  ;;  %v778_v61 = vpop.eup %777 }
 0x2a5   : > { %507 = vmatpush.msrb.mxu3 %v487_v58  ;;  %v551_v62 = vmul.f32 %v778_v61, %v768_v44  ;;  %v780_v20 = vpop.eup %779 }
 0x2a6   : > { %726 = vmatmul.msk.f32.vlgmr.msrb.gmra.mxu2 %vm317_vm1, %v419_v59  ;;  %729 = vmatmul.msk.f32.vlgmr.msrb.gmra.mxu3 %vm317_vm1, %v485_v60  ;;  %v626_v21 = vmul.f32 32.0, %v780_v20  ;;  %vm630_vm4 = vweird.f32 %v780_v20 }
 0x2a8   : > { %v627_v22 = vsub.f32 1.0, %v626_v21 }
 0x2aa   : > { %v628_v23 = vmul.f32 %v780_v20, %v627_v22 }
 0x2ac   : > { %v629_v24 = vadd.f32 %v780_v20, %v628_v23 }
 0x2ae   : > { %732 = vmatmul.msk.f32.vlgmr.msra.gmra.mxu2 %vm317_vm1, %v551_v62  ;;  %v631_v25 = vsel %vm630_vm4, %v780_v20, %v629_v24 }
 0x30b   : > { %v377_v63 = vpop.f32.mrf.mxu2 }
 0x329   : > { %v443_v0 = vpop.f32.mrf.mxu2  ;;  %v509_v1 = vpop.f32.mrf.mxu3 }
 0x32a   : > { %583 = vrot.lane.b32.xlu1 %v509_v1, %s802_s30  ;;  %579 = vrot.lane.b32.xlu0 %v443_v0, %s803_s8 }
 0x331   : > { %v575_v2 = vpop.f32.mrf.mxu2 }
 0x332   : > { %587 = vrot.lane.b32.xlu0 %v575_v2, %s804_s9 }
 0x39c   : > { %v580_v8 = vpop.permute.xlu0 %579  ;;  %v584_v9 = vpop.permute.xlu1 %583 }
 0x39d   : > { %v590_v10 = vsel %vm317_vm1, %v377_v63, %v580_v8 }
 0x39e   : > { %v592_v11 = vsel %vm591_vm2, %v590_v10, %v584_v9 }
 0x3a4   : > { %v588_v12 = vpop.permute.xlu0 %587 }
 0x3a5   : > { %v594_v13 = vsel %vm593_vm3, %v592_v11, %v588_v12 }
 0x3a6   : > { %733 = vmatmul.msk.f32.vlgmr.msra.gmra.mxu1 %vm283_vm0, %v594_v13 }
 0x423   : > { %v618_v15 = vpop.f32.mrf.mxu1 }
 0x424   : > { %v619_v16 = vadd.f32 %v760_v14, %v618_v15 }
 0x426   : > { %v621_v17 = vadd.f32 %v619_v16, %v874_v4 }
 0x428   : > { %v622_v18 = vsel %vm283_vm0, %v621_v17, 0.0 }
 0x429   : > { %623 = vadd.xlane.f32.xlu2 %v622_v18 }
 0x49c   : > { %v624_v26 = vpop.xlane.xlu2 %623 }
 0x49d   : > { %v632_v27 = vmul.f32 %v631_v25, %v624_v26 }
 0x49f   : > { %v633_v28 = vsub.f32 %v621_v17, %v632_v27 }
 0x4a1   : > { %v634_v29 = vmul.f32 %v633_v28, %v633_v28 }
 0x4a3   : > { %v635_v30 = vsel %vm283_vm0, %v634_v29, 0.0 }
 0x4a4   : > { %636 = vadd.xlane.f32.xlu1 %v635_v30 }
 0x517   : > { %v637_v4 = vpop.xlane.xlu1 %636 }
 0x518   : > { %v638_v31 = vmul.f32 %v637_v4, %v631_v25 }
 0x51a   : > { %v639_v32 = vadd.f32 1e-05, %v638_v31 }
 0x51c   : > { %781 = vrsqrt.f32 %v639_v32  ;;  %vm646_vm6 = vweird.f32 %v639_v32 }
 0x522   : > { %v782_v33 = vpop.eup %781 }
 0x523   : > { %v641_v34 = vmul.f32 %v782_v33, %v639_v32  ;;  %vm647_vm5 = vweird.f32 %v782_v33 }
 0x524   : > { %vm648_vm7 = vmor %vm646_vm6, %vm647_vm5 }
 0x525   : > { %v642_v35 = vmul.f32 %v782_v33, %v641_v34 }
 0x527   : > { %v643_v36 = vmul.f32 0.5, %v642_v35 }
 0x529   : > { %v644_v37 = vsub.f32 1.5, %v643_v36 }
 0x52b   : > { %v645_v38 = vmul.f32 %v782_v33, %v644_v37 }
 0x52d   : > { %v649_v40 = vsel %vm648_vm7, %v782_v33, %v645_v38 }
 0x52e   : > { %v650_v42 = vmul.f32 %v649_v40, %v633_v28 }
 0x530   : > { %v654_v43 = vmul.f32 %v761_v39, %v650_v42 }
 0x532   : > { %v658_v44 = vadd.f32 %v762_v41, %v654_v43 }
 0x534   : > { %659 = vst.msk [vmem:[%s273_s29] sm:$0xff] %vm283_vm0, %v658_v44 }
 0x535 PF: > { %s17_s24 = sadd.s32 1, %s789_s24  }
 0x536   : > { %p14_p4 = scmp.ge.s32.totalorder %s17_s24, 4  }
 0x538   :  { %16 = sbr.rel (!%p14_p4) target bundleno = 1 (0x1), region = 78 }

// kernel: decoder.13
= control target key start
LH: loop header
LB: loop body
LE: loop exit
PB: predicated region body
PF: predicated region fallthrough
CT: control target
= control target key end

     0   :  { %vm17_vm0 = vcmask 261120   ;;  %s184_s0 = inlined_call_operand.vmem [shape: f32[16,32], index: 0, kind: input, shape index: {}]   ;;  %s185_s1 = inlined_call_operand.vmem [shape: f32[1,32], index: 1, kind: input, shape index: {}]   ;;  %s186_s2 = inlined_call_operand.vmem [shape: f32[1,32], index: 2, kind: input, shape index: {}]   ;;  %s187_s3 = inlined_call_operand.hbm [shape: f32[16,32], index: 3, kind: output, shape index: {}]  }
   0x1   :  { %v15_v0 = vld [vmem:[%s184_s0] sm:$0xff] }
   0x2   :  { %v18_v1 = vsel %vm17_vm0, %v15_v0, 0.0 }
   0x3   :  { %8 = vsyncpa [#allocation3], 0  ;;  %19 = vadd.xlane.f32.xlu0 %v18_v1  ;;  %v16_v2 = vld [vmem:[%s184_s0 + $0x8] sm:$0xff]  ;;  %v139_v4 = vmov 32.0   ;;  %v105_v35 = vld [vmem:[%s185_s1] ss:$0 sm:$0xff] }
   0x4   :  { %v21_v3 = vsel %vm17_vm0, %v16_v2, 0.0  ;;  %107 = vrcp.f32 %v139_v4  ;;  %v106_v39 = vld [vmem:[%s186_s2] ss:$0 sm:$0xff]  ;;  %s140_s1 = smov [#allocation2]   ;;  %s89_s22 = sshll.u32 %s187_s3, 4  ;;  %s90_s22 = int_to_ptr.hbm [resolvable:$true] %s89_s22 }
   0x5   :  { %s87_s19 = sshll.u32 %s140_s1, 4  ;;  %s141_s2 = smov 128   ;;  %s88_s19 = int_to_ptr.vmem [resolvable:$true] %s87_s19 }
   0x6   :  { %s142_s23 = smov 8  }
   0xa   :  { %v108_v5 = vpop.eup %107 }
   0xb   :  { %22 = vadd.xlane.f32.xlu0 %v21_v3  ;;  %v25_v6 = vmul.f32 32.0, %v108_v5  ;;  %vm29_vm1 = vweird.f32 %v108_v5 }
   0xd   :  { %v26_v7 = vsub.f32 1.0, %v25_v6 }
   0xf   :  { %v27_v8 = vmul.f32 %v108_v5, %v26_v7 }
  0x11   :  { %v28_v9 = vadd.f32 %v108_v5, %v27_v8 }
  0x13   :  { %v30_v10 = vsel %vm29_vm1, %v108_v5, %v28_v9 }
  0x76   :  { %v20_v11 = vpop.xlane.xlu0 %19 }
  0x77   :  { %v31_v12 = vmul.f32 %v30_v10, %v20_v11 }
  0x79   :  { %v33_v13 = vsub.f32 %v15_v0, %v31_v12 }
  0x7b   :  { %v35_v14 = vmul.f32 %v33_v13, %v33_v13 }
  0x7d   :  { %v37_v15 = vsel %vm17_vm0, %v35_v14, 0.0 }
  0x7e   :  { %38 = vadd.xlane.f32.xlu1 %v37_v15  ;;  %v23_v16 = vpop.xlane.xlu0 %22 }
  0x7f   :  { %v32_v17 = vmul.f32 %v30_v10, %v23_v16 }
  0x81   :  { %v34_v18 = vsub.f32 %v16_v2, %v32_v17 }
  0x83   :  { %v36_v19 = vmul.f32 %v34_v18, %v34_v18 }
  0x85   :  { %v40_v20 = vsel %vm17_vm0, %v36_v19, 0.0 }
  0x86   :  { %41 = vadd.xlane.f32.xlu1 %v40_v20 }
  0xf1   :  { %v39_v21 = vpop.xlane.xlu1 %38 }
  0xf2   :  { %v43_v22 = vmul.f32 %v39_v21, %v30_v10 }
  0xf4   :  { %v45_v23 = vadd.f32 1e-05, %v43_v22 }
  0xf6   :  { %109 = vrsqrt.f32 %v45_v23  ;;  %vm53_vm3 = vweird.f32 %v45_v23 }
  0xf9   :  { %v42_v24 = vpop.xlane.xlu1 %41 }
  0xfa   :  { %v44_v25 = vmul.f32 %v42_v24, %v30_v10 }
  0xfc   :  { %v110_v26 = vpop.eup %109  ;;  %v46_v27 = vadd.f32 1e-05, %v44_v25 }
  0xfd   :  { %v48_v28 = vmul.f32 %v110_v26, %v45_v23  ;;  %vm54_vm2 = vweird.f32 %v110_v26 }
  0xfe   :  { %111 = vrsqrt.f32 %v46_v27  ;;  %vm55_vm4 = vmor %vm53_vm3, %vm54_vm2  ;;  %vm63_vm6 = vweird.f32 %v46_v27 }
  0xff   :  { %v49_v29 = vmul.f32 %v110_v26, %v48_v28 }
 0x101   :  { %v50_v30 = vmul.f32 0.5, %v49_v29 }
 0x103   :  { %v51_v31 = vsub.f32 1.5, %v50_v30 }
 0x104   :  { %v112_v32 = vpop.eup %111 }
 0x105   :  { %v52_v33 = vmul.f32 %v110_v26, %v51_v31  ;;  %v58_v34 = vmul.f32 %v112_v32, %v46_v27  ;;  %vm64_vm5 = vweird.f32 %v112_v32 }
 0x106   :  { %vm65_vm7 = vmor %vm63_vm6, %vm64_vm5 }
 0x107   :  { %v56_v36 = vsel %vm55_vm4, %v110_v26, %v52_v33  ;;  %v59_v37 = vmul.f32 %v112_v32, %v58_v34 }
 0x108   :  { %v67_v38 = vmul.f32 %v56_v36, %v33_v13 }
 0x109   :  { %v60_v40 = vmul.f32 0.5, %v59_v37 }
 0x10a   :  { %v73_v41 = vmul.f32 %v105_v35, %v67_v38 }
 0x10b   :  { %v61_v42 = vsub.f32 1.5, %v60_v40 }
 0x10c   :  { %v79_v43 = vadd.f32 %v106_v39, %v73_v41 }
 0x10d   :  { %v62_v44 = vmul.f32 %v112_v32, %v61_v42 }
 0x10e   :  { %81 = vst.msk [vmem:[#allocation2] sm:$0xff] %vm17_vm0, %v79_v43 }
 0x10f   :  { %v66_v45 = vsel %vm65_vm7, %v112_v32, %v62_v44 }
 0x110   :  { %v68_v46 = vmul.f32 %v66_v45, %v34_v18 }
 0x112   :  { %v74_v47 = vmul.f32 %v105_v35, %v68_v46 }
 0x114   :  { %v80_v48 = vadd.f32 %v106_v39, %v74_v47 }
 0x116   :  { %82 = vst.msk [vmem:[#allocation2 + $0x8] sm:$0xff] %vm17_vm0, %v80_v48 }
 0x117   :  { %95 = dma.vmem_to_hbm [thread:$0]  %s88_s19, 256, %s90_s22, [#allocation3], %s141_s2, %s141_s2, %s142_s23  }
 0x118   :  { %137 = dma.done.wait [#allocation3], 256  }
 0x119   :  { %138 = vsyncadd [#allocation3], 4294967040 }
 0x11a   :  { %100 = vsyncpa [#allocation3], 1 }

// kernel: decoder.11
= control target key start
LH: loop header
LB: loop body
LE: loop exit
PB: predicated region body
PF: predicated region fallthrough
CT: control target
= control target key end

     0   :  { %15 = vsyncpa [#allocation3], 0  ;;  %s1078_s13 = smov 0   ;;  %s1189_s0 = inlined_call_operand.vmem [shape: f32[2,8,32], index: 0, kind: input, shape index: {}]   ;;  %s1190_s1 = inlined_call_operand.vmem [shape: f32[2,8,32], index: 1, kind: input, shape index: {}]   ;;  %s1191_s2 = inlined_call_operand.vmem [shape: f32[32,32], index: 2, kind: input, shape index: {}]   ;;  %s1192_s3 = inlined_call_operand.vmem [shape: f32[1,32], index: 3, kind: input, shape index: {}]   ;;  %s1193_s4 = inlined_call_operand.vmem [shape: f32[32,64], index: 4, kind: input, shape index: {}]   ;;  %s1194_s5 = inlined_call_operand.vmem [shape: f32[1,64], index: 5, kind: input, shape index: {}]   ;;  %s1195_s6 = inlined_call_operand.hbm [shape: f32[32,32], index: 6, kind: input, shape index: {}]   ;;  %s1196_s7 = inlined_call_operand.vmem [shape: f32[1,32], index: 7, kind: input, shape index: {}]   ;;  %s1197_s8 = inlined_call_operand.vmem [shape: f32[1,32], index: 8, kind: input, shape index: {}]   ;;  %s1198_s9 = inlined_call_operand.vmem [shape: f32[1,32], index: 9, kind: input, shape index: {}]   ;;  %s1199_s10 = inlined_call_operand.vmem [shape: f32[2,8,32], index: 10, kind: output, shape index: {}]  }
   0x1 LB: > { %s295_s16 = sshll.u32 %s1195_s6, 4  ;;  %s883_s17 = sadd.s32 4294967295, %s1007_s13   ;;  %s1007_s13 = sphi %s1078_s13, %s21_s13   ;;  %s296_s16 = int_to_ptr.hbm [resolvable:$true] %s295_s16 }
   0x2   : > { %p885_p0 = scmp.ge.s32.totalorder %s1007_s13, 1  ;;  %p272_p1 = scmp.lt.s32.totalorder %s1007_s13, 3 }
   0x3   : > { %p918_p2 = scmp.eq.s32.totalorder %s883_s17, 0  ;;  %s1009_s18 = smov [#allocation2]  }
   0x4   : > { %p273_p3 = pnand %p885_p0, %p272_p1  ;;  %s297_s19 = sshll.u32 %s1009_s18, 4  ;;  %s298_s19 = int_to_ptr.vmem [resolvable:$true] %s297_s19 }
   0x5   : > { %s1010_s20 = smov 128   ;;  %s1011_s21 = smov 8  }
   0x6   : > { %p914_p4 = pneg %p273_p3  ;;  %336 = sbr.rel (%p273_p3) target bundleno = 1602 (0x642), region = 60 }
   0x8   : > { %p915_p5 = pnand %p918_p2, %p914_p4 }
   0xa   : > { %917 = dma.hbm_to_vmem [thread:$0]  (!%p915_p5), %s296_s16, 512, %s298_s19, [#allocation3], %s1010_s20, %s1010_s20, %s1011_s21  }
   0xb   : > { %1002 = dma.done.wait (%p918_p2), [#allocation3], 512  }
   0xc   : > { %1004 = vsyncadd (%p918_p2), [#allocation3], 4294966784  ;;  %p377_p6 = scmp.lt.s32.totalorder %s883_s17, 1  ;;  %v394_v0 = vld [vmem:[%s1191_s2 + $0x18] sm:$0xff]  ;;  %v393_v2 = vld [vmem:[%s1191_s2 + $0x10] sm:$0xff]  ;;  %vm399_vm0 = vcmask 261120  }
   0xd   : > { %v426_v1 = vld [vmem:[%s1193_s4 + $0x18] sm:$0xff]  ;;  %415 = vmatpush.msra.mxu0 %v394_v0  ;;  %v425_v3 = vld [vmem:[%s1193_s4 + $0x10] sm:$0xff]  ;;  %v392_v4 = vld [vmem:[%s1191_s2 + $0x8] sm:$0xff]  ;;  %vm461_vm1 = vcmask 64512   ;;  %s1012_s11 = smov 96   ;;  %s1013_s12 = smov 120  }
   0xe   : > { %s1201_s17 = smov (!%p377_p6, %s883_s17), 1  ;;  %446 = vmatpush.msra.mxu1 %v426_v1  ;;  %v424_v5 = vld [vmem:[%s1193_s4 + $0x8] sm:$0xff]  ;;  %v391_v6 = vld [vmem:[%s1191_s2] sm:$0xff]  ;;  %s1014_s14 = smov 104   ;;  %vm737_vm2 = vcmask 130048   ;;  %vm739_vm3 = vcmask 195584  }
   0xf   : > { %s1089_s22 = sshll.u32 %s1201_s17, 3  ;;  %416 = vmatpush.msra.mxu0 %v393_v2  ;;  %v423_v7 = vld [vmem:[%s1193_s4] sm:$0xff]  ;;  %s1015_s15 = smov 112  }
  0x10   : > { %s380_s18 = scalar_lea.vmem %s1189_s0, %s1089_s22  ;;  %s384_s21 = scalar_lea.vmem %s1190_s1, %s1089_s22  ;;  %447 = vmatpush.msra.mxu1 %v425_v3  ;;  %v942_v10 = vld [vmem:[%s1192_s3] ss:$0 sm:$0xff] }
  0x11   : > { %417 = vmatpush.msra.mxu0 %v392_v4  ;;  %v1123_v8 = vld [vmem:[%s380_s18] sm:$0xff]  ;;  %s1016_s16 = smov 72   ;;  %s1017_s17 = smov 88  }
  0x12   : > { %448 = vmatpush.msra.mxu1 %v424_v5  ;;  %v390_v9 = vld [vmem:[%s384_s21] sm:$0xff]  ;;  %s1018_s18 = smov 80   ;;  %s1019_s19 = smov 8  }
  0x13   : > { %418 = vmatpush.msra.mxu0 %v391_v6  ;;  %v943_v11 = vld [vmem:[%s1194_s5] ss:$0 sm:$0xff]  ;;  %s1020_s20 = smov 24   ;;  %s1021_s21 = smov 16  }
  0x14   : > { %449 = vmatpush.msra.mxu1 %v423_v7  ;;  %893 = vmatmul.msk.f32.vlgmr.msra.gmra.mxu0 %vm399_vm0, %v1123_v8 }
  0x15   : > { %894 = vmatmul.msk.f32.vlgmr.msra.gmra.mxu1 %vm399_vm0, %v390_v9 }
  0x91   : > { %v420_v12 = vpop.f32.mrf.mxu0 }
  0x92   : > { %v451_v13 = vpop.f32.mrf.mxu1  ;;  %v421_v14 = vadd.f32 %v942_v10, %v420_v12  ;;  %v456_v12 = vld [vmem:[#allocation2 + $0x10] sm:$0xff] }
  0x93   : > { %v1134_v15 = vadd.f32 %v943_v11, %v451_v13  ;;  %v457_v11 = vld [vmem:[#allocation2 + $0x18] sm:$0xff]  ;;  %v455_v13 = vld [vmem:[#allocation2 + $0x8] sm:$0xff] }
  0x94   : > { %526 = vrot.lane.b32.xlu2 %v421_v14, %s1013_s12 }
  0x95   : > { %500 = vrot.lane.b32.xlu1 %v1134_v15, %s1012_s11  ;;  %895 = vmatpush.xpose.msk.msra.mxu2 %vm461_vm1, %v1134_v15  ;;  %s388_s11 = scalar_lea.vmem %s1199_s10, %s1089_s22 }
  0x98   : > { %896 = vmatmul.msk.f32.vlgmr.msra.gmra.mxu2 %vm461_vm1, %v421_v14 }
  0x9c   : > { %660 = vrot.lane.b32.xlu2 %v1134_v15, %s1014_s14 }
  0x9d   : > { %528 = vrot.lane.b32.xlu1 %v1134_v15, %s1013_s12 }
  0xa4   : > { %592 = vrot.lane.b32.xlu2 %v421_v14, %s1015_s15 }
  0xa5   : > { %594 = vrot.lane.b32.xlu1 %v1134_v15, %s1015_s15 }
  0xee   : > { %v527_v16 = vpop.permute.xlu2 %526 }
  0xf6   : > { %v661_v19 = vpop.permute.xlu2 %660 }
  0xfe   : > { %v593_v21 = vpop.permute.xlu2 %592 }
 0x107   : > { %v501_v17 = vpop.permute.xlu1 %500 }
 0x108   : > { %521 = vmatpush.msra.mxu3 %v501_v17 }
 0x10f   : > { %v529_v18 = vpop.permute.xlu1 %528 }
 0x110   : > { %898 = vmatpush.xpose.msk.msrb.mxu3 %vm461_vm1, %v529_v18 }
 0x117   : > { %v595_v20 = vpop.permute.xlu1 %594 }
 0x118   : > { %901 = vmatpush.xpose.msk.msrb.mxu0 %vm461_vm1, %v595_v20 }
 0x11b   : > { %v485_v22 = vpop.f32.mrf.mxu2  ;;  %902 = vmatmul.msk.f32.vlgmr.msrb.gmra.mxu0 %vm461_vm1, %v593_v21  ;;  %v944_v21 = vld [vmem:[%s1196_s7] ss:$0 sm:$0xff] }
 0x11c   : > { %v488_v23 = vmul.f32 0.35355338, %v485_v22  ;;  %759 = vmatpush.msra.mxu0 %v457_v11 }
 0x11e   : > { %v489_v24 = vsel %vm461_vm1, %v488_v23, -inf  ;;  %760 = vmatpush.msra.mxu0 %v456_v12 }
 0x11f   : > { %490 = vmax.xlane.f32.xlu0 %v489_v24 }
 0x120   : > { %761 = vmatpush.msra.mxu0 %v455_v13 }
 0x192   : > { %v491_v25 = vpop.xlane.xlu0 %490 }
 0x193   : > { %v492_v26 = vsub.f32 %v488_v23, %v491_v25 }
 0x195   : > { %v493_v27 = vmul.f32 1.442695, %v492_v26  ;;  %v1022_v26 = vmov 32.0  }
 0x197   : > { %947 = vpow2.f32 %v493_v27 }
 0x198   : > { %v617_v30 = vpop.f32.mrf.mxu0 }
 0x199   : > { %v620_v31 = vmul.f32 0.35355338, %v617_v30 }
 0x19b   : > { %v621_v32 = vsel %vm461_vm1, %v620_v31, -inf }
 0x19d   : > { %v948_v28 = vpop.eup %947 }
 0x19e   : > { %v495_v29 = vsel %vm461_vm1, %v948_v28, 0.0 }
 0x19f   : > { %496 = vadd.xlane.f32.xlu0 %v495_v29 }
 0x1b3   : > { %658 = vrot.lane.b32.xlu0 %v421_v14, %s1014_s14  ;;  %v454_v14 = vld [vmem:[#allocation2] sm:$0xff] }
 0x1b4   : > { %762 = vmatpush.msra.mxu0 %v454_v14 }
 0x1dd   : > { %622 = vmax.xlane.f32.xlu0 %v621_v32 }
 0x1f1   : > { %698 = vrot.lane.b32.xlu0 %v1134_v15, %s1016_s16 }
 0x212   : > { %v497_v33 = vpop.xlane.xlu0 %496 }
 0x213   : > { %949 = vrcp.f32 %v497_v33 }
 0x219   : > { %v950_v34 = vpop.eup %949 }
 0x21a   : > { %v499_v35 = vmul.f32 %v950_v34, %v948_v28 }
 0x21c   : > { %897 = vmatmul.msk.f32.vlgmr.msra.gmra.mxu3 %vm461_vm1, %v499_v35 }
 0x21d   : > { %904 = vmatpush.xpose.msk.msra.mxu3 %vm461_vm1, %v661_v19 }
 0x224   : > { %899 = vmatmul.msk.f32.vlgmr.msrb.gmra.mxu3 %vm461_vm1, %v527_v16 }
 0x225   : > { %v659_v36 = vpop.permute.xlu0 %658 }
 0x22c   : > { %905 = vmatmul.msk.f32.vlgmr.msra.gmra.mxu3 %vm461_vm1, %v659_v36 }
 0x250   : > { %v623_v37 = vpop.xlane.xlu0 %622 }
 0x251   : > { %v624_v39 = vsub.f32 %v620_v31, %v623_v37 }
 0x253   : > { %v625_v40 = vmul.f32 1.442695, %v624_v39 }
 0x255   : > { %951 = vpow2.f32 %v625_v40 }
 0x25b   : > { %v952_v44 = vpop.eup %951 }
 0x25c   : > { %v627_v48 = vsel %vm461_vm1, %v952_v44, 0.0 }
 0x263   : > { %v699_v1 = vpop.permute.xlu0 %698 }
 0x29f   : > { %v1154_v38 = vpop.f32.mrf.mxu3 }
 0x2a7   : > { %v551_v41 = vpop.f32.mrf.mxu3 }
 0x2a8   : > { %v554_v42 = vmul.f32 0.35355338, %v551_v41 }
 0x2aa   : > { %v555_v43 = vsel %vm461_vm1, %v554_v42, -inf }
 0x2ab   : > { %556 = vmax.xlane.f32.xlu1 %v555_v43 }
 0x2af   : > { %v683_v45 = vpop.f32.mrf.mxu3 }
 0x2b0   : > { %v686_v46 = vmul.f32 0.35355338, %v683_v45 }
 0x2b2   : > { %v687_v47 = vsel %vm461_vm1, %v686_v46, -inf }
 0x2b3   : > { %688 = vmax.xlane.f32.xlu2 %v687_v47  ;;  %628 = vadd.xlane.f32.xlu1 %v627_v48  ;;  %v946_v48 = vld [vmem:[%s1198_s9] ss:$0 sm:$0xff] }
 0x31e   : > { %v557_v49 = vpop.xlane.xlu1 %556 }
 0x31f   : > { %v558_v50 = vsub.f32 %v554_v42, %v557_v49 }
 0x321   : > { %v559_v51 = vmul.f32 1.442695, %v558_v50 }
 0x323   : > { %953 = vpow2.f32 %v559_v51 }
 0x326   : > { %v689_v52 = vpop.xlane.xlu2 %688  ;;  %v629_v59 = vpop.xlane.xlu1 %628 }
 0x327   : > { %v690_v53 = vsub.f32 %v686_v46, %v689_v52  ;;  %v945_v46 = vld [vmem:[%s1197_s8] ss:$0 sm:$0xff] }
 0x329   : > { %v954_v54 = vpop.eup %953  ;;  %v691_v55 = vmul.f32 1.442695, %v690_v53 }
 0x32a   : > { %v561_v56 = vsel %vm461_vm1, %v954_v54, 0.0 }
 0x32b   : > { %955 = vpow2.f32 %v691_v55  ;;  %562 = vadd.xlane.f32.xlu2 %v561_v56 }
 0x331   : > { %v956_v57 = vpop.eup %955 }
 0x332   : > { %v693_v58 = vsel %vm461_vm1, %v956_v57, 0.0 }
 0x333   : > { %694 = vadd.xlane.f32.xlu1 %v693_v58 }
 0x343   : > { %566 = vrot.lane.b32.xlu2 %v1134_v15, %s1017_s17 }
 0x34c   : > { %632 = vrot.lane.b32.xlu1 %v1134_v15, %s1018_s18 }
 0x39e   : > { %v563_v60 = vpop.xlane.xlu2 %562 }
 0x39f   : > { %957 = vrcp.f32 %v563_v60 }
 0x3a5   : > { %v958_v61 = vpop.eup %957 }
 0x3a6   : > { %v567_v62 = vpop.permute.xlu2 %566  ;;  %v695_v63 = vpop.xlane.xlu1 %694  ;;  %v565_v0 = vmul.f32 %v958_v61, %v954_v54 }
 0x3a7   : > { %959 = vrcp.f32 %v695_v63  ;;  %587 = vmatpush.msrb.mxu2 %v567_v62 }
 0x3a8   : > { %900 = vmatmul.msk.f32.vlgmr.msrb.gmra.mxu2 %vm461_vm1, %v565_v0  ;;  %961 = vrcp.f32 %v629_v59 }
 0x3a9   : > { %719 = vmatpush.msra.mxu2 %v699_v1  ;;  %963 = vrcp.f32 %v1022_v26 }
 0x3ad   : > { %v960_v2 = vpop.eup %959 }
 0x3ae   : > { %v697_v3 = vmul.f32 %v960_v2, %v956_v57  ;;  %v962_v4 = vpop.eup %961 }
 0x3af   : > { %v631_v6 = vmul.f32 %v962_v4, %v952_v44  ;;  %v964_v27 = vpop.eup %963 }
 0x3b0   : > { %906 = vmatmul.msk.f32.vlgmr.msra.gmra.mxu2 %vm461_vm1, %v697_v3  ;;  %v772_v28 = vmul.f32 32.0, %v964_v27  ;;  %vm776_vm4 = vweird.f32 %v964_v27 }
 0x3b2   : > { %v773_v29 = vsub.f32 1.0, %v772_v28 }
 0x3b4   : > { %v774_v30 = vmul.f32 %v964_v27, %v773_v29 }
 0x3b6   : > { %v775_v31 = vadd.f32 %v964_v27, %v774_v30 }
 0x3b8   : > { %v777_v32 = vsel %vm776_vm4, %v964_v27, %v775_v31 }
 0x3be   : > { %v633_v5 = vpop.permute.xlu1 %632 }
 0x3bf   : > { %653 = vmatpush.msrb.mxu1 %v633_v5 }
 0x3c0   : > { %903 = vmatmul.msk.f32.vlgmr.msrb.gmra.mxu1 %vm461_vm1, %v631_v6 }
 0x42b   : > { %v589_v7 = vpop.f32.mrf.mxu2 }
 0x42c   : > { %725 = vrot.lane.b32.xlu2 %v589_v7, %s1019_s19 }
 0x433   : > { %v721_v9 = vpop.f32.mrf.mxu2 }
 0x434   : > { %733 = vrot.lane.b32.xlu2 %v721_v9, %s1020_s20 }
 0x43d   : > { %v655_v10 = vpop.f32.mrf.mxu1 }
 0x43e   : > { %729 = vrot.lane.b32.xlu0 %v655_v10, %s1021_s21 }
 0x486   : > { %v726_v15 = vpop.permute.xlu2 %725 }
 0x487   : > { %v736_v16 = vsel %vm461_vm1, %v1154_v38, %v726_v15 }
 0x48e   : > { %v734_v18 = vpop.permute.xlu2 %733 }
 0x4b0   : > { %v730_v17 = vpop.permute.xlu0 %729 }
 0x4b1   : > { %v738_v19 = vsel %vm737_vm2, %v736_v16, %v730_v17 }
 0x4b2   : > { %v740_v20 = vsel %vm739_vm3, %v738_v19, %v734_v18 }
 0x4b3   : > { %907 = vmatmul.msk.f32.vlgmr.msra.gmra.mxu0 %vm399_vm0, %v740_v20 }
 0x530   : > { %v764_v22 = vpop.f32.mrf.mxu0 }
 0x531   : > { %v765_v23 = vadd.f32 %v944_v21, %v764_v22 }
 0x533   : > { %v767_v24 = vadd.f32 %v765_v23, %v1123_v8 }
 0x535   : > { %v768_v25 = vsel %vm399_vm0, %v767_v24, 0.0 }
 0x536   : > { %769 = vadd.xlane.f32.xlu0 %v768_v25 }
 0x5a9   : > { %v770_v33 = vpop.xlane.xlu0 %769 }
 0x5aa   : > { %v778_v34 = vmul.f32 %v777_v32, %v770_v33 }
 0x5ac   : > { %v779_v35 = vsub.f32 %v767_v24, %v778_v34 }
 0x5ae   : > { %v780_v36 = vmul.f32 %v779_v35, %v779_v35 }
 0x5b0   : > { %v781_v37 = vsel %vm399_vm0, %v780_v36, 0.0 }
 0x5b1   : > { %782 = vadd.xlane.f32.xlu1 %v781_v37 }
 0x624   : > { %v783_v8 = vpop.xlane.xlu1 %782 }
 0x625   : > { %v784_v38 = vmul.f32 %v783_v8, %v777_v32 }
 0x627   : > { %v785_v39 = vadd.f32 1e-05, %v784_v38 }
 0x629   : > { %965 = vrsqrt.f32 %v785_v39  ;;  %vm792_vm6 = vweird.f32 %v785_v39 }
 0x62f   : > { %v966_v40 = vpop.eup %965 }
 0x630   : > { %v787_v41 = vmul.f32 %v966_v40, %v785_v39  ;;  %vm793_vm5 = vweird.f32 %v966_v40 }
 0x631   : > { %vm794_vm7 = vmor %vm792_vm6, %vm793_vm5 }
 0x632   : > { %v788_v42 = vmul.f32 %v966_v40, %v787_v41 }
 0x634   : > { %v789_v43 = vmul.f32 0.5, %v788_v42 }
 0x636   : > { %v790_v44 = vsub.f32 1.5, %v789_v43 }
 0x638   : > { %v791_v45 = vmul.f32 %v966_v40, %v790_v44 }
 0x63a   : > { %v795_v47 = vsel %vm794_vm7, %v966_v40, %v791_v45 }
 0x63b   : > { %v796_v49 = vmul.f32 %v795_v47, %v779_v35 }
 0x63d   : > { %v800_v50 = vmul.f32 %v945_v46, %v796_v49 }
 0x63f   : > { %v804_v51 = vadd.f32 %v946_v48, %v800_v50 }
 0x641   : > { %805 = vst.msk [vmem:[%s388_s11] sm:$0xff] %vm399_vm0, %v804_v51 }
 0x642 PF: > { %s21_s13 = sadd.s32 1, %s1007_s13  }
 0x643   : > { %p18_p7 = scmp.ge.s32.totalorder %s21_s13, 4  }
 0x645   :  { %20 = sbr.rel (!%p18_p7) target bundleno = 1 (0x1), region = 98 }
 0x64a   :  { %825 = vsyncpa [#allocation3], 1 }
 0x64b   :  { %827 = vsyncpa [#allocation3 + $0x1], 1 }

</bundles_post_ra>
